<compile_context>
chip_gen: v7x
topology: tpu7x:2x2x1
jax: 0.10.0
libtpu: 0.0.40
codegen_flags: <defaults>
</compile_context>

<pallas_src>
import jax
import jax.numpy as jnp
from jax.experimental import pallas as pl
from jax.experimental.pallas import tpu as pltpu

BN_EPS = 1e-5
HIDDEN = 2048
OUT = 512


def _ae_fused_kernel(x_ref, w1_ref, g1_ref, be1_ref, w2_ref, g2_ref, be2_ref, out_ref):
    """One autoencoder branch per grid step (branch index = pl.program_id(0))."""
    inv_b = 1.0 / x_ref.shape[0]

    # ---- Linear 1: [B, Din] @ [Din, 2048]  (bias cancelled by training-mode BN) ----
    x = x_ref[...].astype(jnp.bfloat16)
    h = jnp.dot(x, w1_ref[...], preferred_element_type=jnp.float32)

    # ---- BatchNorm1d(2048), training mode, one-pass biased stats, folded scale/shift ----
    mu1 = jnp.sum(h, axis=0, keepdims=True) * inv_b
    var1 = jnp.maximum(jnp.sum(h * h, axis=0, keepdims=True) * inv_b - mu1 * mu1, 0.0)
    a1 = jax.lax.rsqrt(var1 + BN_EPS) * g1_ref[...]
    b1 = be1_ref[...] - mu1 * a1
    h = h * a1 + b1

    # ---- ReLU ----
    h = jnp.maximum(h, 0.0)

    # ---- Linear 2: [B, 2048] @ [2048, 512]  (bias cancelled by BN) ----
    z = jnp.dot(h.astype(jnp.bfloat16), w2_ref[...], preferred_element_type=jnp.float32)

    # ---- BatchNorm1d(512), training mode ----
    mu2 = jnp.sum(z, axis=0, keepdims=True) * inv_b
    var2 = jnp.maximum(jnp.sum(z * z, axis=0, keepdims=True) * inv_b - mu2 * mu2, 0.0)
    a2 = jax.lax.rsqrt(var2 + BN_EPS) * g2_ref[...]
    b2 = be2_ref[...] - mu2 * a2
    z = z * a2 + b2

    # ---- Tanh ----
    out_ref[...] = jnp.tanh(z).astype(out_ref.dtype)


@jax.jit
def _fused_forward(x_stack, w1_stack, g1, be1, w2_stack, g2, be2):
    """x_stack: [2, B, Dmax] f32; weights bf16 [2, Dmax, 2048] / [2, 2048, 512]."""
    n_branch, B, d_max = x_stack.shape
    sel = lambda i: (i, 0, 0)  # pick branch i, full block in the other dims
    return pl.pallas_call(
        _ae_fused_kernel,
        out_shape=jax.ShapeDtypeStruct((n_branch, B, OUT), jnp.float32),
        grid=(n_branch,),
        in_specs=[
            pl.BlockSpec((None, B, d_max), sel),       # x
            pl.BlockSpec((None, d_max, HIDDEN), sel),  # w1 (bf16)
            pl.BlockSpec((None, 1, HIDDEN), sel),      # bn1 gamma
            pl.BlockSpec((None, 1, HIDDEN), sel),      # bn1 beta
            pl.BlockSpec((None, HIDDEN, OUT), sel),    # w2 (bf16)
            pl.BlockSpec((None, 1, OUT), sel),         # bn2 gamma
            pl.BlockSpec((None, 1, OUT), sel),         # bn2 beta
        ],
        out_specs=pl.BlockSpec((None, B, OUT), sel),
        compiler_params=pltpu.CompilerParams(
            dimension_semantics=("parallel",),        # encoder / decoder independent
            vmem_limit_bytes=32 << 20,
        ),
    )(x_stack, w1_stack, g1, be1, w2_stack, g2, be2)


def prepare_fused_params(enc_params, dec_params):
    """One-time (outside the hot path): transpose to [in, out], zero-pad the smaller
    input dim (rounded up to a multiple of 128 for lane alignment), cast weights to
    bf16, and stack encoder/decoder along a branch axis. Linear biases are dropped
    (exactly cancelled by training-mode BatchNorm)."""
    d_raw = max(enc_params["w1"].shape[1], dec_params["w1"].shape[1])
    d_max = ((d_raw + 127) // 128) * 128

    def prep(p):
        w1 = jnp.asarray(p["w1"]).T.astype(jnp.bfloat16)            # [Din, 2048]
        if w1.shape[0] < d_max:
            w1 = jnp.pad(w1, ((0, d_max - w1.shape[0]), (0, 0)))
        w2 = jnp.asarray(p["w2"]).T.astype(jnp.bfloat16)            # [2048, 512]
        return (w1, w2,
                p["bn1_gamma"].reshape(1, -1), p["bn1_beta"].reshape(1, -1),
                p["bn2_gamma"].reshape(1, -1), p["bn2_beta"].reshape(1, -1))

    enc, dec = prep(enc_params), prep(dec_params)
    w1s, w2s, g1s, be1s, g2s, be2s = (jnp.stack([e, d], axis=0) for e, d in zip(enc, dec))
    return {"d_max": d_max, "w1": w1s, "w2": w2s,
            "bn1_gamma": g1s, "bn1_beta": be1s, "bn2_gamma": g2s, "bn2_beta": be2s}


def autoencoder_forward(x, y, fused):
    """x: [B, input_size], y: [B, input_size2] -> (encoded [B,512], decoded [B,512])."""
    d_max = fused["d_max"]
    xp = jnp.pad(x, ((0, 0), (0, d_max - x.shape[1])))
    yp = jnp.pad(y, ((0, 0), (0, d_max - y.shape[1])))
    x_stack = jnp.stack([xp, yp], axis=0)
    out = _fused_forward(x_stack, fused["w1"], fused["bn1_gamma"], fused["bn1_beta"],
                         fused["w2"], fused["bn2_gamma"], fused["bn2_beta"])
    return out[0], out[1]


def init_branch_params(key, input_size):
    """Deterministic synthetic parameters, PyTorch shapes: Linear weight [out, in]."""
    k1, k2, k3, k4 = jax.random.split(key, 4)
    s1 = 1.0 / jnp.sqrt(jnp.float32(input_size))
    s2 = 1.0 / jnp.sqrt(jnp.float32(HIDDEN))
    return {
        "w1": jax.random.uniform(k1, (HIDDEN, input_size), jnp.float32, -s1, s1),
        "b1": jax.random.uniform(k2, (HIDDEN,), jnp.float32, -s1, s1),
        "bn1_gamma": jnp.ones((HIDDEN,), jnp.float32),
        "bn1_beta": jnp.zeros((HIDDEN,), jnp.float32),
        "w2": jax.random.uniform(k3, (OUT, HIDDEN), jnp.float32, -s2, s2),
        "b2": jax.random.uniform(k4, (OUT,), jnp.float32, -s2, s2),
        "bn2_gamma": jnp.ones((OUT,), jnp.float32),
        "bn2_beta": jnp.zeros((OUT,), jnp.float32),
    }


def _branch_ref(x, p):
    """Pure-JAX f32 reference (training-mode BatchNorm, biases included)."""
    h = x @ p["w1"].T + p["b1"]
    mu = h.mean(0); var = ((h - mu) ** 2).mean(0)
    h = (h - mu) / jnp.sqrt(var + BN_EPS) * p["bn1_gamma"] + p["bn1_beta"]
    h = jnp.maximum(h, 0.0)
    z = h @ p["w2"].T + p["b2"]
    mu2 = z.mean(0); var2 = ((z - mu2) ** 2).mean(0)
    z = (z - mu2) / jnp.sqrt(var2 + BN_EPS) * p["bn2_gamma"] + p["bn2_beta"]
    return jnp.tanh(z)


if __name__ == "__main__":
    B = 8
    input_size = 256    # encoder input features
    input_size2 = 128   # decoder input features
    # NOTE: the hidden_size argument of the PyTorch module is unused in its forward pass.

    root = jax.random.PRNGKey(0)
    kx, ky, ke, kd = jax.random.split(root, 4)
    x = jax.random.normal(kx, (B, input_size), jnp.float32)
    y = jax.random.normal(ky, (B, input_size2), jnp.float32)

    enc_params = init_branch_params(ke, input_size)
    dec_params = init_branch_params(kd, input_size2)

    # One-time weight preparation (transpose / pad / bf16 / stack) outside the hot path.
    fused = prepare_fused_params(enc_params, dec_params)

    encoded, decoded = autoencoder_forward(x, y, fused)
    jax.block_until_ready((encoded, decoded))

    # Correctness check against the pure-JAX f32 reference (bf16 weights => looser tol).
    enc_ref = _branch_ref(x, enc_params)
    dec_ref = _branch_ref(y, dec_params)
    assert encoded.shape == (B, OUT) and decoded.shape == (B, OUT)
    assert jnp.max(jnp.abs(encoded - enc_ref)) < 5e-2
    assert jnp.max(jnp.abs(decoded - dec_ref)) < 5e-2

    print("KERNEL_OK")
</pallas_src>

<mosaic_0001>
module attributes {stable_mosaic.version = 11 : i64} {
  func.func @_ae_fused_kernel(%arg0: i32, %arg1: memref<1x8x256xf32, #tpu.memory_space<vmem>>, %arg2: memref<1x256x2048xbf16, #tpu.memory_space<vmem>>, %arg3: memref<1x1x2048xf32, #tpu.memory_space<vmem>>, %arg4: memref<1x1x2048xf32, #tpu.memory_space<vmem>>, %arg5: memref<1x2048x512xbf16, #tpu.memory_space<vmem>>, %arg6: memref<1x1x512xf32, #tpu.memory_space<vmem>>, %arg7: memref<1x1x512xf32, #tpu.memory_space<vmem>>, %arg8: memref<1x8x512xf32, #tpu.memory_space<vmem>>) attributes {dimension_semantics = [#tpu.dimension_semantics<parallel>], iteration_bounds = array<i64: 2>, scalar_prefetch = 0 : i64, scratch_operands = 0 : i64, tpu.core_type = #tpu.core_type<tc>, window_params = [{transform_indices = @transform_0, window_bounds = array<i64: 1, 8, 256>}, {transform_indices = @transform_1, window_bounds = array<i64: 1, 256, 2048>}, {transform_indices = @transform_2, window_bounds = array<i64: 1, 1, 2048>}, {transform_indices = @transform_3, window_bounds = array<i64: 1, 1, 2048>}, {transform_indices = @transform_4, window_bounds = array<i64: 1, 2048, 512>}, {transform_indices = @transform_5, window_bounds = array<i64: 1, 1, 512>}, {transform_indices = @transform_6, window_bounds = array<i64: 1, 1, 512>}, {transform_indices = @transform_7, window_bounds = array<i64: 1, 8, 512>}]} {
    %c0 = arith.constant 0 : index
    %c0_0 = arith.constant 0 : index
    %c0_1 = arith.constant 0 : index
    %0 = vector.load %arg1[%c0, %c0_0, %c0_1] : memref<1x8x256xf32, #tpu.memory_space<vmem>>, vector<1x8x256xf32>
    %1 = vector.shape_cast %0 : vector<1x8x256xf32> to vector<8x256xf32>
    %2 = arith.truncf %1 : vector<8x256xf32> to vector<8x256xbf16>
    %c0_2 = arith.constant 0 : index
    %c0_3 = arith.constant 0 : index
    %c0_4 = arith.constant 0 : index
    %3 = vector.load %arg2[%c0_2, %c0_3, %c0_4] : memref<1x256x2048xbf16, #tpu.memory_space<vmem>>, vector<1x256x2048xbf16>
    %4 = vector.shape_cast %3 : vector<1x256x2048xbf16> to vector<256x2048xbf16>
    %cst = arith.constant dense<0.000000e+00> : vector<8x2048xf32>
    %5 = tpu.matmul %2, %4, %cst {dimension_numbers = #tpu.dot_dimension_numbers<[1], [0], [0], [1], [0, 0, 1, 1], [], []>} : vector<8x256xbf16>, vector<256x2048xbf16>, vector<8x2048xf32> -> vector<8x2048xf32>
    %cst_5 = arith.constant dense<0.000000e+00> : vector<2048xf32>
    %6 = vector.multi_reduction <add>, %5, %cst_5 [0] : vector<8x2048xf32> to vector<2048xf32>
    %7 = vector.shape_cast %6 : vector<2048xf32> to vector<1x2048xf32>
    %cst_6 = arith.constant 1.250000e-01 : f32
    %8 = vector.broadcast %cst_6 : f32 to vector<1x2048xf32>
    %9 = arith.mulf %7, %8 : vector<1x2048xf32>
    %10 = arith.mulf %5, %5 : vector<8x2048xf32>
    %cst_7 = arith.constant dense<0.000000e+00> : vector<2048xf32>
    %11 = vector.multi_reduction <add>, %10, %cst_7 [0] : vector<8x2048xf32> to vector<2048xf32>
    %12 = vector.shape_cast %11 : vector<2048xf32> to vector<1x2048xf32>
    %cst_8 = arith.constant 1.250000e-01 : f32
    %13 = vector.broadcast %cst_8 : f32 to vector<1x2048xf32>
    %14 = arith.mulf %12, %13 : vector<1x2048xf32>
    %15 = arith.mulf %9, %9 : vector<1x2048xf32>
    %16 = arith.subf %14, %15 : vector<1x2048xf32>
    %cst_9 = arith.constant 0.000000e+00 : f32
    %17 = vector.broadcast %cst_9 : f32 to vector<1x2048xf32>
    %18 = arith.maximumf %16, %17 : vector<1x2048xf32>
    %cst_10 = arith.constant 9.99999974E-6 : f32
    %19 = vector.broadcast %cst_10 : f32 to vector<1x2048xf32>
    %20 = arith.addf %18, %19 : vector<1x2048xf32>
    %21 = math.rsqrt %20 : vector<1x2048xf32>
    %c0_11 = arith.constant 0 : index
    %c0_12 = arith.constant 0 : index
    %c0_13 = arith.constant 0 : index
    %22 = vector.load %arg3[%c0_11, %c0_12, %c0_13] : memref<1x1x2048xf32, #tpu.memory_space<vmem>>, vector<1x1x2048xf32>
    %23 = vector.shape_cast %22 : vector<1x1x2048xf32> to vector<1x2048xf32>
    %24 = arith.mulf %21, %23 : vector<1x2048xf32>
    %c0_14 = arith.constant 0 : index
    %c0_15 = arith.constant 0 : index
    %c0_16 = arith.constant 0 : index
    %25 = vector.load %arg4[%c0_14, %c0_15, %c0_16] : memref<1x1x2048xf32, #tpu.memory_space<vmem>>, vector<1x1x2048xf32>
    %26 = vector.shape_cast %25 : vector<1x1x2048xf32> to vector<1x2048xf32>
    %27 = arith.mulf %9, %24 : vector<1x2048xf32>
    %28 = arith.subf %26, %27 : vector<1x2048xf32>
    %29 = vector.broadcast %24 : vector<1x2048xf32> to vector<8x2048xf32>
    %30 = arith.mulf %5, %29 : vector<8x2048xf32>
    %31 = vector.broadcast %28 : vector<1x2048xf32> to vector<8x2048xf32>
    %32 = arith.addf %30, %31 : vector<8x2048xf32>
    %cst_17 = arith.constant 0.000000e+00 : f32
    %33 = vector.broadcast %cst_17 : f32 to vector<8x2048xf32>
    %34 = arith.maximumf %32, %33 : vector<8x2048xf32>
    %35 = arith.truncf %34 : vector<8x2048xf32> to vector<8x2048xbf16>
    %c0_18 = arith.constant 0 : index
    %c0_19 = arith.constant 0 : index
    %c0_20 = arith.constant 0 : index
    %36 = vector.load %arg5[%c0_18, %c0_19, %c0_20] : memref<1x2048x512xbf16, #tpu.memory_space<vmem>>, vector<1x2048x512xbf16>
    %37 = vector.shape_cast %36 : vector<1x2048x512xbf16> to vector<2048x512xbf16>
    %cst_21 = arith.constant dense<0.000000e+00> : vector<8x512xf32>
    %38 = tpu.matmul %35, %37, %cst_21 {dimension_numbers = #tpu.dot_dimension_numbers<[1], [0], [0], [1], [0, 0, 1, 1], [], []>} : vector<8x2048xbf16>, vector<2048x512xbf16>, vector<8x512xf32> -> vector<8x512xf32>
    %cst_22 = arith.constant dense<0.000000e+00> : vector<512xf32>
    %39 = vector.multi_reduction <add>, %38, %cst_22 [0] : vector<8x512xf32> to vector<512xf32>
    %40 = vector.shape_cast %39 : vector<512xf32> to vector<1x512xf32>
    %cst_23 = arith.constant 1.250000e-01 : f32
    %41 = vector.broadcast %cst_23 : f32 to vector<1x512xf32>
    %42 = arith.mulf %40, %41 : vector<1x512xf32>
    %43 = arith.mulf %38, %38 : vector<8x512xf32>
    %cst_24 = arith.constant dense<0.000000e+00> : vector<512xf32>
    %44 = vector.multi_reduction <add>, %43, %cst_24 [0] : vector<8x512xf32> to vector<512xf32>
    %45 = vector.shape_cast %44 : vector<512xf32> to vector<1x512xf32>
    %cst_25 = arith.constant 1.250000e-01 : f32
    %46 = vector.broadcast %cst_25 : f32 to vector<1x512xf32>
    %47 = arith.mulf %45, %46 : vector<1x512xf32>
    %48 = arith.mulf %42, %42 : vector<1x512xf32>
    %49 = arith.subf %47, %48 : vector<1x512xf32>
    %cst_26 = arith.constant 0.000000e+00 : f32
    %50 = vector.broadcast %cst_26 : f32 to vector<1x512xf32>
    %51 = arith.maximumf %49, %50 : vector<1x512xf32>
    %cst_27 = arith.constant 9.99999974E-6 : f32
    %52 = vector.broadcast %cst_27 : f32 to vector<1x512xf32>
    %53 = arith.addf %51, %52 : vector<1x512xf32>
    %54 = math.rsqrt %53 : vector<1x512xf32>
    %c0_28 = arith.constant 0 : index
    %c0_29 = arith.constant 0 : index
    %c0_30 = arith.constant 0 : index
    %55 = vector.load %arg6[%c0_28, %c0_29, %c0_30] : memref<1x1x512xf32, #tpu.memory_space<vmem>>, vector<1x1x512xf32>
    %56 = vector.shape_cast %55 : vector<1x1x512xf32> to vector<1x512xf32>
    %57 = arith.mulf %54, %56 : vector<1x512xf32>
    %c0_31 = arith.constant 0 : index
    %c0_32 = arith.constant 0 : index
    %c0_33 = arith.constant 0 : index
    %58 = vector.load %arg7[%c0_31, %c0_32, %c0_33] : memref<1x1x512xf32, #tpu.memory_space<vmem>>, vector<1x1x512xf32>
    %59 = vector.shape_cast %58 : vector<1x1x512xf32> to vector<1x512xf32>
    %60 = arith.mulf %42, %57 : vector<1x512xf32>
    %61 = arith.subf %59, %60 : vector<1x512xf32>
    %62 = vector.broadcast %57 : vector<1x512xf32> to vector<8x512xf32>
    %63 = arith.mulf %38, %62 : vector<8x512xf32>
    %64 = vector.broadcast %61 : vector<1x512xf32> to vector<8x512xf32>
    %65 = arith.addf %63, %64 : vector<8x512xf32>
    %66 = math.tanh %65 : vector<8x512xf32>
    %c0_34 = arith.constant 0 : index
    %c0_35 = arith.constant 0 : index
    %c0_36 = arith.constant 0 : index
    %67 = vector.load %arg8[%c0_34, %c0_35, %c0_36] : memref<1x8x512xf32, #tpu.memory_space<vmem>>, vector<1x8x512xf32>
    %68 = vector.shape_cast %67 : vector<1x8x512xf32> to vector<8x512xf32>
    %69 = vector.shape_cast %66 : vector<8x512xf32> to vector<1x8x512xf32>
    tpu.vector_store %arg8[%c0_34, %c0_35, %c0_36], %69 {strides = array<i32>} : memref<1x8x512xf32, #tpu.memory_space<vmem>>, vector<1x8x512xf32>,
    return
  }
  func.func @transform_0(%arg0: i32) -> (i32, i32, i32) {
    %c0_i32 = arith.constant 0 : i32
    %c0_i32_0 = arith.constant 0 : i32
    %c0_i32_1 = arith.constant 0 : i32
    return %arg0, %c0_i32, %c0_i32_0 : i32, i32, i32
  }
  func.func @transform_1(%arg0: i32) -> (i32, i32, i32) {
    %c0_i32 = arith.constant 0 : i32
    %c0_i32_0 = arith.constant 0 : i32
    %c0_i32_1 = arith.constant 0 : i32
    return %arg0, %c0_i32, %c0_i32_0 : i32, i32, i32
  }
  func.func @transform_2(%arg0: i32) -> (i32, i32, i32) {
    %c0_i32 = arith.constant 0 : i32
    %c0_i32_0 = arith.constant 0 : i32
    %c0_i32_1 = arith.constant 0 : i32
    return %arg0, %c0_i32, %c0_i32_0 : i32, i32, i32
  }
  func.func @transform_3(%arg0: i32) -> (i32, i32, i32) {
    %c0_i32 = arith.constant 0 : i32
    %c0_i32_0 = arith.constant 0 : i32
    %c0_i32_1 = arith.constant 0 : i32
    return %arg0, %c0_i32, %c0_i32_0 : i32, i32, i32
  }
  func.func @transform_4(%arg0: i32) -> (i32, i32, i32) {
    %c0_i32 = arith.constant 0 : i32
    %c0_i32_0 = arith.constant 0 : i32
    %c0_i32_1 = arith.constant 0 : i32
    return %arg0, %c0_i32, %c0_i32_0 : i32, i32, i32
  }
  func.func @transform_5(%arg0: i32) -> (i32, i32, i32) {
    %c0_i32 = arith.constant 0 : i32
    %c0_i32_0 = arith.constant 0 : i32
    %c0_i32_1 = arith.constant 0 : i32
    return %arg0, %c0_i32, %c0_i32_0 : i32, i32, i32
  }
  func.func @transform_6(%arg0: i32) -> (i32, i32, i32) {
    %c0_i32 = arith.constant 0 : i32
    %c0_i32_0 = arith.constant 0 : i32
    %c0_i32_1 = arith.constant 0 : i32
    return %arg0, %c0_i32, %c0_i32_0 : i32, i32, i32
  }
  func.func @transform_7(%arg0: i32) -> (i32, i32, i32) {
    %c0_i32 = arith.constant 0 : i32
    %c0_i32_0 = arith.constant 0 : i32
    %c0_i32_1 = arith.constant 0 : i32
    return %arg0, %c0_i32, %c0_i32_0 : i32, i32, i32
  }
}

</mosaic_0001>

<bundles_post_ra>
// kernel: _fused_forward.1
= control target key start
LH: loop header
LB: loop body
LE: loop exit
PB: predicated region body
PF: predicated region fallthrough
CT: control target
= control target key end

     0   :  { %s11000_s0 = inlined_call_operand.hbm [shape: f32[2,8,256], index: 0, kind: input, shape index: {}]   ;;  %s11001_s1 = inlined_call_operand.hbm [shape: bf16[2,256,2048], index: 1, kind: input, shape index: {}]   ;;  %s11002_s2 = inlined_call_operand.hbm [shape: f32[2,1,2048], index: 2, kind: input, shape index: {}]   ;;  %s11003_s3 = inlined_call_operand.hbm [shape: f32[2,1,2048], index: 3, kind: input, shape index: {}]   ;;  %s11004_s4 = inlined_call_operand.hbm [shape: bf16[2,2048,512], index: 4, kind: input, shape index: {}]   ;;  %s11005_s5 = inlined_call_operand.hbm [shape: f32[2,1,512], index: 5, kind: input, shape index: {}]   ;;  %s11006_s6 = inlined_call_operand.hbm [shape: f32[2,1,512], index: 6, kind: input, shape index: {}]   ;;  %s11007_s7 = inlined_call_operand.hbm [shape: f32[2,8,512], index: 7, kind: output, shape index: {}]  }
   0x1   :  { %11021 = sst [smem:[#allocation25_spill]] %s11001_s1 }
   0x2   :  { %11022 = sst [smem:[#allocation26_spill]] %s11003_s3 }
   0x3   :  { %11023 = sst [smem:[#allocation27_spill]] %s11007_s7 }
   0x4   :  { %12 = vsyncpa [#allocation3], 0 }
   0x5   :  { %14 = vsyncpa [#allocation3 + $0x1], 0 }
   0x6   :  { %15 = vsyncpa [#allocation6], 0 }
   0x7   :  { %17 = vsyncpa [#allocation6 + $0x1], 0 }
   0x8   :  { %18 = vsyncpa [#allocation9], 0 }
   0x9   :  { %20 = vsyncpa [#allocation9 + $0x1], 0 }
   0xa   :  { %21 = vsyncpa [#allocation12], 0 }
   0xb   :  { %23 = vsyncpa [#allocation12 + $0x1], 0 }
   0xc   :  { %24 = vsyncpa [#allocation4], 0 }
   0xd   :  { %26 = vsyncpa [#allocation4 + $0x1], 0  ;;  %s9398_s24 = smov 0   ;;  %s9400_s25 = smov 0  }
   0xe   :  { %s9402_s26 = smov 0   ;;  %s9404_s27 = smov 0  }
   0xf LB: > { %11024 = sst [smem:[#allocation20_spill]] %s9331_s24  ;;  %s9419_s28 = sadd.s32 4294967295, %s9343_s27   ;;  %s9343_s27 = sphi %s9404_s27, %s11055_s27   ;;  %s9339_s26 = sphi %s9402_s26, %s11057_s26   ;;  %s9335_s25 = sphi %s9400_s25, %s11059_s25   ;;  %s9331_s24 = sphi %s9398_s24, %s11058_s24  }
  0x10   : > { %11025 = sst [smem:[#allocation21_spill]] %s9339_s26  ;;  %s7288_s29 = sadd.s32 4294967294, %s9343_s27  }
  0x11   : > { %s9423_s30 = sadd.s32 1, %s9343_s27   ;;  %s39_s8 = sadd.s32 1, %s9339_s26 }
  0x12   : > { %11026 = sst [smem:[#allocation22_spill]] %s9423_s30  ;;  %s36_s9 = ssub.s32 %s9343_s27, %s9423_s30 }
  0x13   : > { %p46_p0 = scmp.ne.s32.totalorder %s9339_s26, %s9335_s25  ;;  %p37_p1 = scmp.eq.s32.totalorder %s36_s9, 0 }
  0x14   : > { %p47_p2 = scmp.eq.s32.totalorder %s9343_s27, 0  ;;  %p52_p3 = scmp.ne.s32.totalorder %s9335_s25, %s9331_s24 }
  0x15   : > { %p53_p4 = scmp.eq.s32.totalorder %s9419_s28, 0  ;;  %p232_p7 = scmp.eq.s32.totalorder %s9419_s28, 1 }
  0x16   : > { %s9435_s10 = scalar_select %p37_p1, %s9339_s26, %s39_s8  }
  0x17   : > { %p48_p5 = por %p47_p2, %p46_p0  ;;  %p9437_p6 = por %p53_p4, %p52_p3 }
  0x18   : > { %11027 = sst [smem:[#allocation23_spill]] %s9435_s10  ;;  %p238_p8 = scmp.eq.s32.totalorder %s7288_s29, 1 }
  0x19   : > { %s11028_s11 = scalar_select %p9437_p6, 1, 0 }
  0x1a   : > { %p8200_p10 = scmp.lt.s32.totalorder %s9343_s27, 2  ;;  %p9444_p11 = por %p232_p7, %p46_p0 }
  0x1b   : > { %p9448_p12 = por %p238_p8, %p52_p3  ;;  %s9453_s14 = sand.u32 1, %s9339_s26  }
  0x1c   : > { %s11029_s12 = scalar_select %p9444_p11, 1, 0 }
  0x1d   : > { %s11030_s13 = scalar_select %p9448_p12, 1, 0 }
  0x1e   : > { %p9455_p13 = pnand %p8200_p10, %p48_p5  ;;  %s9460_s16 = sand.u32 1, %s9343_s27  }
  0x1f   : > { %11031 = sst [smem:[#allocation24_spill]] %s11030_s13  ;;  %s7294_s17 = sshll.u32 %s9453_s14, 11 }
  0x20   : > { %s11032_s15 = scalar_select %p9455_p13, 1, 0 }
  0x21   : > { %s8095_s18 = sshll.u32 %s9343_s27, 15  ;;  %s11033_s1 = sld [smem:[#allocation25_spill]] }
  0x22   : > { %s281_s22 = scalar_lea.vmem [#allocation5], %s7294_s17  ;;  %p9477_p2 = pneg %p9455_p13 }
  0x23   : > { %s288_s23 = sshll.u32 %s281_s22, 4  ;;  %s9469_s23 = int_to_ptr.vmem [resolvable:$true] %s288_s23 }
  0x27   : > { %s9467_s21 = scalar_lea.hbm %s11033_s1, %s8095_s18  ;;  %s9060_s17 = scalar_lea.hbm %s11033_s1, 65536 }
  0x28   : > { %s9055_s8 = scalar_lea.hbm %s9467_s21, 32768  ;;  %p9061_p5 = scmp.lt.u32.totalorder %s9467_s21, %s11033_s1 }
  0x29   : > { %p9056_p1 = scmp.ne.s32.totalorder %s9467_s21, %s9055_s8  ;;  %p9062_p7 = scmp.lt.u32.totalorder %s9060_s17, %s9055_s8 }
  0x2a   : > { %p9064_p10 = scmp.lt.u32.totalorder %s9055_s8, %s9467_s21 }
  0x2b   : > { %p9058_p3 = pnand %p9477_p2, %p9056_p1  ;;  %p9063_p8 = por %p9062_p7, %p9061_p5 }
  0x2d   : > { %p9059_p4 = pneg %p9058_p3  ;;  %p9065_p9 = por %p9064_p10, %p9063_p8 }
  0x2f   : > { %p9066_p0 = pnand %p9065_p9, %p9059_p4 }
  0x31   : > { %9069 = shalt.err (!%p9066_p0)
}
  0x32   : > { %s9070_s29 = scalar_lea.vmem %s9469_s23, 32768  ;;  %s9345_s18 = smov [#allocation5]  }
  0x33   : > { %p9071_p1 = scmp.ne.s32.totalorder %s9469_s23, %s9070_s29  ;;  %s9075_s19 = sshll.u32 %s9345_s18, 4  ;;  %s9076_s19 = int_to_ptr.vmem [resolvable:$false] %s9075_s19 }
  0x34   : > { %s9077_s20 = scalar_lea.vmem %s9076_s19, 65536  ;;  %p9078_p11 = scmp.lt.s32.totalorder %s9469_s23, %s9076_s19 }
  0x35   : > { %p9073_p3 = pnand %p9071_p1, %p9477_p2  ;;  %p9079_p6 = scmp.lt.s32.totalorder %s9077_s20, %s9070_s29 }
  0x37   : > { %p9074_p12 = pneg %p9073_p3  ;;  %p9080_p5 = por %p9079_p6, %p9078_p11 }
  0x39   : > { %p9081_p7 = pnand %p9080_p5, %p9074_p12 }
  0x3b   : > { %9084 = shalt.err (!%p9081_p7)
}
  0x3c   : > { %s9346_s8 = smov 1024   ;;  %s9347_s17 = smov 64  }
  0x3d   : > { %s11035_s22 = scalar_lea.sflag [#allocation6], %s9460_s16  ;;  %p393_p9 = scmp.lt.s32.totalorder %s9343_s27, 3 }
  0x3e   : > { %8180 = dma.hbm_to_vmem [thread:$0]  (!%p9455_p13), %s9467_s21, 32768, %s9469_s23, %s11035_s22, %s9346_s8, %s9346_s8, %s9347_s17  }
  0x3f   : > { %s9504_s29 = sshll.u32 %s9453_s14, 4  ;;  %s9507_s18 = sshll.u32 %s9343_s27, 8 }
  0x40   : > { %p11036_p6 = scmp.ge.s32.totalorder %s9343_s27, 1  ;;  %s11038_s3 = sld [smem:[#allocation26_spill]] }
  0x41   : > { %s321_s21 = scalar_lea.vmem [#allocation8], %s9504_s29 }
  0x42   : > { %p9511_p11 = pnand %p11036_p6, %p393_p9  ;;  %s329_s23 = sshll.u32 %s321_s21, 4  ;;  %s330_s23 = int_to_ptr.vmem [resolvable:$true] %s329_s23 }
  0x44   : > { %s11037_s19 = scalar_select %p9511_p11, 1, 0 }
  0x46   : > { %s9519_s10 = scalar_lea.hbm %s11038_s3, %s9507_s18  ;;  %s9090_s30 = scalar_lea.hbm %s11038_s3, 512 }
  0x47   : > { %s9085_s17 = scalar_lea.hbm %s9519_s10, 256  ;;  %p9091_p8 = scmp.lt.u32.totalorder %s9519_s10, %s11038_s3 }
  0x48   : > { %p9086_p12 = scmp.ne.s32.totalorder %s9519_s10, %s9085_s17  ;;  %p9092_p10 = scmp.lt.u32.totalorder %s9090_s30, %s9085_s17 }
  0x49   : > { %p9094_p3 = scmp.lt.u32.totalorder %s9085_s17, %s9519_s10 }
  0x4a   : > { %p9088_p0 = pnand %p9086_p12, %p9477_p2  ;;  %p9093_p1 = por %p9092_p10, %p9091_p8 }
  0x4c   : > { %p9089_p4 = pneg %p9088_p0  ;;  %p9095_p5 = por %p9094_p3, %p9093_p1 }
  0x4e   : > { %p9096_p7 = pnand %p9095_p5, %p9089_p4 }
  0x50   : > { %9099 = shalt.err (!%p9096_p7)
}
  0x51   : > { %s9100_s21 = scalar_lea.vmem %s330_s23, 256  ;;  %s9348_s8 = smov [#allocation8]  }
  0x52   : > { %p9101_p9 = scmp.ne.s32.totalorder %s330_s23, %s9100_s21  ;;  %s9105_s13 = sshll.u32 %s9348_s8, 4  ;;  %s9106_s13 = int_to_ptr.vmem [resolvable:$false] %s9105_s13 }
  0x53   : > { %s9107_s26 = scalar_lea.vmem %s9106_s13, 512  ;;  %p9108_p0 = scmp.lt.s32.totalorder %s330_s23, %s9106_s13 }
  0x54   : > { %p9103_p6 = pnand %p9101_p9, %p9477_p2  ;;  %p9109_p11 = scmp.lt.s32.totalorder %s9107_s26, %s9100_s21 }
  0x56   : > { %p9104_p12 = pneg %p9103_p6  ;;  %p9110_p13 = por %p9109_p11, %p9108_p0 }
  0x58   : > { %p9111_p8 = pnand %p9110_p13, %p9104_p12 }
  0x5a   : > { %9114 = shalt.err (!%p9111_p8)
}
  0x5b   : > { %p11039_p10 = scmp.ne.s32.totalorder %s11032_s15, 0  ;;  %s11040_s30 = scalar_lea.sflag [#allocation9], %s9460_s16 }
  0x5c   : > { %s11018_s17 = sshll.u32 %s9453_s14, 2  ;;  %s8099_s8 = sshll.u32 %s9343_s27, 6 }
  0x5d   : > { %8186 = dma.hbm_to_vmem [thread:$0]  (!%p11039_p10), %s9519_s10, 256, %s330_s23, %s11040_s30  }
  0x5e   : > { %s9547_s13 = scalar_lea.hbm %s11005_s5, %s8099_s8  ;;  %s361_s20 = scalar_lea.vmem [#allocation11], %s11018_s17 }
  0x5f   : > { %s369_s21 = sshll.u32 %s361_s20, 4  ;;  %s9556_s10 = scalar_lea.hbm %s11006_s6, %s8099_s8  ;;  %s9551_s21 = int_to_ptr.vmem [resolvable:$true] %s369_s21 }
  0x60   : > { %s358_s23 = scalar_lea.sflag [#allocation12], %s9460_s16  ;;  %s9115_s30 = scalar_lea.hbm %s9547_s13, 64 }
  0x61   : > { %p9116_p13 = scmp.ne.s32.totalorder %s9547_s13, %s9115_s30  ;;  %s9120_s24 = scalar_lea.hbm %s11005_s5, 128 }
  0x62   : > { %p9121_p1 = scmp.lt.u32.totalorder %s9547_s13, %s11005_s5  ;;  %p9122_p3 = scmp.lt.u32.totalorder %s9120_s24, %s9115_s30 }
  0x63   : > { %p9118_p11 = pnand %p9116_p13, %p9477_p2  ;;  %p9124_p7 = scmp.lt.u32.totalorder %s9115_s30, %s9547_s13 }
  0x64   : > { %p9123_p5 = por %p9122_p3, %p9121_p1 }
  0x65   : > { %p9119_p4 = pneg %p9118_p11 }
  0x66   : > { %p9125_p9 = por %p9124_p7, %p9123_p5 }
  0x68   : > { %p9126_p6 = pnand %p9125_p9, %p9119_p4 }
  0x6a   : > { %9129 = shalt.err (!%p9126_p6)
}
  0x6b   : > { %s9130_s3 = scalar_lea.vmem %s9551_s21, 64  ;;  %s9349_s8 = smov [#allocation11]  }
  0x6c   : > { %p9131_p12 = scmp.ne.s32.totalorder %s9551_s21, %s9130_s3  ;;  %s9135_s20 = sshll.u32 %s9349_s8, 4  ;;  %s9136_s20 = int_to_ptr.vmem [resolvable:$false] %s9135_s20 }
  0x6d   : > { %s9137_s7 = scalar_lea.vmem %s9136_s20, 128  ;;  %p9138_p13 = scmp.lt.s32.totalorder %s9551_s21, %s9136_s20 }
  0x6e   : > { %p9133_p0 = pnand %p9131_p12, %p9477_p2  ;;  %p9139_p11 = scmp.lt.s32.totalorder %s9137_s7, %s9130_s3 }
  0x70   : > { %p9134_p8 = pneg %p9133_p0  ;;  %p9140_p1 = por %p9139_p11, %p9138_p13 }
  0x72   : > { %p9141_p3 = pnand %p9140_p1, %p9134_p8 }
  0x74   : > { %9144 = shalt.err (!%p9141_p3)
}
  0x75   : > { %8192 = dma.hbm_to_vmem [thread:$0]  (!%p11039_p10), %s9547_s13, 64, %s9551_s21, %s358_s23  }
  0x76   : > { %s9586_s26 = scalar_lea.hbm %s11000_s0, %s9507_s18  ;;  %s262_s30 = scalar_lea.vmem [#allocation2], %s9504_s29 }
  0x77   : > { %s270_s22 = sshll.u32 %s262_s30, 4  ;;  %s259_s1 = scalar_lea.sflag [#allocation3], %s9453_s14  ;;  %s271_s22 = int_to_ptr.vmem [resolvable:$true] %s270_s22 }
  0x78   : > { %s9145_s3 = scalar_lea.hbm %s9586_s26, 256  ;;  %s9150_s21 = scalar_lea.hbm %s11000_s0, 512 }
  0x79   : > { %p9146_p4 = scmp.ne.s32.totalorder %s9586_s26, %s9145_s3  ;;  %p9151_p9 = scmp.lt.u32.totalorder %s9586_s26, %s11000_s0 }
  0x7a   : > { %p9152_p6 = scmp.lt.u32.totalorder %s9150_s21, %s9145_s3  ;;  %p9154_p0 = scmp.lt.u32.totalorder %s9145_s3, %s9586_s26 }
  0x7b   : > { %p9148_p5 = pnand %p9146_p4, %p9477_p2 }
  0x7c   : > { %p9153_p12 = por %p9152_p6, %p9151_p9 }
  0x7d   : > { %p9149_p7 = pneg %p9148_p5 }
  0x7e   : > { %p9155_p8 = por %p9154_p0, %p9153_p12 }
  0x80   : > { %p9156_p13 = pnand %p9155_p8, %p9149_p7 }
  0x82   : > { %9159 = shalt.err (!%p9156_p13)
}
  0x83   : > { %s9160_s24 = scalar_lea.vmem %s271_s22, 256  ;;  %s9350_s17 = smov [#allocation2]  }
  0x84   : > { %p9161_p11 = scmp.ne.s32.totalorder %s271_s22, %s9160_s24  ;;  %s9165_s30 = sshll.u32 %s9350_s17, 4  ;;  %s9166_s30 = int_to_ptr.vmem [resolvable:$false] %s9165_s30 }
  0x85   : > { %s9167_s8 = scalar_lea.vmem %s9166_s30, 512  ;;  %p9168_p4 = scmp.lt.s32.totalorder %s271_s22, %s9166_s30 }
  0x86   : > { %p9163_p1 = pnand %p9161_p11, %p9477_p2  ;;  %p9169_p5 = scmp.lt.s32.totalorder %s9167_s8, %s9160_s24 }
  0x88   : > { %p9164_p3 = pneg %p9163_p1  ;;  %p9170_p10 = por %p9169_p5, %p9168_p4 }
  0x8a   : > { %p9171_p6 = pnand %p9170_p10, %p9164_p3 }
  0x8c   : > { %9174 = shalt.err (!%p9171_p6)
}
  0x8d   : > { %p11041_p9 = scmp.ne.s32.totalorder %s11032_s15, 0  ;;  %s9611_s21 = scalar_lea.hbm %s11002_s2, %s9507_s18 }
  0x8e   : > { %s302_s20 = scalar_lea.vmem [#allocation7], %s9504_s29  ;;  %s7303_s24 = sshll.u32 %s9453_s14, 12 }
  0x8f   : > { %8177 = dma.hbm_to_vmem [thread:$0]  (!%p11041_p9), %s9586_s26, 256, %s271_s22, %s259_s1  }
  0x90   : > { %s310_s7 = sshll.u32 %s302_s20, 4  ;;  %s9175_s17 = scalar_lea.hbm %s9611_s21, 256  ;;  %s311_s7 = int_to_ptr.vmem [resolvable:$true] %s310_s7 }
  0x91   : > { %p9176_p10 = scmp.ne.s32.totalorder %s9611_s21, %s9175_s17  ;;  %s9180_s22 = scalar_lea.hbm %s11002_s2, 512 }
  0x92   : > { %p9181_p0 = scmp.lt.u32.totalorder %s9611_s21, %s11002_s2  ;;  %p9182_p8 = scmp.lt.u32.totalorder %s9180_s22, %s9175_s17 }
  0x93   : > { %p9178_p7 = pnand %p9176_p10, %p9477_p2  ;;  %p9184_p11 = scmp.lt.u32.totalorder %s9175_s17, %s9611_s21 }
  0x94   : > { %p9183_p13 = por %p9182_p8, %p9181_p0 }
  0x95   : > { %p9179_p12 = pneg %p9178_p7 }
  0x96   : > { %p9185_p1 = por %p9184_p11, %p9183_p13 }
  0x98   : > { %p9186_p3 = pnand %p9185_p1, %p9179_p12 }
  0x9a   : > { %9189 = shalt.err (!%p9186_p3)
}
  0x9b   : > { %s9190_s29 = scalar_lea.vmem %s311_s7, 256  ;;  %s9351_s8 = smov [#allocation7]  }
  0x9c   : > { %p9191_p4 = scmp.ne.s32.totalorder %s311_s7, %s9190_s29  ;;  %s9195_s3 = sshll.u32 %s9351_s8, 4  ;;  %s9196_s3 = int_to_ptr.vmem [resolvable:$false] %s9195_s3 }
  0x9d   : > { %s9197_s13 = scalar_lea.vmem %s9196_s3, 512  ;;  %p9198_p10 = scmp.lt.s32.totalorder %s311_s7, %s9196_s3 }
  0x9e   : > { %p9193_p5 = pnand %p9191_p4, %p9477_p2  ;;  %p9199_p7 = scmp.lt.s32.totalorder %s9197_s13, %s9190_s29 }
  0xa0   : > { %p9194_p6 = pneg %p9193_p5  ;;  %p9200_p9 = por %p9199_p7, %p9198_p10 }
  0xa2   : > { %p9201_p0 = pnand %p9200_p9, %p9194_p6 }
  0xa4   : > { %9204 = shalt.err (!%p9201_p0)
}
  0xa5   : > { %p11042_p8 = scmp.ne.s32.totalorder %s11032_s15, 0  ;;  %s11043_s20 = scalar_lea.sflag [#allocation6], %s9460_s16 }
  0xa6   : > { %s8098_s17 = sshll.u32 %s9343_s27, 16  ;;  %s340_s1 = scalar_lea.vmem [#allocation10], %s7303_s24 }
  0xa7   : > { %8183 = dma.hbm_to_vmem [thread:$0]  (!%p11042_p8), %s9611_s21, 256, %s311_s7, %s11043_s20  }
  0xa8   : > { %s9638_s22 = scalar_lea.hbm %s11004_s4, %s8098_s17  ;;  %s347_s18 = sshll.u32 %s340_s1, 4  ;;  %s9642_s18 = int_to_ptr.vmem [resolvable:$true] %s347_s18 }
  0xa9   : > { %s11044_s29 = sshll.u32 %s9453_s14, 2  ;;  %s9205_s7 = scalar_lea.hbm %s9638_s22, 65536 }
  0xaa   : > { %s9646_s8 = scalar_lea.vmem [#allocation13], %s11044_s29  ;;  %p9206_p9 = scmp.ne.s32.totalorder %s9638_s22, %s9205_s7 }
  0xab   : > { %s388_s21 = sshll.u32 %s9646_s8, 4  ;;  %s9210_s20 = scalar_lea.hbm %s11004_s4, 131072  ;;  %s389_s21 = int_to_ptr.vmem [resolvable:$true] %s388_s21 }
  0xac   : > { %p9208_p12 = pnand %p9206_p9, %p9477_p2  ;;  %p9211_p11 = scmp.lt.u32.totalorder %s9638_s22, %s11004_s4 }
  0xad   : > { %p9212_p1 = scmp.lt.u32.totalorder %s9210_s20, %s9205_s7  ;;  %p9214_p4 = scmp.lt.u32.totalorder %s9205_s7, %s9638_s22 }
  0xae   : > { %p9209_p13 = pneg %p9208_p12 }
  0xaf   : > { %p9213_p3 = por %p9212_p1, %p9211_p11 }
  0xb1   : > { %p9215_p5 = por %p9214_p4, %p9213_p3 }
  0xb3   : > { %p9216_p6 = pnand %p9215_p5, %p9209_p13 }
  0xb5   : > { %9219 = shalt.err (!%p9216_p6)
}
  0xb6   : > { %s9220_s14 = scalar_lea.vmem %s9642_s18, 65536  ;;  %s9352_s24 = smov [#allocation10]  }
  0xb7   : > { %p9221_p10 = scmp.ne.s32.totalorder %s9642_s18, %s9220_s14  ;;  %s9225_s26 = sshll.u32 %s9352_s24, 4  ;;  %s9226_s26 = int_to_ptr.vmem [resolvable:$false] %s9225_s26 }
  0xb8   : > { %s9227_s1 = scalar_lea.vmem %s9226_s26, 131072  ;;  %p9228_p9 = scmp.lt.s32.totalorder %s9642_s18, %s9226_s26 }
  0xb9   : > { %p9223_p7 = pnand %p9221_p10, %p9477_p2  ;;  %p9229_p12 = scmp.lt.s32.totalorder %s9227_s1, %s9220_s14 }
  0xbb   : > { %p9224_p0 = pneg %p9223_p7  ;;  %p9230_p11 = por %p9229_p12, %p9228_p9 }
  0xbd   : > { %p9231_p1 = pnand %p9230_p11, %p9224_p0 }
  0xbf   : > { %9234 = shalt.err (!%p9231_p1)
}
  0xc0   : > { %s9353_s29 = smov 256   ;;  %s9354_s7 = smov 16  }
  0xc1   : > { %s11045_s3 = scalar_lea.sflag [#allocation9], %s9460_s16  ;;  %s9235_s13 = scalar_lea.hbm %s9556_s10, 64 }
  0xc2   : > { %8189 = dma.hbm_to_vmem [thread:$0]  (!%p11042_p8), %s9638_s22, 65536, %s9642_s18, %s11045_s3, %s9353_s29, %s9353_s29, %s9354_s7  }
  0xc3   : > { %p9236_p13 = scmp.ne.s32.totalorder %s9556_s10, %s9235_s13  ;;  %s9240_s30 = scalar_lea.hbm %s11006_s6, 128 }
  0xc4   : > { %p9241_p5 = scmp.lt.u32.totalorder %s9556_s10, %s11006_s6  ;;  %p9242_p6 = scmp.lt.u32.totalorder %s9240_s30, %s9235_s13 }
  0xc5   : > { %p9238_p3 = pnand %p9236_p13, %p9477_p2  ;;  %p9244_p7 = scmp.lt.u32.totalorder %s9235_s13, %s9556_s10 }
  0xc6   : > { %p9243_p10 = por %p9242_p6, %p9241_p5 }
  0xc7   : > { %p9239_p4 = pneg %p9238_p3 }
  0xc8   : > { %p9245_p0 = por %p9244_p7, %p9243_p10 }
  0xca   : > { %p9246_p9 = pnand %p9245_p0, %p9239_p4 }
  0xcc   : > { %9249 = shalt.err (!%p9246_p9)
}
  0xcd   : > { %s9250_s22 = scalar_lea.vmem %s389_s21, 64  ;;  %s9355_s18 = smov [#allocation13]  }
  0xce   : > { %p9251_p12 = scmp.ne.s32.totalorder %s389_s21, %s9250_s22  ;;  %s9255_s8 = sshll.u32 %s9355_s18, 4  ;;  %s9256_s8 = int_to_ptr.vmem [resolvable:$false] %s9255_s8 }
  0xcf   : > { %s9257_s26 = scalar_lea.vmem %s9256_s8, 128  ;;  %p9258_p13 = scmp.lt.s32.totalorder %s389_s21, %s9256_s8 }
  0xd0   : > { %p9253_p11 = pnand %p9251_p12, %p9477_p2  ;;  %p9259_p3 = scmp.lt.s32.totalorder %s9257_s26, %s9250_s22 }
  0xd2   : > { %p9254_p1 = pneg %p9253_p11  ;;  %p9260_p8 = por %p9259_p3, %p9258_p13 }
  0xd4   : > { %p9261_p5 = pnand %p9260_p8, %p9254_p1 }
  0xd6   : > { %9264 = shalt.err (!%p9261_p5)
}
  0xd7   : > { %p11046_p6 = scmp.ne.s32.totalorder %s11032_s15, 0  ;;  %p11047_p4 = scmp.ne.s32.totalorder %s11037_s19, 0 }
  0xd8   : > { %s9696_s9 = sand.u32 (!%p11047_p4), 1, %s9335_s25   ;;  %p11048_p2 = scmp.ne.s32.totalorder (!%p11047_p4), %s11028_s11, 0 }
  0xd9   : > { %8195 = dma.hbm_to_vmem [thread:$0]  (!%p11046_p6), %s9556_s10, 64, %s389_s21, %s358_s23  }
  0xda   : > { %397 = sbr.rel (%p11047_p4) target bundleno = 1383 (0x567), region = 48  ;;  %s9699_s1 = sshll.u32 (!%p11047_p4), %s9696_s9, 4 }
  0xdb   : > { %s400_s29 = scalar_lea.sflag (!%p11047_p4), [#allocation3], %s9696_s9  ;;  %s403_s7 = scalar_lea.vmem (!%p11047_p4), [#allocation2], %s9699_s1 }
  0xe1   : > { %9310 = dma.done.wait (%p11048_p2), %s400_s29, 256  }
  0xe2   : > { %9312 = vsyncadd (%p11048_p2), %s400_s29, 4294967040  ;;  %s408_s15 = sand.u32 1, %s9419_s28   ;;  %s7314_s16 = sshll.u32 %s9696_s9, 11 }
  0xe3   : > { %s409_s19 = scalar_lea.sflag [#allocation6], %s408_s15  ;;  %s9709_s10 = scalar_lea.vmem [#allocation5], %s7314_s16 }
  0xe4   : > { %9314 = dma.done.wait (%p11048_p2), %s409_s19, 33024  }
  0xe5   : > { %9316 = vsyncadd (%p11048_p2), %s409_s19, 4294934272  ;;  %s421_s23 = scalar_lea.vmem [#allocation7], %s9699_s1  ;;  %s427_s21 = scalar_lea.sflag [#allocation9], %s408_s15 }
  0xe6   : > { %s430_s3 = scalar_lea.vmem [#allocation8], %s9699_s1 }
  0xe7   : > { %9318 = dma.done.wait (%p11048_p2), %s427_s21, 65792  }
  0xe8   : > { %9320 = vsyncadd (%p11048_p2), %s427_s21, 4294901504  ;;  %s7317_s13 = sshll.u32 %s9696_s9, 12  ;;  %s7318_s20 = sshll.u32 %s9696_s9, 2 }
  0xe9   : > { %s9723_s17 = scalar_lea.vmem [#allocation10], %s7317_s13  ;;  %s445_s30 = scalar_lea.sflag [#allocation12], %s408_s15 }
  0xea   : > { %s9727_s14 = scalar_lea.vmem [#allocation11], %s7318_s20 }
  0xeb   : > { %9322 = dma.done.wait (%p11048_p2), %s445_s30, 128  }
  0xec   : > { %9324 = vsyncadd (%p11048_p2), %s445_s30, 4294967168  ;;  %v522_v0 = vld [vmem:[%s9709_s10] sm:$0xff]  ;;  %v523_v2 = vld [vmem:[%s9709_s10 + $0x8] sm:$0xff]  ;;  %s457_s11 = scalar_lea.vmem [#allocation13], %s7318_s20  ;;  %s7320_s24 = sshll.u32 %s9696_s9, 5 }
  0xed   : > { %v530_v1 = vld [vmem:[%s9709_s10 + $0x40] sm:$0xff]  ;;  %v531_v4 = vld [vmem:[%s9709_s10 + $0x48] sm:$0xff]  ;;  %s8101_s22 = sshll.u32 %s9419_s28, 9  ;;  %s517_s18 = scalar_lea.vmem [#allocation14], %s7320_s24 }
  0xee   : > { %v7322_v3 = vcombine.high %v522_v0, %v530_v1  ;;  %v7321_v5 = vcombine.low %v522_v0, %v530_v1  ;;  %v538_v6 = vld [vmem:[%s9709_s10 + $0x80] sm:$0xff]  ;;  %v7324_v8 = vcombine.high %v523_v2, %v531_v4  ;;  %v7323_v9 = vcombine.low %v523_v2, %v531_v4  ;;  %v539_v11 = vld [vmem:[%s9709_s10 + $0x88] sm:$0xff]  ;;  %s7089_s8 = sshll.u32 %s517_s18, 4  ;;  %s11049_s29 = sld [smem:[#allocation27_spill]]  ;;  %s10958_s8 = int_to_ptr.vmem [resolvable:$true] %s7089_s8 }
  0xef   : > { %v546_v7 = vld [vmem:[%s9709_s10 + $0xc0] sm:$0xff]  ;;  %v547_v12 = vld [vmem:[%s9709_s10 + $0xc8] sm:$0xff]  ;;  %s7075_s28 = scalar_lea.sflag [#allocation4], %s9696_s9  ;;  %s9265_s15 = scalar_lea.vmem %s10958_s8, 512 }
  0xf0   : > { %v7338_v10 = vcombine.high %v538_v6, %v546_v7  ;;  %v554_v13 = vld [vmem:[%s9709_s10 + $0x100] sm:$0xff]  ;;  %2058 = vmatprep.subr.bf16.mxu0 %v7322_v3  ;;  %v7340_v14 = vcombine.high %v539_v11, %v547_v12  ;;  %v555_v16 = vld [vmem:[%s9709_s10 + $0x108] sm:$0xff]  ;;  %2099 = vmatprep.subr.bf16.mxu1 %v7324_v8  ;;  %v7337_v18 = vcombine.low %v538_v6, %v546_v7  ;;  %p9266_p8 = scmp.ne.s32.totalorder %s10958_s8, %s9265_s15  ;;  %p11050_p10 = scmp.ne.s32.totalorder %s11029_s12, 0 }
  0xf1   : > { %v562_v15 = vld [vmem:[%s9709_s10 + $0x140] sm:$0xff]  ;;  %v563_v17 = vld [vmem:[%s9709_s10 + $0x148] sm:$0xff]  ;;  %2059 = vmatpush1.bf16.msra.mxu0 %v7321_v5  ;;  %2100 = vmatpush1.bf16.msra.mxu1 %v7323_v9  ;;  %v7339_v19 = vcombine.low %v539_v11, %v547_v12  ;;  %s9357_s16 = smov [#allocation14]  }
  0xf2   : > { %2060 = vmatprep.subr.bf16.mxu0 %v7338_v10  ;;  %v7354_v20 = vcombine.high %v554_v13, %v562_v15  ;;  %2101 = vmatprep.subr.bf16.mxu1 %v7340_v14  ;;  %v7356_v21 = vcombine.high %v555_v16, %v563_v17  ;;  %v570_v22 = vld [vmem:[%s9709_s10 + $0x180] sm:$0xff]  ;;  %v571_v24 = vld [vmem:[%s9709_s10 + $0x188] sm:$0xff]  ;;  %v7353_v26 = vcombine.low %v554_v13, %v562_v15  ;;  %p9267_p7 = pnand %p9266_p8, %p11050_p10  ;;  %s9269_s19 = sshll.u32 %s9357_s16, 4  ;;  %s9270_s19 = int_to_ptr.vmem [resolvable:$false] %s9269_s19 }
  0xf3   : > { %v578_v23 = vld [vmem:[%s9709_s10 + $0x1c0] sm:$0xff]  ;;  %v579_v25 = vld [vmem:[%s9709_s10 + $0x1c8] sm:$0xff]  ;;  %v7355_v27 = vcombine.low %v555_v16, %v563_v17  ;;  %p9272_p9 = scmp.lt.s32.totalorder %s10958_s8, %s9270_s19 }
  0xf4   : > { %v7370_v28 = vcombine.high %v570_v22, %v578_v23  ;;  %v7372_v29 = vcombine.high %v571_v24, %v579_v25  ;;  %v586_v30 = vld [vmem:[%s9709_s10 + $0x200] sm:$0xff]  ;;  %v587_v32 = vld [vmem:[%s9709_s10 + $0x208] sm:$0xff]  ;;  %v7369_v34 = vcombine.low %v570_v22, %v578_v23  ;;  %v7371_v35 = vcombine.low %v571_v24, %v579_v25  ;;  %p9268_p0 = pneg %p9267_p7 }
  0xf5   : > { %2061 = vmatpush1.bf16.msra.mxu0 %v7337_v18  ;;  %2102 = vmatpush1.bf16.msra.mxu1 %v7339_v19  ;;  %v594_v31 = vld [vmem:[%s9709_s10 + $0x240] sm:$0xff]  ;;  %v595_v33 = vld [vmem:[%s9709_s10 + $0x248] sm:$0xff] }
  0xf6   : > { %2062 = vmatprep.subr.bf16.mxu0 %v7354_v20  ;;  %2103 = vmatprep.subr.bf16.mxu1 %v7356_v21  ;;  %v7386_v36 = vcombine.high %v586_v30, %v594_v31  ;;  %v7388_v37 = vcombine.high %v587_v32, %v595_v33  ;;  %v602_v38 = vld [vmem:[%s9709_s10 + $0x280] sm:$0xff]  ;;  %v603_v40 = vld [vmem:[%s9709_s10 + $0x288] sm:$0xff]  ;;  %v7385_v42 = vcombine.low %v586_v30, %v594_v31 }
  0xf7   : > { %v610_v39 = vld [vmem:[%s9709_s10 + $0x2c0] sm:$0xff]  ;;  %v611_v41 = vld [vmem:[%s9709_s10 + $0x2c8] sm:$0xff]  ;;  %v7387_v43 = vcombine.low %v587_v32, %v595_v33 }
  0xf8   : > { %v7402_v44 = vcombine.high %v602_v38, %v610_v39  ;;  %v7404_v45 = vcombine.high %v603_v40, %v611_v41  ;;  %v618_v46 = vld [vmem:[%s9709_s10 + $0x300] sm:$0xff]  ;;  %v619_v48 = vld [vmem:[%s9709_s10 + $0x308] sm:$0xff]  ;;  %v7401_v50 = vcombine.low %v602_v38, %v610_v39  ;;  %v7403_v51 = vcombine.low %v603_v40, %v611_v41 }
  0xf9   : > { %2063 = vmatpush1.bf16.msra.mxu0 %v7353_v26  ;;  %2104 = vmatpush1.bf16.msra.mxu1 %v7355_v27  ;;  %v626_v47 = vld [vmem:[%s9709_s10 + $0x340] sm:$0xff]  ;;  %v627_v49 = vld [vmem:[%s9709_s10 + $0x348] sm:$0xff] }
  0xfa   : > { %2064 = vmatprep.subr.bf16.mxu0 %v7370_v28  ;;  %2105 = vmatprep.subr.bf16.mxu1 %v7372_v29  ;;  %v7418_v52 = vcombine.high %v618_v46, %v626_v47  ;;  %v519_v53 = vld [vmem:[%s403_s7 + $0x8] sm:$0xff]  ;;  %v7420_v54 = vcombine.high %v619_v48, %v627_v49  ;;  %v634_v55 = vld [vmem:[%s9709_s10 + $0x380] sm:$0xff]  ;;  %v7417_v60 = vcombine.low %v618_v46, %v626_v47 }
  0xfb   : > { %v642_v56 = vld [vmem:[%s9709_s10 + $0x3c0] sm:$0xff]  ;;  %v9765_v57 = vpack.c.bf16 %v519_v53, %v519_v53  ;;  %v635_v58 = vld [vmem:[%s9709_s10 + $0x388] sm:$0xff]  ;;  %v7419_v61 = vcombine.low %v619_v48, %v627_v49 }
  0xfc   : > { %v643_v59 = vld [vmem:[%s9709_s10 + $0x3c8] sm:$0xff]  ;;  %v7434_v62 = vcombine.high %v634_v55, %v642_v56  ;;  %v650_v0 = vld [vmem:[%s9709_s10 + $0x400] sm:$0xff]  ;;  %v7433_v4 = vcombine.low %v634_v55, %v642_v56 }
  0xfd   : > { %2065 = vmatpush1.bf16.msra.mxu0 %v7369_v34  ;;  %2106 = vmatpush1.bf16.msra.mxu1 %v7371_v35  ;;  %v7436_v63 = vcombine.high %v635_v58, %v643_v59  ;;  %v658_v1 = vld [vmem:[%s9709_s10 + $0x440] sm:$0xff]  ;;  %v651_v2 = vld [vmem:[%s9709_s10 + $0x408] sm:$0xff]  ;;  %v7435_v5 = vcombine.low %v635_v58, %v643_v59 }
  0xfe   : > { %2066 = vmatprep.subr.bf16.mxu0 %v7386_v36  ;;  %2107 = vmatprep.subr.bf16.mxu1 %v7388_v37  ;;  %v659_v3 = vld [vmem:[%s9709_s10 + $0x448] sm:$0xff]  ;;  %v7450_v6 = vcombine.high %v650_v0, %v658_v1  ;;  %v666_v8 = vld [vmem:[%s9709_s10 + $0x480] sm:$0xff]  ;;  %v7449_v12 = vcombine.low %v650_v0, %v658_v1  ;;  %v524_v1 = vld [vmem:[%s9709_s10 + $0x10] sm:$0xff] }
  0xff   : > { %2090 = vmatprep.mubr.bf16.mxu0 %v9765_v57  ;;  %2131 = vmatprep.mubr.bf16.mxu1 %v9765_v57  ;;  %v7452_v7 = vcombine.high %v651_v2, %v659_v3  ;;  %v674_v9 = vld [vmem:[%s9709_s10 + $0x4c0] sm:$0xff]  ;;  %v667_v10 = vld [vmem:[%s9709_s10 + $0x488] sm:$0xff]  ;;  %v7451_v13 = vcombine.low %v651_v2, %v659_v3  ;;  %v532_v2 = vld [vmem:[%s9709_s10 + $0x50] sm:$0xff] }
 0x100   : > { %v675_v11 = vld [vmem:[%s9709_s10 + $0x4c8] sm:$0xff]  ;;  %v7466_v14 = vcombine.high %v666_v8, %v674_v9  ;;  %v682_v16 = vld [vmem:[%s9709_s10 + $0x500] sm:$0xff]  ;;  %v7465_v20 = vcombine.low %v666_v8, %v674_v9  ;;  %v525_v3 = vld [vmem:[%s9709_s10 + $0x18] sm:$0xff]  ;;  %v7326_v8 = vcombine.high %v524_v1, %v532_v2 }
 0x101   : > { %2067 = vmatpush1.bf16.msra.mxu0 %v7385_v42  ;;  %2108 = vmatpush1.bf16.msra.mxu1 %v7387_v43  ;;  %v7468_v15 = vcombine.high %v667_v10, %v675_v11  ;;  %v690_v17 = vld [vmem:[%s9709_s10 + $0x540] sm:$0xff]  ;;  %v683_v18 = vld [vmem:[%s9709_s10 + $0x508] sm:$0xff]  ;;  %v7467_v21 = vcombine.low %v667_v10, %v675_v11  ;;  %v540_v10 = vld [vmem:[%s9709_s10 + $0x90] sm:$0xff] }
 0x102   : > { %2068 = vmatprep.subr.bf16.mxu0 %v7402_v44  ;;  %2109 = vmatprep.subr.bf16.mxu1 %v7404_v45  ;;  %v691_v19 = vld [vmem:[%s9709_s10 + $0x548] sm:$0xff]  ;;  %v7482_v22 = vcombine.high %v682_v16, %v690_v17  ;;  %v698_v24 = vld [vmem:[%s9709_s10 + $0x580] sm:$0xff]  ;;  %v7481_v28 = vcombine.low %v682_v16, %v690_v17  ;;  %v548_v11 = vld [vmem:[%s9709_s10 + $0xd0] sm:$0xff] }
 0x103   : > { %v7484_v23 = vcombine.high %v683_v18, %v691_v19  ;;  %v706_v25 = vld [vmem:[%s9709_s10 + $0x5c0] sm:$0xff]  ;;  %v699_v26 = vld [vmem:[%s9709_s10 + $0x588] sm:$0xff]  ;;  %v7483_v29 = vcombine.low %v683_v18, %v691_v19  ;;  %v7342_v17 = vcombine.high %v540_v10, %v548_v11  ;;  %v556_v18 = vld [vmem:[%s9709_s10 + $0x110] sm:$0xff] }
 0x104   : > { %v707_v27 = vld [vmem:[%s9709_s10 + $0x5c8] sm:$0xff]  ;;  %v7498_v30 = vcombine.high %v698_v24, %v706_v25  ;;  %v714_v32 = vld [vmem:[%s9709_s10 + $0x600] sm:$0xff]  ;;  %v7497_v36 = vcombine.low %v698_v24, %v706_v25  ;;  %v564_v19 = vld [vmem:[%s9709_s10 + $0x150] sm:$0xff] }
 0x105   : > { %2069 = vmatpush1.bf16.msra.mxu0 %v7401_v50  ;;  %2110 = vmatpush1.bf16.msra.mxu1 %v7403_v51  ;;  %v7500_v31 = vcombine.high %v699_v26, %v707_v27  ;;  %v722_v33 = vld [vmem:[%s9709_s10 + $0x640] sm:$0xff]  ;;  %v715_v34 = vld [vmem:[%s9709_s10 + $0x608] sm:$0xff]  ;;  %v7499_v37 = vcombine.low %v699_v26, %v707_v27  ;;  %v7358_v25 = vcombine.high %v556_v18, %v564_v19  ;;  %v572_v26 = vld [vmem:[%s9709_s10 + $0x190] sm:$0xff] }
 0x106   : > { %2070 = vmatprep.subr.bf16.mxu0 %v7418_v52  ;;  %2111 = vmatprep.subr.bf16.mxu1 %v7420_v54  ;;  %v723_v35 = vld [vmem:[%s9709_s10 + $0x648] sm:$0xff]  ;;  %v7514_v38 = vcombine.high %v714_v32, %v722_v33  ;;  %v730_v40 = vld [vmem:[%s9709_s10 + $0x680] sm:$0xff]  ;;  %v7513_v44 = vcombine.low %v714_v32, %v722_v33  ;;  %v580_v27 = vld [vmem:[%s9709_s10 + $0x1d0] sm:$0xff] }
 0x107   : > { %v7516_v39 = vcombine.high %v715_v34, %v723_v35  ;;  %v738_v41 = vld [vmem:[%s9709_s10 + $0x6c0] sm:$0xff]  ;;  %v731_v42 = vld [vmem:[%s9709_s10 + $0x688] sm:$0xff]  ;;  %v7515_v45 = vcombine.low %v715_v34, %v723_v35  ;;  %v7374_v33 = vcombine.high %v572_v26, %v580_v27  ;;  %v588_v34 = vld [vmem:[%s9709_s10 + $0x210] sm:$0xff] }
 0x108   : > { %v739_v43 = vld [vmem:[%s9709_s10 + $0x6c8] sm:$0xff]  ;;  %v7530_v46 = vcombine.high %v730_v40, %v738_v41  ;;  %v746_v48 = vld [vmem:[%s9709_s10 + $0x700] sm:$0xff]  ;;  %v7529_v52 = vcombine.low %v730_v40, %v738_v41  ;;  %v596_v35 = vld [vmem:[%s9709_s10 + $0x250] sm:$0xff] }
 0x109   : > { %2071 = vmatpush1.bf16.msra.mxu0 %v7417_v60  ;;  %2112 = vmatpush1.bf16.msra.mxu1 %v7419_v61  ;;  %v7532_v47 = vcombine.high %v731_v42, %v739_v43  ;;  %v754_v49 = vld [vmem:[%s9709_s10 + $0x740] sm:$0xff]  ;;  %v747_v50 = vld [vmem:[%s9709_s10 + $0x708] sm:$0xff]  ;;  %v7531_v53 = vcombine.low %v731_v42, %v739_v43  ;;  %v7390_v41 = vcombine.high %v588_v34, %v596_v35  ;;  %v604_v42 = vld [vmem:[%s9709_s10 + $0x290] sm:$0xff] }
 0x10a   : > { %2072 = vmatprep.subr.bf16.mxu0 %v7434_v62  ;;  %2113 = vmatprep.subr.bf16.mxu1 %v7436_v63  ;;  %v755_v51 = vld [vmem:[%s9709_s10 + $0x748] sm:$0xff]  ;;  %v7546_v54 = vcombine.high %v746_v48, %v754_v49  ;;  %v762_v56 = vld [vmem:[%s9709_s10 + $0x780] sm:$0xff]  ;;  %v7545_v61 = vcombine.low %v746_v48, %v754_v49  ;;  %v612_v43 = vld [vmem:[%s9709_s10 + $0x2d0] sm:$0xff] }
 0x10b   : > { %v7548_v55 = vcombine.high %v747_v50, %v755_v51  ;;  %v770_v58 = vld [vmem:[%s9709_s10 + $0x7c0] sm:$0xff]  ;;  %v763_v59 = vld [vmem:[%s9709_s10 + $0x788] sm:$0xff]  ;;  %v7547_v62 = vcombine.low %v747_v50, %v755_v51  ;;  %v7406_v49 = vcombine.high %v604_v42, %v612_v43  ;;  %v620_v50 = vld [vmem:[%s9709_s10 + $0x310] sm:$0xff] }
 0x10c   : > { %v771_v60 = vld [vmem:[%s9709_s10 + $0x7c8] sm:$0xff]  ;;  %v7562_v63 = vcombine.high %v762_v56, %v770_v58  ;;  %v628_v51 = vld [vmem:[%s9709_s10 + $0x350] sm:$0xff] }
 0x10d   : > { %2073 = vmatpush1.bf16.msra.mxu0 %v7433_v4  ;;  %2114 = vmatpush1.bf16.msra.mxu1 %v7435_v5  ;;  %v7564_v0 = vcombine.high %v763_v59, %v771_v60  ;;  %v533_v4 = vld [vmem:[%s9709_s10 + $0x58] sm:$0xff]  ;;  %v7561_v5 = vcombine.low %v762_v56, %v770_v58  ;;  %v7422_v58 = vcombine.high %v620_v50, %v628_v51 }
 0x10e   : > { %2074 = vmatprep.subr.bf16.mxu0 %v7450_v6  ;;  %2115 = vmatprep.subr.bf16.mxu1 %v7452_v7  ;;  %v518_v6 = vld [vmem:[%s403_s7] sm:$0xff]  ;;  %v7563_v7 = vcombine.low %v763_v59, %v771_v60  ;;  %v7328_v9 = vcombine.high %v525_v3, %v533_v4  ;;  %v7327_v16 = vcombine.low %v525_v3, %v533_v4  ;;  %s10956_s7 = scalar_lea.hbm %s11049_s29, %s8101_s22 }
 0x10f   : > { %v636_v59 = vld [vmem:[%s9709_s10 + $0x390] sm:$0xff] }
 0x110   : > { %v644_v60 = vld [vmem:[%s9709_s10 + $0x3d0] sm:$0xff] }
 0x111   : > { %2075 = vmatpush1.bf16.msra.mxu0 %v7449_v12  ;;  %2116 = vmatpush1.bf16.msra.mxu1 %v7451_v13  ;;  %v9811_v12 = vpack.c.bf16 %v518_v6, %v518_v6  ;;  %v541_v13 = vld [vmem:[%s9709_s10 + $0x98] sm:$0xff]  ;;  %v652_v3 = vld [vmem:[%s9709_s10 + $0x410] sm:$0xff] }
 0x112   : > { %2076 = vmatprep.subr.bf16.mxu0 %v7466_v14  ;;  %2117 = vmatprep.subr.bf16.mxu1 %v7468_v15  ;;  %v549_v14 = vld [vmem:[%s9709_s10 + $0xd8] sm:$0xff]  ;;  %v7325_v15 = vcombine.low %v524_v1, %v532_v2  ;;  %v7438_v2 = vcombine.high %v636_v59, %v644_v60  ;;  %v660_v4 = vld [vmem:[%s9709_s10 + $0x450] sm:$0xff] }
 0x113   : > { %v7343_v24 = vcombine.low %v541_v13, %v549_v14 }
 0x115   : > { %2077 = vmatpush1.bf16.msra.mxu0 %v7465_v20  ;;  %2118 = vmatpush1.bf16.msra.mxu1 %v7467_v21  ;;  %v557_v20 = vld [vmem:[%s9709_s10 + $0x118] sm:$0xff]  ;;  %v7344_v21 = vcombine.high %v541_v13, %v549_v14  ;;  %v676_v13 = vld [vmem:[%s9709_s10 + $0x4d0] sm:$0xff] }
 0x116   : > { %2078 = vmatprep.subr.bf16.mxu0 %v7482_v22  ;;  %2119 = vmatprep.subr.bf16.mxu1 %v7484_v23  ;;  %v565_v22 = vld [vmem:[%s9709_s10 + $0x158] sm:$0xff]  ;;  %v7341_v23 = vcombine.low %v540_v10, %v548_v11  ;;  %v7454_v10 = vcombine.high %v652_v3, %v660_v4  ;;  %v668_v11 = vld [vmem:[%s9709_s10 + $0x490] sm:$0xff] }
 0x117   : > { %v7359_v32 = vcombine.low %v557_v20, %v565_v22  ;;  %v669_v14 = vld [vmem:[%s9709_s10 + $0x498] sm:$0xff] }
 0x119   : > { %2079 = vmatpush1.bf16.msra.mxu0 %v7481_v28  ;;  %2120 = vmatpush1.bf16.msra.mxu1 %v7483_v29  ;;  %v573_v28 = vld [vmem:[%s9709_s10 + $0x198] sm:$0xff]  ;;  %v7360_v29 = vcombine.high %v557_v20, %v565_v22  ;;  %v684_v20 = vld [vmem:[%s9709_s10 + $0x510] sm:$0xff] }
 0x11a   : > { %2080 = vmatprep.subr.bf16.mxu0 %v7498_v30  ;;  %2121 = vmatprep.subr.bf16.mxu1 %v7500_v31  ;;  %v581_v30 = vld [vmem:[%s9709_s10 + $0x1d8] sm:$0xff]  ;;  %v7357_v31 = vcombine.low %v556_v18, %v564_v19  ;;  %v7470_v19 = vcombine.high %v668_v11, %v676_v13 }
 0x11b   : > { %v7375_v40 = vcombine.low %v573_v28, %v581_v30  ;;  %v685_v22 = vld [vmem:[%s9709_s10 + $0x518] sm:$0xff] }
 0x11d   : > { %2081 = vmatpush1.bf16.msra.mxu0 %v7497_v36  ;;  %2122 = vmatpush1.bf16.msra.mxu1 %v7499_v37  ;;  %v589_v36 = vld [vmem:[%s9709_s10 + $0x218] sm:$0xff]  ;;  %v7376_v37 = vcombine.high %v573_v28, %v581_v30  ;;  %v700_v28 = vld [vmem:[%s9709_s10 + $0x590] sm:$0xff] }
 0x11e   : > { %2082 = vmatprep.subr.bf16.mxu0 %v7514_v38  ;;  %2123 = vmatprep.subr.bf16.mxu1 %v7516_v39  ;;  %v597_v38 = vld [vmem:[%s9709_s10 + $0x258] sm:$0xff]  ;;  %v7373_v39 = vcombine.low %v572_v26, %v580_v27 }
 0x11f   : > { %v7391_v48 = vcombine.low %v589_v36, %v597_v38  ;;  %v701_v30 = vld [vmem:[%s9709_s10 + $0x598] sm:$0xff] }
 0x121   : > { %2083 = vmatpush1.bf16.msra.mxu0 %v7513_v44  ;;  %2124 = vmatpush1.bf16.msra.mxu1 %v7515_v45  ;;  %v605_v44 = vld [vmem:[%s9709_s10 + $0x298] sm:$0xff]  ;;  %v7392_v45 = vcombine.high %v589_v36, %v597_v38  ;;  %v716_v36 = vld [vmem:[%s9709_s10 + $0x610] sm:$0xff] }
 0x122   : > { %2084 = vmatprep.subr.bf16.mxu0 %v7530_v46  ;;  %2125 = vmatprep.subr.bf16.mxu1 %v7532_v47  ;;  %v613_v46 = vld [vmem:[%s9709_s10 + $0x2d8] sm:$0xff]  ;;  %v7389_v47 = vcombine.low %v588_v34, %v596_v35 }
 0x123   : > { %v7407_v56 = vcombine.low %v605_v44, %v613_v46  ;;  %v717_v38 = vld [vmem:[%s9709_s10 + $0x618] sm:$0xff] }
 0x125   : > { %2085 = vmatpush1.bf16.msra.mxu0 %v7529_v52  ;;  %2126 = vmatpush1.bf16.msra.mxu1 %v7531_v53  ;;  %v621_v52 = vld [vmem:[%s9709_s10 + $0x318] sm:$0xff]  ;;  %v7408_v53 = vcombine.high %v605_v44, %v613_v46  ;;  %v732_v44 = vld [vmem:[%s9709_s10 + $0x690] sm:$0xff] }
 0x126   : > { %2086 = vmatprep.subr.bf16.mxu0 %v7546_v54  ;;  %2127 = vmatprep.subr.bf16.mxu1 %v7548_v55  ;;  %v629_v54 = vld [vmem:[%s9709_s10 + $0x358] sm:$0xff]  ;;  %v7405_v55 = vcombine.low %v604_v42, %v612_v43 }
 0x127   : > { %v7423_v1 = vcombine.low %v621_v52, %v629_v54  ;;  %v733_v46 = vld [vmem:[%s9709_s10 + $0x698] sm:$0xff] }
 0x129   : > { %2087 = vmatpush1.bf16.msra.mxu0 %v7545_v61  ;;  %2128 = vmatpush1.bf16.msra.mxu1 %v7547_v62  ;;  %v637_v61 = vld [vmem:[%s9709_s10 + $0x398] sm:$0xff]  ;;  %v7424_v62 = vcombine.high %v621_v52, %v629_v54  ;;  %v748_v52 = vld [vmem:[%s9709_s10 + $0x710] sm:$0xff] }
 0x12a   : > { %2088 = vmatprep.subr.bf16.mxu0 %v7562_v63  ;;  %2129 = vmatprep.subr.bf16.mxu1 %v7564_v0  ;;  %v645_v63 = vld [vmem:[%s9709_s10 + $0x3d8] sm:$0xff]  ;;  %v7421_v0 = vcombine.low %v620_v50, %v628_v51 }
 0x12b   : > { %v7440_v6 = vcombine.high %v637_v61, %v645_v63  ;;  %v749_v54 = vld [vmem:[%s9709_s10 + $0x718] sm:$0xff] }
 0x12d   : > { %2089 = vmatpush1.bf16.msra.mxu0 %v7561_v5  ;;  %2130 = vmatpush1.bf16.msra.mxu1 %v7563_v7  ;;  %v653_v5 = vld [vmem:[%s9709_s10 + $0x418] sm:$0xff] }
 0x12e   : > { %2140 = vmatprep.subr.bf16.mxu0 %v7326_v8  ;;  %2181 = vmatprep.subr.bf16.mxu1 %v7328_v9  ;;  %v661_v7 = vld [vmem:[%s9709_s10 + $0x458] sm:$0xff]  ;;  %v7437_v8 = vcombine.low %v636_v59, %v644_v60  ;;  %v7439_v9 = vcombine.low %v637_v61, %v645_v63  ;;  %v764_v61 = vld [vmem:[%s9709_s10 + $0x790] sm:$0xff] }
 0x12f   : > { %v7455_v18 = vcombine.low %v653_v5, %v661_v7  ;;  %v765_v63 = vld [vmem:[%s9709_s10 + $0x798] sm:$0xff] }
 0x130   : > { %2091 = vmatmul.mubr.bf16.vlgmr.msra.gmra.mrb[0].mxu0 %v9811_v12  ;;  %2132 = vmatmul.mubr.bf16.vlgmr.msra.gmra.mrb[0].mxu1 %v9811_v12 }
 0x131   : > { %2141 = vmatpush1.bf16.msra.mxu0 %v7325_v15  ;;  %2182 = vmatpush1.bf16.msra.mxu1 %v7327_v16  ;;  %v7456_v15 = vcombine.high %v653_v5, %v661_v7  ;;  %v677_v16 = vld [vmem:[%s9709_s10 + $0x4d8] sm:$0xff]  ;;  %v526_v5 = vld [vmem:[%s9709_s10 + $0x20] sm:$0xff]  ;;  %v527_v7 = vld [vmem:[%s9709_s10 + $0x28] sm:$0xff] }
 0x132   : > { %2142 = vmatprep.subr.bf16.mxu0 %v7342_v17  ;;  %2183 = vmatprep.subr.bf16.mxu1 %v7344_v21  ;;  %v7453_v17 = vcombine.low %v652_v3, %v660_v4  ;;  %v692_v21 = vld [vmem:[%s9709_s10 + $0x550] sm:$0xff]  ;;  %v7471_v26 = vcombine.low %v669_v14, %v677_v16 }
 0x133   : > { %2172 = vmatprep.mubr.bf16.mxu0 %v9765_v57  ;;  %2213 = vmatprep.mubr.bf16.mxu1 %v9765_v57  ;;  %v7486_v27 = vcombine.high %v684_v20, %v692_v21 }
 0x135   : > { %2143 = vmatpush1.bf16.msra.mxu0 %v7341_v23  ;;  %2184 = vmatpush1.bf16.msra.mxu1 %v7343_v24  ;;  %v7472_v23 = vcombine.high %v669_v14, %v677_v16  ;;  %v693_v24 = vld [vmem:[%s9709_s10 + $0x558] sm:$0xff]  ;;  %v542_v14 = vld [vmem:[%s9709_s10 + $0xa0] sm:$0xff]  ;;  %v543_v16 = vld [vmem:[%s9709_s10 + $0xa8] sm:$0xff] }
 0x136   : > { %2144 = vmatprep.subr.bf16.mxu0 %v7358_v25  ;;  %2185 = vmatprep.subr.bf16.mxu1 %v7360_v29  ;;  %v7469_v25 = vcombine.low %v668_v11, %v676_v13  ;;  %v708_v29 = vld [vmem:[%s9709_s10 + $0x5d0] sm:$0xff]  ;;  %v7487_v34 = vcombine.low %v685_v22, %v693_v24 }
 0x137   : > { %v7502_v35 = vcombine.high %v700_v28, %v708_v29 }
 0x139   : > { %2145 = vmatpush1.bf16.msra.mxu0 %v7357_v31  ;;  %2186 = vmatpush1.bf16.msra.mxu1 %v7359_v32  ;;  %v7488_v31 = vcombine.high %v685_v22, %v693_v24  ;;  %v709_v32 = vld [vmem:[%s9709_s10 + $0x5d8] sm:$0xff]  ;;  %v559_v24 = vld [vmem:[%s9709_s10 + $0x128] sm:$0xff] }
 0x13a   : > { %2146 = vmatprep.subr.bf16.mxu0 %v7374_v33  ;;  %2187 = vmatprep.subr.bf16.mxu1 %v7376_v37  ;;  %v7485_v33 = vcombine.low %v684_v20, %v692_v21  ;;  %v724_v37 = vld [vmem:[%s9709_s10 + $0x650] sm:$0xff]  ;;  %v7503_v42 = vcombine.low %v701_v30, %v709_v32  ;;  %v558_v20 = vld [vmem:[%s9709_s10 + $0x120] sm:$0xff] }
 0x13b   : > { %v7518_v43 = vcombine.high %v716_v36, %v724_v37  ;;  %v566_v21 = vld [vmem:[%s9709_s10 + $0x160] sm:$0xff] }
 0x13d   : > { %2147 = vmatpush1.bf16.msra.mxu0 %v7373_v39  ;;  %2188 = vmatpush1.bf16.msra.mxu1 %v7375_v40  ;;  %v7504_v39 = vcombine.high %v701_v30, %v709_v32  ;;  %v725_v40 = vld [vmem:[%s9709_s10 + $0x658] sm:$0xff]  ;;  %v575_v32 = vld [vmem:[%s9709_s10 + $0x1a8] sm:$0xff] }
 0x13e   : > { %2148 = vmatprep.subr.bf16.mxu0 %v7390_v41  ;;  %2189 = vmatprep.subr.bf16.mxu1 %v7392_v45  ;;  %v7501_v41 = vcombine.low %v700_v28, %v708_v29  ;;  %v740_v45 = vld [vmem:[%s9709_s10 + $0x6d0] sm:$0xff]  ;;  %v7519_v50 = vcombine.low %v717_v38, %v725_v40  ;;  %v574_v28 = vld [vmem:[%s9709_s10 + $0x1a0] sm:$0xff] }
 0x13f   : > { %v7534_v51 = vcombine.high %v732_v44, %v740_v45  ;;  %v582_v29 = vld [vmem:[%s9709_s10 + $0x1e0] sm:$0xff] }
 0x141   : > { %2149 = vmatpush1.bf16.msra.mxu0 %v7389_v47  ;;  %2190 = vmatpush1.bf16.msra.mxu1 %v7391_v48  ;;  %v7520_v47 = vcombine.high %v717_v38, %v725_v40  ;;  %v741_v48 = vld [vmem:[%s9709_s10 + $0x6d8] sm:$0xff]  ;;  %v591_v40 = vld [vmem:[%s9709_s10 + $0x228] sm:$0xff] }
 0x142   : > { %2150 = vmatprep.subr.bf16.mxu0 %v7406_v49  ;;  %2191 = vmatprep.subr.bf16.mxu1 %v7408_v53  ;;  %v7517_v49 = vcombine.low %v716_v36, %v724_v37  ;;  %v756_v53 = vld [vmem:[%s9709_s10 + $0x750] sm:$0xff]  ;;  %v7535_v59 = vcombine.low %v733_v46, %v741_v48  ;;  %v590_v36 = vld [vmem:[%s9709_s10 + $0x220] sm:$0xff] }
 0x143   : > { %v7550_v60 = vcombine.high %v748_v52, %v756_v53  ;;  %v598_v37 = vld [vmem:[%s9709_s10 + $0x260] sm:$0xff] }
 0x145   : > { %2151 = vmatpush1.bf16.msra.mxu0 %v7405_v55  ;;  %2192 = vmatpush1.bf16.msra.mxu1 %v7407_v56  ;;  %v7536_v55 = vcombine.high %v733_v46, %v741_v48  ;;  %v757_v56 = vld [vmem:[%s9709_s10 + $0x758] sm:$0xff]  ;;  %v607_v48 = vld [vmem:[%s9709_s10 + $0x2a8] sm:$0xff] }
 0x146   : > { %2152 = vmatprep.subr.bf16.mxu0 %v7422_v58  ;;  %2193 = vmatprep.subr.bf16.mxu1 %v7424_v62  ;;  %v7533_v58 = vcombine.low %v732_v44, %v740_v45  ;;  %v772_v62 = vld [vmem:[%s9709_s10 + $0x7d0] sm:$0xff]  ;;  %v7551_v3 = vcombine.low %v749_v54, %v757_v56  ;;  %v606_v44 = vld [vmem:[%s9709_s10 + $0x2a0] sm:$0xff] }
 0x147   : > { %v7566_v4 = vcombine.high %v764_v61, %v772_v62  ;;  %v614_v45 = vld [vmem:[%s9709_s10 + $0x2e0] sm:$0xff] }
 0x149   : > { %2153 = vmatpush1.bf16.msra.mxu0 %v7421_v0  ;;  %2194 = vmatpush1.bf16.msra.mxu1 %v7423_v1  ;;  %v7552_v0 = vcombine.high %v749_v54, %v757_v56  ;;  %v773_v1 = vld [vmem:[%s9709_s10 + $0x7d8] sm:$0xff]  ;;  %v623_v56 = vld [vmem:[%s9709_s10 + $0x328] sm:$0xff] }
 0x14a   : > { %2154 = vmatprep.subr.bf16.mxu0 %v7438_v2  ;;  %2195 = vmatprep.subr.bf16.mxu1 %v7440_v6  ;;  %v7549_v2 = vcombine.low %v748_v52, %v756_v53  ;;  %v534_v6 = vld [vmem:[%s9709_s10 + $0x60] sm:$0xff]  ;;  %v7567_v11 = vcombine.low %v765_v63, %v773_v1 }
 0x14b   : > { %v7330_v13 = vcombine.high %v526_v5, %v534_v6  ;;  %v622_v52 = vld [vmem:[%s9709_s10 + $0x320] sm:$0xff] }
 0x14c   : > { %v630_v53 = vld [vmem:[%s9709_s10 + $0x360] sm:$0xff] }
 0x14d   : > { %2155 = vmatpush1.bf16.msra.mxu0 %v7437_v8  ;;  %2196 = vmatpush1.bf16.msra.mxu1 %v7439_v9  ;;  %v7568_v8 = vcombine.high %v765_v63, %v773_v1  ;;  %v535_v9 = vld [vmem:[%s9709_s10 + $0x68] sm:$0xff] }
 0x14e   : > { %2156 = vmatprep.subr.bf16.mxu0 %v7454_v10  ;;  %2197 = vmatprep.subr.bf16.mxu1 %v7456_v15  ;;  %v7565_v10 = vcombine.low %v764_v61, %v772_v62  ;;  %v550_v15 = vld [vmem:[%s9709_s10 + $0xe0] sm:$0xff]  ;;  %v7331_v22 = vcombine.low %v527_v7, %v535_v9  ;;  %v639_v1 = vld [vmem:[%s9709_s10 + $0x3a8] sm:$0xff] }
 0x14f   : > { %v638_v61 = vld [vmem:[%s9709_s10 + $0x3a0] sm:$0xff] }
 0x150   : > { %v646_v62 = vld [vmem:[%s9709_s10 + $0x3e0] sm:$0xff] }
 0x151   : > { %2157 = vmatpush1.bf16.msra.mxu0 %v7453_v17  ;;  %2198 = vmatpush1.bf16.msra.mxu1 %v7455_v18  ;;  %v7332_v17 = vcombine.high %v527_v7, %v535_v9  ;;  %v551_v18 = vld [vmem:[%s9709_s10 + $0xe8] sm:$0xff] }
 0x152   : > { %2158 = vmatprep.subr.bf16.mxu0 %v7470_v19  ;;  %2199 = vmatprep.subr.bf16.mxu1 %v7472_v23  ;;  %v7329_v19 = vcombine.low %v526_v5, %v534_v6  ;;  %v7346_v23 = vcombine.high %v542_v14, %v550_v15  ;;  %v7347_v30 = vcombine.low %v543_v16, %v551_v18  ;;  %v654_v5 = vld [vmem:[%s9709_s10 + $0x420] sm:$0xff]  ;;  %v655_v9 = vld [vmem:[%s9709_s10 + $0x428] sm:$0xff] }
 0x153   : > { %v662_v6 = vld [vmem:[%s9709_s10 + $0x460] sm:$0xff] }
 0x155   : > { %2159 = vmatpush1.bf16.msra.mxu0 %v7469_v25  ;;  %2200 = vmatpush1.bf16.msra.mxu1 %v7471_v26  ;;  %v567_v25 = vld [vmem:[%s9709_s10 + $0x168] sm:$0xff]  ;;  %v7348_v26 = vcombine.high %v543_v16, %v551_v18 }
 0x156   : > { %2160 = vmatprep.subr.bf16.mxu0 %v7486_v27  ;;  %2201 = vmatprep.subr.bf16.mxu1 %v7488_v31  ;;  %v7345_v27 = vcombine.low %v542_v14, %v550_v15  ;;  %v7362_v31 = vcombine.high %v558_v20, %v566_v21  ;;  %v7363_v38 = vcombine.low %v559_v24, %v567_v25  ;;  %v670_v14 = vld [vmem:[%s9709_s10 + $0x4a0] sm:$0xff]  ;;  %v671_v18 = vld [vmem:[%s9709_s10 + $0x4a8] sm:$0xff] }
 0x157   : > { %v678_v15 = vld [vmem:[%s9709_s10 + $0x4e0] sm:$0xff] }
 0x159   : > { %2161 = vmatpush1.bf16.msra.mxu0 %v7485_v33  ;;  %2202 = vmatpush1.bf16.msra.mxu1 %v7487_v34  ;;  %v583_v33 = vld [vmem:[%s9709_s10 + $0x1e8] sm:$0xff]  ;;  %v7364_v34 = vcombine.high %v559_v24, %v567_v25  ;;  %v7474_v25 = vcombine.high %v670_v14, %v678_v15 }
 0x15a   : > { %2162 = vmatprep.subr.bf16.mxu0 %v7502_v35  ;;  %2203 = vmatprep.subr.bf16.mxu1 %v7504_v39  ;;  %v7361_v35 = vcombine.low %v558_v20, %v566_v21  ;;  %v7378_v39 = vcombine.high %v574_v28, %v582_v29  ;;  %v7379_v46 = vcombine.low %v575_v32, %v583_v33 }
 0x15b   : > { %v7457_v21 = vcombine.low %v654_v5, %v662_v6 }
 0x15d   : > { %2163 = vmatpush1.bf16.msra.mxu0 %v7501_v41  ;;  %2204 = vmatpush1.bf16.msra.mxu1 %v7503_v42  ;;  %v599_v41 = vld [vmem:[%s9709_s10 + $0x268] sm:$0xff]  ;;  %v7380_v42 = vcombine.high %v575_v32, %v583_v33 }
 0x15e   : > { %2164 = vmatprep.subr.bf16.mxu0 %v7518_v43  ;;  %2205 = vmatprep.subr.bf16.mxu1 %v7520_v47  ;;  %v7377_v43 = vcombine.low %v574_v28, %v582_v29  ;;  %v7394_v47 = vcombine.high %v590_v36, %v598_v37  ;;  %v7395_v54 = vcombine.low %v591_v40, %v599_v41 }
 0x15f   : > { %v7473_v29 = vcombine.low %v670_v14, %v678_v15 }
 0x161   : > { %2165 = vmatpush1.bf16.msra.mxu0 %v7517_v49  ;;  %2206 = vmatpush1.bf16.msra.mxu1 %v7519_v50  ;;  %v615_v49 = vld [vmem:[%s9709_s10 + $0x2e8] sm:$0xff]  ;;  %v7396_v50 = vcombine.high %v591_v40, %v599_v41 }
 0x162   : > { %2166 = vmatprep.subr.bf16.mxu0 %v7534_v51  ;;  %2207 = vmatprep.subr.bf16.mxu1 %v7536_v55  ;;  %v7393_v51 = vcombine.low %v590_v36, %v598_v37  ;;  %v7410_v55 = vcombine.high %v606_v44, %v614_v45  ;;  %v7411_v63 = vcombine.low %v607_v48, %v615_v49 }
 0x165   : > { %2167 = vmatpush1.bf16.msra.mxu0 %v7533_v58  ;;  %2208 = vmatpush1.bf16.msra.mxu1 %v7535_v59  ;;  %v631_v58 = vld [vmem:[%s9709_s10 + $0x368] sm:$0xff]  ;;  %v7412_v59 = vcombine.high %v607_v48, %v615_v49 }
 0x166   : > { %2168 = vmatprep.subr.bf16.mxu0 %v7550_v60  ;;  %2209 = vmatprep.subr.bf16.mxu1 %v7552_v0  ;;  %v7409_v60 = vcombine.low %v606_v44, %v614_v45  ;;  %v7426_v0 = vcombine.high %v622_v52, %v630_v53  ;;  %v7427_v7 = vcombine.low %v623_v56, %v631_v58 }
 0x169   : > { %2169 = vmatpush1.bf16.msra.mxu0 %v7549_v2  ;;  %2210 = vmatpush1.bf16.msra.mxu1 %v7551_v3  ;;  %v647_v2 = vld [vmem:[%s9709_s10 + $0x3e8] sm:$0xff]  ;;  %v7428_v3 = vcombine.high %v623_v56, %v631_v58 }
 0x16a   : > { %2170 = vmatprep.subr.bf16.mxu0 %v7566_v4  ;;  %2211 = vmatprep.subr.bf16.mxu1 %v7568_v8  ;;  %v7425_v4 = vcombine.low %v622_v52, %v630_v53  ;;  %v7442_v8 = vcombine.high %v638_v61, %v646_v62  ;;  %v7443_v16 = vcombine.low %v639_v1, %v647_v2 }
 0x16d   : > { %2171 = vmatpush1.bf16.msra.mxu0 %v7565_v10  ;;  %2212 = vmatpush1.bf16.msra.mxu1 %v7567_v11  ;;  %v663_v10 = vld [vmem:[%s9709_s10 + $0x468] sm:$0xff]  ;;  %v7444_v11 = vcombine.high %v639_v1, %v647_v2 }
 0x16e   : > { %2222 = vmatprep.subr.bf16.mxu0 %v7330_v13  ;;  %2263 = vmatprep.subr.bf16.mxu1 %v7332_v17  ;;  %v7441_v13 = vcombine.low %v638_v61, %v646_v62  ;;  %v7458_v17 = vcombine.high %v654_v5, %v662_v6  ;;  %v7460_v20 = vcombine.high %v655_v9, %v663_v10 }
 0x16f   : > { %v7459_v24 = vcombine.low %v655_v9, %v663_v10 }
 0x170   : > { %2173 = vmatmul.mubr.bf16.vlgmr.msra.gmra.mrb[4].mxu0 %v9811_v12  ;;  %2214 = vmatmul.mubr.bf16.vlgmr.msra.gmra.mrb[4].mxu1 %v9811_v12 }
 0x171   : > { %2223 = vmatpush1.bf16.msra.mxu0 %v7329_v19  ;;  %2264 = vmatpush1.bf16.msra.mxu1 %v7331_v22  ;;  %v679_v19 = vld [vmem:[%s9709_s10 + $0x4e8] sm:$0xff]  ;;  %v686_v22 = vld [vmem:[%s9709_s10 + $0x520] sm:$0xff] }
 0x172   : > { %2224 = vmatprep.subr.bf16.mxu0 %v7346_v23  ;;  %2265 = vmatprep.subr.bf16.mxu1 %v7348_v26  ;;  %v694_v23 = vld [vmem:[%s9709_s10 + $0x560] sm:$0xff]  ;;  %v687_v26 = vld [vmem:[%s9709_s10 + $0x528] sm:$0xff]  ;;  %v7476_v28 = vcombine.high %v671_v18, %v679_v19  ;;  %v7475_v32 = vcombine.low %v671_v18, %v679_v19 }
 0x173   : > { %2254 = vmatprep.mubr.bf16.mxu0 %v9765_v57  ;;  %2295 = vmatprep.mubr.bf16.mxu1 %v9765_v57  ;;  %v7490_v33 = vcombine.high %v686_v22, %v694_v23  ;;  %v7489_v37 = vcombine.low %v686_v22, %v694_v23 }
 0x175   : > { %2225 = vmatpush1.bf16.msra.mxu0 %v7345_v27  ;;  %2266 = vmatpush1.bf16.msra.mxu1 %v7347_v30  ;;  %v695_v27 = vld [vmem:[%s9709_s10 + $0x568] sm:$0xff]  ;;  %v702_v30 = vld [vmem:[%s9709_s10 + $0x5a0] sm:$0xff] }
 0x176   : > { %2226 = vmatprep.subr.bf16.mxu0 %v7362_v31  ;;  %2267 = vmatprep.subr.bf16.mxu1 %v7364_v34  ;;  %v710_v31 = vld [vmem:[%s9709_s10 + $0x5e0] sm:$0xff]  ;;  %v703_v34 = vld [vmem:[%s9709_s10 + $0x5a8] sm:$0xff]  ;;  %v7492_v36 = vcombine.high %v687_v26, %v695_v27  ;;  %v7491_v40 = vcombine.low %v687_v26, %v695_v27 }
 0x177   : > { %v7506_v41 = vcombine.high %v702_v30, %v710_v31  ;;  %v7505_v45 = vcombine.low %v702_v30, %v710_v31 }
 0x179   : > { %2227 = vmatpush1.bf16.msra.mxu0 %v7361_v35  ;;  %2268 = vmatpush1.bf16.msra.mxu1 %v7363_v38  ;;  %v711_v35 = vld [vmem:[%s9709_s10 + $0x5e8] sm:$0xff]  ;;  %v718_v38 = vld [vmem:[%s9709_s10 + $0x620] sm:$0xff] }
 0x17a   : > { %2228 = vmatprep.subr.bf16.mxu0 %v7378_v39  ;;  %2269 = vmatprep.subr.bf16.mxu1 %v7380_v42  ;;  %v726_v39 = vld [vmem:[%s9709_s10 + $0x660] sm:$0xff]  ;;  %v719_v42 = vld [vmem:[%s9709_s10 + $0x628] sm:$0xff]  ;;  %v7508_v44 = vcombine.high %v703_v34, %v711_v35  ;;  %v7507_v48 = vcombine.low %v703_v34, %v711_v35  ;;  %v576_v35 = vld [vmem:[%s9709_s10 + $0x1b0] sm:$0xff] }
 0x17b   : > { %v7522_v49 = vcombine.high %v718_v38, %v726_v39  ;;  %v7521_v53 = vcombine.low %v718_v38, %v726_v39  ;;  %v585_v38 = vld [vmem:[%s9709_s10 + $0x1f8] sm:$0xff] }
 0x17d   : > { %2229 = vmatpush1.bf16.msra.mxu0 %v7377_v43  ;;  %2270 = vmatpush1.bf16.msra.mxu1 %v7379_v46  ;;  %v727_v43 = vld [vmem:[%s9709_s10 + $0x668] sm:$0xff]  ;;  %v734_v46 = vld [vmem:[%s9709_s10 + $0x6a0] sm:$0xff] }
 0x17e   : > { %2230 = vmatprep.subr.bf16.mxu0 %v7394_v47  ;;  %2271 = vmatprep.subr.bf16.mxu1 %v7396_v50  ;;  %v742_v47 = vld [vmem:[%s9709_s10 + $0x6e0] sm:$0xff]  ;;  %v735_v50 = vld [vmem:[%s9709_s10 + $0x6a8] sm:$0xff]  ;;  %v7524_v52 = vcombine.high %v719_v42, %v727_v43  ;;  %v7523_v56 = vcombine.low %v719_v42, %v727_v43 }
 0x17f   : > { %v7538_v58 = vcombine.high %v734_v46, %v742_v47  ;;  %v7537_v62 = vcombine.low %v734_v46, %v742_v47 }
 0x181   : > { %2231 = vmatpush1.bf16.msra.mxu0 %v7393_v51  ;;  %2272 = vmatpush1.bf16.msra.mxu1 %v7395_v54  ;;  %v743_v51 = vld [vmem:[%s9709_s10 + $0x6e8] sm:$0xff]  ;;  %v750_v54 = vld [vmem:[%s9709_s10 + $0x720] sm:$0xff] }
 0x182   : > { %2232 = vmatprep.subr.bf16.mxu0 %v7410_v55  ;;  %2273 = vmatprep.subr.bf16.mxu1 %v7412_v59  ;;  %v758_v55 = vld [vmem:[%s9709_s10 + $0x760] sm:$0xff]  ;;  %v751_v59 = vld [vmem:[%s9709_s10 + $0x728] sm:$0xff]  ;;  %v7540_v61 = vcombine.high %v735_v50, %v743_v51  ;;  %v7539_v1 = vcombine.low %v735_v50, %v743_v51  ;;  %v609_v51 = vld [vmem:[%s9709_s10 + $0x2b8] sm:$0xff] }
 0x183   : > { %v7554_v2 = vcombine.high %v750_v54, %v758_v55  ;;  %v7553_v6 = vcombine.low %v750_v54, %v758_v55  ;;  %v624_v55 = vld [vmem:[%s9709_s10 + $0x330] sm:$0xff] }
 0x185   : > { %2233 = vmatpush1.bf16.msra.mxu0 %v7409_v60  ;;  %2274 = vmatpush1.bf16.msra.mxu1 %v7411_v63  ;;  %v759_v60 = vld [vmem:[%s9709_s10 + $0x768] sm:$0xff]  ;;  %v766_v63 = vld [vmem:[%s9709_s10 + $0x7a0] sm:$0xff] }
 0x186   : > { %2234 = vmatprep.subr.bf16.mxu0 %v7426_v0  ;;  %2275 = vmatprep.subr.bf16.mxu1 %v7428_v3  ;;  %v774_v0 = vld [vmem:[%s9709_s10 + $0x7e0] sm:$0xff]  ;;  %v767_v3 = vld [vmem:[%s9709_s10 + $0x7a8] sm:$0xff]  ;;  %v7556_v5 = vcombine.high %v751_v59, %v759_v60  ;;  %v7555_v9 = vcombine.low %v751_v59, %v759_v60  ;;  %v625_v60 = vld [vmem:[%s9709_s10 + $0x338] sm:$0xff] }
 0x187   : > { %v7570_v10 = vcombine.high %v766_v63, %v774_v0  ;;  %v7569_v15 = vcombine.low %v766_v63, %v774_v0  ;;  %v640_v0 = vld [vmem:[%s9709_s10 + $0x3b0] sm:$0xff] }
 0x189   : > { %2235 = vmatpush1.bf16.msra.mxu0 %v7425_v4  ;;  %2276 = vmatpush1.bf16.msra.mxu1 %v7427_v7  ;;  %v775_v4 = vld [vmem:[%s9709_s10 + $0x7e8] sm:$0xff]  ;;  %v528_v7 = vld [vmem:[%s9709_s10 + $0x30] sm:$0xff] }
 0x18a   : > { %2236 = vmatprep.subr.bf16.mxu0 %v7442_v8  ;;  %2277 = vmatprep.subr.bf16.mxu1 %v7444_v11  ;;  %v536_v8 = vld [vmem:[%s9709_s10 + $0x70] sm:$0xff]  ;;  %v529_v11 = vld [vmem:[%s9709_s10 + $0x38] sm:$0xff]  ;;  %v7572_v14 = vcombine.high %v767_v3, %v775_v4  ;;  %v7571_v18 = vcombine.low %v767_v3, %v775_v4 }
 0x18b   : > { %v7334_v19 = vcombine.high %v528_v7, %v536_v8  ;;  %v7333_v23 = vcombine.low %v528_v7, %v536_v8  ;;  %v641_v4 = vld [vmem:[%s9709_s10 + $0x3b8] sm:$0xff] }
 0x18d   : > { %2237 = vmatpush1.bf16.msra.mxu0 %v7441_v13  ;;  %2278 = vmatpush1.bf16.msra.mxu1 %v7443_v16  ;;  %v537_v13 = vld [vmem:[%s9709_s10 + $0x78] sm:$0xff]  ;;  %v544_v16 = vld [vmem:[%s9709_s10 + $0xb0] sm:$0xff] }
 0x18e   : > { %2238 = vmatprep.subr.bf16.mxu0 %v7458_v17  ;;  %2279 = vmatprep.subr.bf16.mxu1 %v7460_v20  ;;  %v552_v17 = vld [vmem:[%s9709_s10 + $0xf0] sm:$0xff]  ;;  %v545_v20 = vld [vmem:[%s9709_s10 + $0xb8] sm:$0xff]  ;;  %v7336_v22 = vcombine.high %v529_v11, %v537_v13  ;;  %v7335_v26 = vcombine.low %v529_v11, %v537_v13 }
 0x18f   : > { %v7350_v27 = vcombine.high %v544_v16, %v552_v17  ;;  %v7349_v31 = vcombine.low %v544_v16, %v552_v17  ;;  %v664_v11 = vld [vmem:[%s9709_s10 + $0x470] sm:$0xff] }
 0x191   : > { %2239 = vmatpush1.bf16.msra.mxu0 %v7457_v21  ;;  %2280 = vmatpush1.bf16.msra.mxu1 %v7459_v24  ;;  %v553_v21 = vld [vmem:[%s9709_s10 + $0xf8] sm:$0xff]  ;;  %v560_v24 = vld [vmem:[%s9709_s10 + $0x130] sm:$0xff] }
 0x192   : > { %2240 = vmatprep.subr.bf16.mxu0 %v7474_v25  ;;  %2281 = vmatprep.subr.bf16.mxu1 %v7476_v28  ;;  %v568_v25 = vld [vmem:[%s9709_s10 + $0x170] sm:$0xff]  ;;  %v561_v28 = vld [vmem:[%s9709_s10 + $0x138] sm:$0xff]  ;;  %v7352_v30 = vcombine.high %v545_v20, %v553_v21 }
 0x193   : > { %v7365_v39 = vcombine.low %v560_v24, %v568_v25 }
 0x195   : > { %2241 = vmatpush1.bf16.msra.mxu0 %v7473_v29  ;;  %2282 = vmatpush1.bf16.msra.mxu1 %v7475_v32  ;;  %v569_v29 = vld [vmem:[%s9709_s10 + $0x178] sm:$0xff]  ;;  %v7351_v32 = vcombine.low %v545_v20, %v553_v21  ;;  %v680_v20 = vld [vmem:[%s9709_s10 + $0x4f0] sm:$0xff] }
 0x196   : > { %2242 = vmatprep.subr.bf16.mxu0 %v7490_v33  ;;  %2283 = vmatprep.subr.bf16.mxu1 %v7492_v36  ;;  %v7366_v33 = vcombine.high %v560_v24, %v568_v25  ;;  %v7368_v34 = vcombine.high %v561_v28, %v569_v29  ;;  %v584_v36 = vld [vmem:[%s9709_s10 + $0x1f0] sm:$0xff]  ;;  %v7367_v42 = vcombine.low %v561_v28, %v569_v29 }
 0x197   : > { %v7382_v43 = vcombine.high %v576_v35, %v584_v36  ;;  %v7381_v47 = vcombine.low %v576_v35, %v584_v36  ;;  %v696_v28 = vld [vmem:[%s9709_s10 + $0x570] sm:$0xff] }
 0x198   : > { %v704_v35 = vld [vmem:[%s9709_s10 + $0x5b0] sm:$0xff] }
 0x199   : > { %2243 = vmatpush1.bf16.msra.mxu0 %v7489_v37  ;;  %2284 = vmatpush1.bf16.msra.mxu1 %v7491_v40  ;;  %v577_v37 = vld [vmem:[%s9709_s10 + $0x1b8] sm:$0xff]  ;;  %v592_v40 = vld [vmem:[%s9709_s10 + $0x230] sm:$0xff] }
 0x19a   : > { %2244 = vmatprep.subr.bf16.mxu0 %v7506_v41  ;;  %2285 = vmatprep.subr.bf16.mxu1 %v7508_v44  ;;  %v600_v41 = vld [vmem:[%s9709_s10 + $0x270] sm:$0xff]  ;;  %v593_v44 = vld [vmem:[%s9709_s10 + $0x238] sm:$0xff]  ;;  %v7384_v46 = vcombine.high %v577_v37, %v585_v38 }
 0x19b   : > { %v7398_v50 = vcombine.high %v592_v40, %v600_v41  ;;  %v7397_v54 = vcombine.low %v592_v40, %v600_v41  ;;  %v712_v36 = vld [vmem:[%s9709_s10 + $0x5f0] sm:$0xff] }
 0x19d   : > { %2245 = vmatpush1.bf16.msra.mxu0 %v7505_v45  ;;  %2286 = vmatpush1.bf16.msra.mxu1 %v7507_v48  ;;  %v601_v45 = vld [vmem:[%s9709_s10 + $0x278] sm:$0xff]  ;;  %v616_v48 = vld [vmem:[%s9709_s10 + $0x2f0] sm:$0xff] }
 0x19e   : > { %2246 = vmatprep.subr.bf16.mxu0 %v7522_v49  ;;  %2287 = vmatprep.subr.bf16.mxu1 %v7524_v52  ;;  %v7383_v49 = vcombine.low %v577_v37, %v585_v38  ;;  %v617_v52 = vld [vmem:[%s9709_s10 + $0x2f8] sm:$0xff] }
 0x19f   : > { %v705_v38 = vld [vmem:[%s9709_s10 + $0x5b8] sm:$0xff] }
 0x1a1   : > { %2247 = vmatpush1.bf16.msra.mxu0 %v7521_v53  ;;  %2288 = vmatpush1.bf16.msra.mxu1 %v7523_v56  ;;  %v7400_v53 = vcombine.high %v593_v44, %v601_v45  ;;  %v632_v56 = vld [vmem:[%s9709_s10 + $0x370] sm:$0xff] }
 0x1a2   : > { %2248 = vmatprep.subr.bf16.mxu0 %v7538_v58  ;;  %2289 = vmatprep.subr.bf16.mxu1 %v7540_v61  ;;  %v7399_v58 = vcombine.low %v593_v44, %v601_v45  ;;  %v633_v61 = vld [vmem:[%s9709_s10 + $0x378] sm:$0xff]  ;;  %v7430_v3 = vcombine.high %v624_v55, %v632_v56  ;;  %v7429_v7 = vcombine.low %v624_v55, %v632_v56  ;;  %v728_v44 = vld [vmem:[%s9709_s10 + $0x670] sm:$0xff] }
 0x1a3   : > { %v7431_v8 = vcombine.low %v625_v60, %v633_v61 }
 0x1a5   : > { %2249 = vmatpush1.bf16.msra.mxu0 %v7537_v62  ;;  %2290 = vmatpush1.bf16.msra.mxu1 %v7539_v1  ;;  %v7416_v62 = vcombine.high %v609_v51, %v617_v52  ;;  %v648_v1 = vld [vmem:[%s9709_s10 + $0x3f0] sm:$0xff] }
 0x1a6   : > { %2250 = vmatprep.subr.bf16.mxu0 %v7554_v2  ;;  %2291 = vmatprep.subr.bf16.mxu1 %v7556_v5  ;;  %v7415_v2 = vcombine.low %v609_v51, %v617_v52  ;;  %v649_v5 = vld [vmem:[%s9709_s10 + $0x3f8] sm:$0xff]  ;;  %v7445_v16 = vcombine.low %v640_v0, %v648_v1  ;;  %v744_v51 = vld [vmem:[%s9709_s10 + $0x6f0] sm:$0xff] }
 0x1a7   : > { %v7448_v13 = vcombine.high %v641_v4, %v649_v5  ;;  %v7447_v17 = vcombine.low %v641_v4, %v649_v5  ;;  %v776_v4 = vld [vmem:[%s9709_s10 + $0x7f0] sm:$0xff] }
 0x1a9   : > { %2251 = vmatpush1.bf16.msra.mxu0 %v7553_v6  ;;  %2292 = vmatpush1.bf16.msra.mxu1 %v7555_v9  ;;  %v7432_v6 = vcombine.high %v625_v60, %v633_v61  ;;  %v7446_v9 = vcombine.high %v640_v0, %v648_v1  ;;  %v760_v60 = vld [vmem:[%s9709_s10 + $0x770] sm:$0xff] }
 0x1aa   : > { %2252 = vmatprep.subr.bf16.mxu0 %v7570_v10  ;;  %2293 = vmatprep.subr.bf16.mxu1 %v7572_v14  ;;  %v656_v10 = vld [vmem:[%s9709_s10 + $0x430] sm:$0xff]  ;;  %v657_v14 = vld [vmem:[%s9709_s10 + $0x438] sm:$0xff] }
 0x1ab   : > { %v7461_v24 = vcombine.low %v656_v10, %v664_v11 }
 0x1ad   : > { %2253 = vmatpush1.bf16.msra.mxu0 %v7569_v15  ;;  %2294 = vmatpush1.bf16.msra.mxu1 %v7571_v18  ;;  %v665_v15 = vld [vmem:[%s9709_s10 + $0x478] sm:$0xff]  ;;  %v7462_v18 = vcombine.high %v656_v10, %v664_v11 }
 0x1ae   : > { %2304 = vmatprep.subr.bf16.mxu0 %v7334_v19  ;;  %2345 = vmatprep.subr.bf16.mxu1 %v7336_v22  ;;  %v672_v19 = vld [vmem:[%s9709_s10 + $0x4b0] sm:$0xff]  ;;  %v7464_v21 = vcombine.high %v657_v14, %v665_v15  ;;  %v673_v22 = vld [vmem:[%s9709_s10 + $0x4b8] sm:$0xff]  ;;  %v7463_v25 = vcombine.low %v657_v14, %v665_v15 }
 0x1af   : > { %v8241_v15 = vld [vmem:[%s9723_s17 + $0x4] ss:$16 sps:$4 sm:$0xff]  }
 0x1b0   : > { %2255 = vmatmul.mubr.bf16.vlgmr.msra.gmra.mrb[8].mxu0 %v9811_v12  ;;  %2296 = vmatmul.mubr.bf16.vlgmr.msra.gmra.mrb[8].mxu1 %v9811_v12 }
 0x1b1   : > { %2305 = vmatpush1.bf16.msra.mxu0 %v7333_v23  ;;  %2346 = vmatpush1.bf16.msra.mxu1 %v7335_v26  ;;  %v681_v23 = vld [vmem:[%s9709_s10 + $0x4f8] sm:$0xff]  ;;  %v7478_v26 = vcombine.high %v672_v19, %v680_v20 }
 0x1b2   : > { %2306 = vmatprep.subr.bf16.mxu0 %v7350_v27  ;;  %2347 = vmatprep.subr.bf16.mxu1 %v7352_v30  ;;  %v688_v27 = vld [vmem:[%s9709_s10 + $0x530] sm:$0xff]  ;;  %v7480_v29 = vcombine.high %v673_v22, %v681_v23  ;;  %v689_v30 = vld [vmem:[%s9709_s10 + $0x538] sm:$0xff] }
 0x1b3   : > { %2336 = vmatprep.mubr.bf16.mxu0 %v9765_v57  ;;  %2377 = vmatprep.mubr.bf16.mxu1 %v9765_v57  ;;  %v608_v57 = vld [vmem:[%s9709_s10 + $0x2b0] sm:$0xff]  ;;  %v7493_v40 = vcombine.low %v688_v27, %v696_v28 }
 0x1b4   : > { %v7414_v59 = vcombine.high %v608_v57, %v616_v48  ;;  %v7413_v63 = vcombine.low %v608_v57, %v616_v48  ;;  %v7509_v57 = vcombine.low %v704_v35, %v712_v36 }
 0x1b5   : > { %2307 = vmatpush1.bf16.msra.mxu0 %v7349_v31  ;;  %2348 = vmatpush1.bf16.msra.mxu1 %v7351_v32  ;;  %v697_v31 = vld [vmem:[%s9709_s10 + $0x578] sm:$0xff]  ;;  %v7477_v32 = vcombine.low %v672_v19, %v680_v20  ;;  %v8247_v19 = vld [vmem:[%s9723_s17 + $0x24] ss:$16 sps:$4 sm:$0xff]   ;;  %v8245_v20 = vld [vmem:[%s9723_s17 + $0x20] ss:$16 sps:$4 sm:$0xff]  }
 0x1b6   : > { %2308 = vmatprep.subr.bf16.mxu0 %v7366_v33  ;;  %2349 = vmatprep.subr.bf16.mxu1 %v7368_v34  ;;  %v7479_v33 = vcombine.low %v673_v22, %v681_v23  ;;  %v7494_v34 = vcombine.high %v688_v27, %v696_v28  ;;  %v7496_v37 = vcombine.high %v689_v30, %v697_v31  ;;  %v8248_v22 = vld [vmem:[%s9723_s17 + $0x28] ss:$16 sps:$4 sm:$0xff]   ;;  %v8253_v23 = vld [vmem:[%s9723_s17 + $0x44] ss:$16 sps:$4 sm:$0xff]   ;;  %v8262_v28 = vld [vmem:[%s9723_s17 + $0x6c] ss:$16 sps:$4 sm:$0xff]  }
 0x1b7   : > { %v7495_v41 = vcombine.low %v689_v30, %v697_v31  ;;  %v8259_v27 = vld [vmem:[%s9723_s17 + $0x64] ss:$16 sps:$4 sm:$0xff]   ;;  %v8268_v31 = vld [vmem:[%s9723_s17 + $0x8c] ss:$16 sps:$4 sm:$0xff]  }
 0x1b8   : > { %v8265_v30 = vld [vmem:[%s9723_s17 + $0x84] ss:$16 sps:$4 sm:$0xff]  }
 0x1b9   : > { %2309 = vmatpush1.bf16.msra.mxu0 %v7365_v39  ;;  %2350 = vmatpush1.bf16.msra.mxu1 %v7367_v42  ;;  %v713_v39 = vld [vmem:[%s9709_s10 + $0x5f8] sm:$0xff]  ;;  %v7510_v42 = vcombine.high %v704_v35, %v712_v36  ;;  %v8269_v35 = vld [vmem:[%s9723_s17 + $0xa0] ss:$16 sps:$4 sm:$0xff]  }
 0x1ba   : > { %2310 = vmatprep.subr.bf16.mxu0 %v7382_v43  ;;  %2351 = vmatprep.subr.bf16.mxu1 %v7384_v46  ;;  %v720_v43 = vld [vmem:[%s9709_s10 + $0x630] sm:$0xff]  ;;  %v7512_v45 = vcombine.high %v705_v38, %v713_v39  ;;  %v721_v46 = vld [vmem:[%s9709_s10 + $0x638] sm:$0xff]  ;;  %v7511_v48 = vcombine.low %v705_v38, %v713_v39 }
 0x1bb   : > { %v7525_v55 = vcombine.low %v720_v43, %v728_v44  ;;  %v8274_v36 = vld [vmem:[%s9723_s17 + $0xac] ss:$16 sps:$4 sm:$0xff]   ;;  %v8277_v38 = vld [vmem:[%s9723_s17 + $0xc4] ss:$16 sps:$4 sm:$0xff]  }
 0x1bd   : > { %2311 = vmatpush1.bf16.msra.mxu0 %v7381_v47  ;;  %2352 = vmatpush1.bf16.msra.mxu1 %v7383_v49  ;;  %v729_v47 = vld [vmem:[%s9709_s10 + $0x678] sm:$0xff]  ;;  %v7526_v49 = vcombine.high %v720_v43, %v728_v44 }
 0x1be   : > { %2312 = vmatprep.subr.bf16.mxu0 %v7398_v50  ;;  %2353 = vmatprep.subr.bf16.mxu1 %v7400_v53  ;;  %v736_v50 = vld [vmem:[%s9709_s10 + $0x6b0] sm:$0xff]  ;;  %v7528_v52 = vcombine.high %v721_v46, %v729_v47  ;;  %v737_v53 = vld [vmem:[%s9709_s10 + $0x6b8] sm:$0xff]  ;;  %v7527_v56 = vcombine.low %v721_v46, %v729_v47 }
 0x1bf   : > { %v7541_v0 = vcombine.low %v736_v50, %v744_v51 }
 0x1c1   : > { %2313 = vmatpush1.bf16.msra.mxu0 %v7397_v54  ;;  %2354 = vmatpush1.bf16.msra.mxu1 %v7399_v58  ;;  %v745_v54 = vld [vmem:[%s9709_s10 + $0x6f8] sm:$0xff]  ;;  %v7542_v58 = vcombine.high %v736_v50, %v744_v51 }
 0x1c2   : > { %2314 = vmatprep.subr.bf16.mxu0 %v7414_v59  ;;  %2355 = vmatprep.subr.bf16.mxu1 %v7416_v62  ;;  %v752_v59 = vld [vmem:[%s9709_s10 + $0x730] sm:$0xff]  ;;  %v7544_v61 = vcombine.high %v737_v53, %v745_v54  ;;  %v753_v62 = vld [vmem:[%s9709_s10 + $0x738] sm:$0xff]  ;;  %v7543_v1 = vcombine.low %v737_v53, %v745_v54 }
 0x1c3   : > { %v8278_v51 = vld [vmem:[%s9723_s17 + $0xc8] ss:$16 sps:$4 sm:$0xff]  }
 0x1c5   : > { %2315 = vmatpush1.bf16.msra.mxu0 %v7413_v63  ;;  %2356 = vmatpush1.bf16.msra.mxu1 %v7415_v2  ;;  %v761_v63 = vld [vmem:[%s9709_s10 + $0x778] sm:$0xff]  ;;  %v7558_v2 = vcombine.high %v752_v59, %v760_v60 }
 0x1c6   : > { %2316 = vmatprep.subr.bf16.mxu0 %v7430_v3  ;;  %2357 = vmatprep.subr.bf16.mxu1 %v7432_v6  ;;  %v768_v3 = vld [vmem:[%s9709_s10 + $0x7b0] sm:$0xff]  ;;  %v7560_v5 = vcombine.high %v753_v62, %v761_v63  ;;  %v769_v6 = vld [vmem:[%s9709_s10 + $0x7b8] sm:$0xff] }
 0x1c7   : > { %v7574_v10 = vcombine.high %v768_v3, %v776_v4 }
 0x1c9   : > { %2317 = vmatpush1.bf16.msra.mxu0 %v7429_v7  ;;  %2358 = vmatpush1.bf16.msra.mxu1 %v7431_v8  ;;  %v777_v7 = vld [vmem:[%s9709_s10 + $0x7f8] sm:$0xff]  ;;  %v7557_v8 = vcombine.low %v752_v59, %v760_v60  ;;  %v8283_v59 = vld [vmem:[%s9723_s17 + $0xe4] ss:$16 sps:$4 sm:$0xff]   ;;  %s9271_s10 = scalar_lea.vmem %s9270_s19, 1024 }
 0x1ca   : > { %2318 = vmatprep.subr.bf16.mxu0 %v7446_v9  ;;  %2359 = vmatprep.subr.bf16.mxu1 %v7448_v13  ;;  %v7559_v9 = vcombine.low %v753_v62, %v761_v63  ;;  %v7576_v11 = vcombine.high %v769_v6, %v777_v7  ;;  %v7573_v13 = vcombine.low %v768_v3, %v776_v4  ;;  %p9273_p12 = scmp.lt.s32.totalorder %s9271_s10, %s9265_s15 }
 0x1cb   : > { %v7575_v14 = vcombine.low %v769_v6, %v777_v7  ;;  %v8281_v6 = vld [vmem:[%s9723_s17 + $0xe0] ss:$16 sps:$4 sm:$0xff]  }
 0x1cc   : > { %p9274_p11 = por %p9273_p12, %p9272_p9 }
 0x1cd   : > { %2319 = vmatpush1.bf16.msra.mxu0 %v7445_v16  ;;  %2360 = vmatpush1.bf16.msra.mxu1 %v7447_v17  ;;  %v8244_v16 = vld [vmem:[%s9723_s17 + $0xc] ss:$16 sps:$4 sm:$0xff]   ;;  %v8239_v17 = vld [vmem:[%s9723_s17] ss:$16 sps:$4 sm:$0xff]  }
 0x1ce   : > { %2320 = vmatprep.subr.bf16.mxu0 %v7462_v18  ;;  %2361 = vmatprep.subr.bf16.mxu1 %v7464_v21  ;;  %v8242_v18 = vld [vmem:[%s9723_s17 + $0x8] ss:$16 sps:$4 sm:$0xff]   ;;  %v8250_v21 = vld [vmem:[%s9723_s17 + $0x2c] ss:$16 sps:$4 sm:$0xff]   ;;  %p9275_p1 = pnand %p9274_p11, %p9268_p0 }
 0x1d1   : > { %2321 = vmatpush1.bf16.msra.mxu0 %v7461_v24  ;;  %2362 = vmatpush1.bf16.msra.mxu1 %v7463_v25  ;;  %v8251_v24 = vld [vmem:[%s9723_s17 + $0x40] ss:$16 sps:$4 sm:$0xff]   ;;  %v8256_v25 = vld [vmem:[%s9723_s17 + $0x4c] ss:$16 sps:$4 sm:$0xff]  }
 0x1d2   : > { %2322 = vmatprep.subr.bf16.mxu0 %v7478_v26  ;;  %2363 = vmatprep.subr.bf16.mxu1 %v7480_v29  ;;  %v8254_v26 = vld [vmem:[%s9723_s17 + $0x48] ss:$16 sps:$4 sm:$0xff]  }
 0x1d3   : > { %v8260_v29 = vld [vmem:[%s9723_s17 + $0x68] ss:$16 sps:$4 sm:$0xff]  }
 0x1d5   : > { %2323 = vmatpush1.bf16.msra.mxu0 %v7477_v32  ;;  %2364 = vmatpush1.bf16.msra.mxu1 %v7479_v33  ;;  %v8263_v32 = vld [vmem:[%s9723_s17 + $0x80] ss:$16 sps:$4 sm:$0xff]   ;;  %v8266_v33 = vld [vmem:[%s9723_s17 + $0x88] ss:$16 sps:$4 sm:$0xff]  }
 0x1d6   : > { %2324 = vmatprep.subr.bf16.mxu0 %v7494_v34  ;;  %2365 = vmatprep.subr.bf16.mxu1 %v7496_v37  ;;  %v8271_v34 = vld [vmem:[%s9723_s17 + $0xa4] ss:$16 sps:$4 sm:$0xff]   ;;  %v8272_v37 = vld [vmem:[%s9723_s17 + $0xa8] ss:$16 sps:$4 sm:$0xff]  }
 0x1d9   : > { %2325 = vmatpush1.bf16.msra.mxu0 %v7493_v40  ;;  %2366 = vmatpush1.bf16.msra.mxu1 %v7495_v41  ;;  %v8280_v40 = vld [vmem:[%s9723_s17 + $0xcc] ss:$16 sps:$4 sm:$0xff]  }
 0x1da   : > { %2326 = vmatprep.subr.bf16.mxu0 %v7510_v42  ;;  %2367 = vmatprep.subr.bf16.mxu1 %v7512_v45  ;;  %v8275_v45 = vld [vmem:[%s9723_s17 + $0xc0] ss:$16 sps:$4 sm:$0xff]  }
 0x1dd   : > { %2327 = vmatpush1.bf16.msra.mxu0 %v7509_v57  ;;  %2368 = vmatpush1.bf16.msra.mxu1 %v7511_v48 }
 0x1de   : > { %2328 = vmatprep.subr.bf16.mxu0 %v7526_v49  ;;  %2369 = vmatprep.subr.bf16.mxu1 %v7528_v52 }
 0x1e1   : > { %2329 = vmatpush1.bf16.msra.mxu0 %v7525_v55  ;;  %2370 = vmatpush1.bf16.msra.mxu1 %v7527_v56 }
 0x1e2   : > { %2330 = vmatprep.subr.bf16.mxu0 %v7542_v58  ;;  %2371 = vmatprep.subr.bf16.mxu1 %v7544_v61 }
 0x1e5   : > { %2331 = vmatpush1.bf16.msra.mxu0 %v7541_v0  ;;  %2372 = vmatpush1.bf16.msra.mxu1 %v7543_v1  ;;  %v8286_v1 = vld [vmem:[%s9723_s17 + $0xec] ss:$16 sps:$4 sm:$0xff]  }
 0x1e6   : > { %2332 = vmatprep.subr.bf16.mxu0 %v7558_v2  ;;  %2373 = vmatprep.subr.bf16.mxu1 %v7560_v5 }
 0x1e9   : > { %2333 = vmatpush1.bf16.msra.mxu0 %v7557_v8  ;;  %2374 = vmatpush1.bf16.msra.mxu1 %v7559_v9 }
 0x1ea   : > { %2334 = vmatprep.subr.bf16.mxu0 %v7574_v10  ;;  %2375 = vmatprep.subr.bf16.mxu1 %v7576_v11 }
 0x1ed   : > { %2335 = vmatpush1.bf16.msra.mxu0 %v7573_v13  ;;  %2376 = vmatpush1.bf16.msra.mxu1 %v7575_v14 }
 0x1ee   : > { %6224 = vmatprep.subr.bf16.mxu0 %v8241_v15  ;;  %6552 = vmatprep.subr.bf16.mxu1 %v8244_v16  ;;  %v8284_v16 = vld [vmem:[%s9723_s17 + $0xe8] ss:$16 sps:$4 sm:$0xff]  }
 0x1f0   : > { %2337 = vmatmul.mubr.bf16.vlgmr.msra.gmra.mrb[12].mxu0 %v9811_v12  ;;  %2378 = vmatmul.mubr.bf16.vlgmr.msra.gmra.mrb[12].mxu1 %v9811_v12  ;;  %v8257_v12 = vld [vmem:[%s9723_s17 + $0x60] ss:$16 sps:$4 sm:$0xff]  }
 0x1f1   : > { %6225 = vmatpush1.bf16.msra.mxu0 %v8239_v17  ;;  %6553 = vmatpush1.bf16.msra.mxu1 %v8242_v18  ;;  %v8289_v17 = vld [vmem:[%s9723_s17 + $0x104] ss:$16 sps:$4 sm:$0xff]  }
 0x1f2   : > { %6226 = vmatprep.subr.bf16.mxu0 %v8247_v19  ;;  %6554 = vmatprep.subr.bf16.mxu1 %v8250_v21 }
 0x1f5   : > { %6227 = vmatpush1.bf16.msra.mxu0 %v8245_v20  ;;  %6555 = vmatpush1.bf16.msra.mxu1 %v8248_v22  ;;  %v8292_v22 = vld [vmem:[%s9723_s17 + $0x10c] ss:$16 sps:$4 sm:$0xff]  }
 0x1f6   : > { %6228 = vmatprep.subr.bf16.mxu0 %v8253_v23  ;;  %6556 = vmatprep.subr.bf16.mxu1 %v8256_v25 }
 0x1f9   : > { %6229 = vmatpush1.bf16.msra.mxu0 %v8251_v24  ;;  %6557 = vmatpush1.bf16.msra.mxu1 %v8254_v26 }
 0x1fa   : > { %6230 = vmatprep.subr.bf16.mxu0 %v8259_v27  ;;  %6558 = vmatprep.subr.bf16.mxu1 %v8262_v28 }
 0x1fd   : > { %6231 = vmatpush1.bf16.msra.mxu0 %v8257_v12  ;;  %6559 = vmatpush1.bf16.msra.mxu1 %v8260_v29 }
 0x1fe   : > { %6232 = vmatprep.subr.bf16.mxu0 %v8265_v30  ;;  %6560 = vmatprep.subr.bf16.mxu1 %v8268_v31  ;;  %v8287_v30 = vld [vmem:[%s9723_s17 + $0x100] ss:$16 sps:$4 sm:$0xff]  }
 0x201   : > { %6233 = vmatpush1.bf16.msra.mxu0 %v8263_v32  ;;  %6561 = vmatpush1.bf16.msra.mxu1 %v8266_v33 }
 0x202   : > { %6234 = vmatprep.subr.bf16.mxu0 %v8271_v34  ;;  %6562 = vmatprep.subr.bf16.mxu1 %v8274_v36  ;;  %v8295_v36 = vld [vmem:[%s9723_s17 + $0x124] ss:$16 sps:$4 sm:$0xff]  }
 0x203   : > { %v10038_v39 = vpop.f32.mrb[0].mxu0  ;;  %v10044_v43 = vpop.f32.mrb[0].mxu1 }
 0x204   : > { %v2386_v41 = vrot.slane %v10038_v39, 4  ;;  %v2498_v42 = vmul.f32 %v10038_v39, %v10038_v39  ;;  %v10046_v44 = vpop.f32.mrb[1].mxu0  ;;  %v2398_v46 = vrot.slane %v10044_v43, 4  ;;  %v2500_v47 = vmul.f32 %v10044_v43, %v10044_v43  ;;  %v10055_v49 = vpop.f32.mrb[1].mxu1 }
 0x205   : > { %v2392_v57 = vrot.slane %v10046_v44, 4  ;;  %v2499_v48 = vmul.f32 %v10046_v44, %v10046_v44  ;;  %v2096_v50 = vpop.f32.mrb[2].mxu0  ;;  %6235 = vmatpush1.bf16.msra.mxu0 %v8269_v35  ;;  %v2404_v54 = vrot.slane %v10055_v49, 4  ;;  %v2501_v55 = vmul.f32 %v10055_v49, %v10055_v49  ;;  %v2137_v56 = vpop.f32.mrb[2].mxu1  ;;  %6563 = vmatpush1.bf16.msra.mxu1 %v8272_v37  ;;  %v8290_v35 = vld [vmem:[%s9723_s17 + $0x108] ss:$16 sps:$4 sm:$0xff]  }
 0x206   : > { %v2387_v52 = vadd.f32 %v2386_v41, %v10038_v39  ;;  %v2514_v53 = vrot.slane %v2498_v42, 4  ;;  %v2097_v58 = vpop.f32.mrb[3].mxu0  ;;  %6236 = vmatprep.subr.bf16.mxu0 %v8277_v38  ;;  %v2399_v60 = vadd.f32 %v2398_v46, %v10044_v43  ;;  %v2526_v61 = vrot.slane %v2500_v47, 4  ;;  %v2138_v0 = vpop.f32.mrb[3].mxu1  ;;  %6564 = vmatprep.subr.bf16.mxu1 %v8280_v40 }
 0x207   : > { %v2393_v62 = vadd.f32 %v2392_v57, %v10046_v44  ;;  %v2520_v63 = vrot.slane %v2499_v48, 4  ;;  %v2405_v4 = vadd.f32 %v2404_v54, %v10055_v49  ;;  %v2532_v5 = vrot.slane %v2501_v55, 4 }
 0x208   : > { %v2388_v2 = vrot.slane %v2387_v52, 2  ;;  %v2515_v3 = vadd.f32 %v2514_v53, %v2498_v42  ;;  %v2400_v7 = vrot.slane %v2399_v60, 2  ;;  %v2527_v8 = vadd.f32 %v2526_v61, %v2500_v47  ;;  %v8298_v42 = vld [vmem:[%s9723_s17 + $0x12c] ss:$16 sps:$4 sm:$0xff]   ;;  %v8293_v53 = vld [vmem:[%s9723_s17 + $0x120] ss:$16 sps:$4 sm:$0xff]  }
 0x209   : > { %v2394_v9 = vrot.slane %v2393_v62, 2  ;;  %v2521_v10 = vadd.f32 %v2520_v63, %v2499_v48  ;;  %6237 = vmatpush1.bf16.msra.mxu0 %v8275_v45  ;;  %v2406_v14 = vrot.slane %v2405_v4, 2  ;;  %v2533_v15 = vadd.f32 %v2532_v5, %v2501_v55  ;;  %6565 = vmatpush1.bf16.msra.mxu1 %v8278_v51 }
 0x20a   : > { %v2389_v11 = vadd.f32 %v2388_v2, %v2387_v52  ;;  %v2516_v13 = vrot.slane %v2515_v3, 2  ;;  %6238 = vmatprep.subr.bf16.mxu0 %v8283_v59  ;;  %v2401_v18 = vadd.f32 %v2400_v7, %v2399_v60  ;;  %v2528_v19 = vrot.slane %v2527_v8, 2  ;;  %6566 = vmatprep.subr.bf16.mxu1 %v8286_v1  ;;  %v8296_v59 = vld [vmem:[%s9723_s17 + $0x128] ss:$16 sps:$4 sm:$0xff]   ;;  %v8301_v60 = vld [vmem:[%s9723_s17 + $0x144] ss:$16 sps:$4 sm:$0xff]  }
 0x20b   : > { %v2395_v20 = vadd.f32 %v2394_v9, %v2393_v62  ;;  %v2522_v21 = vrot.slane %v2521_v10, 2  ;;  %v2407_v25 = vadd.f32 %v2406_v14, %v2405_v4  ;;  %v2534_v26 = vrot.slane %v2533_v15, 2  ;;  %v8304_v1 = vld [vmem:[%s9723_s17 + $0x14c] ss:$16 sps:$4 sm:$0xff]  }
 0x20c   : > { %v2390_v23 = vrot.slane %v2389_v11, 1  ;;  %v2517_v24 = vadd.f32 %v2516_v13, %v2515_v3  ;;  %v2402_v27 = vrot.slane %v2401_v18, 1  ;;  %v2529_v12 = vadd.f32 %v2528_v19, %v2527_v8  ;;  %v8299_v8 = vld [vmem:[%s9723_s17 + $0x140] ss:$16 sps:$4 sm:$0xff]   ;;  %v8307_v13 = vld [vmem:[%s9723_s17 + $0x164] ss:$16 sps:$4 sm:$0xff]  }
 0x20d   : > { %v2396_v28 = vrot.slane %v2395_v20, 1  ;;  %v2523_v29 = vadd.f32 %v2522_v21, %v2521_v10  ;;  %6239 = vmatpush1.bf16.msra.mxu0 %v8281_v6  ;;  %v2408_v33 = vrot.slane %v2407_v25, 1  ;;  %v2535_v34 = vadd.f32 %v2534_v26, %v2533_v15  ;;  %6567 = vmatpush1.bf16.msra.mxu1 %v8284_v16  ;;  %v8310_v16 = vld [vmem:[%s9723_s17 + $0x16c] ss:$16 sps:$4 sm:$0xff]  }
 0x20e   : > { %v2391_v31 = vadd.f32 %v2390_v23, %v2389_v11  ;;  %v2518_v32 = vrot.slane %v2517_v24, 1  ;;  %6240 = vmatprep.subr.bf16.mxu0 %v8289_v17  ;;  %v2403_v37 = vadd.f32 %v2402_v27, %v2401_v18  ;;  %v2530_v38 = vrot.slane %v2529_v12, 1  ;;  %6568 = vmatprep.subr.bf16.mxu1 %v8292_v22  ;;  %v8302_v11 = vld [vmem:[%s9723_s17 + $0x148] ss:$16 sps:$4 sm:$0xff]   ;;  %v8305_v22 = vld [vmem:[%s9723_s17 + $0x160] ss:$16 sps:$4 sm:$0xff]  }
 0x20f   : > { %v2397_v40 = vadd.f32 %v2396_v28, %v2395_v20  ;;  %v2524_v41 = vrot.slane %v2523_v29, 1  ;;  %v2409_v47 = vadd.f32 %v2408_v33, %v2407_v25  ;;  %v2536_v57 = vrot.slane %v2535_v34, 1  ;;  %v8313_v25 = vld [vmem:[%s9723_s17 + $0x184] ss:$16 sps:$4 sm:$0xff]   ;;  %v8316_v26 = vld [vmem:[%s9723_s17 + $0x18c] ss:$16 sps:$4 sm:$0xff]  }
 0x210   : > { %v10075_v45 = vmul.f32 0.125, %v2391_v31  ;;  %v2519_v46 = vadd.f32 %v2518_v32, %v2517_v24  ;;  %v10077_v48 = vmul.f32 0.125, %v2403_v37  ;;  %v2531_v50 = vadd.f32 %v2530_v38, %v2529_v12  ;;  %v8308_v24 = vld [vmem:[%s9723_s17 + $0x168] ss:$16 sps:$4 sm:$0xff]   ;;  %v10107_v27 = vld [vmem:[%s421_s23] sm:$0xff] }
 0x211   : > { %v10079_v51 = vmul.f32 0.125, %v2397_v40  ;;  %v2525_v52 = vadd.f32 %v2524_v41, %v2523_v29  ;;  %6241 = vmatpush1.bf16.msra.mxu0 %v8287_v30  ;;  %v10084_v56 = vmul.f32 0.125, %v2409_v47  ;;  %v2537_v58 = vadd.f32 %v2536_v57, %v2535_v34  ;;  %6569 = vmatpush1.bf16.msra.mxu1 %v8290_v35  ;;  %v8311_v29 = vld [vmem:[%s9723_s17 + $0x180] ss:$16 sps:$4 sm:$0xff]   ;;  %v8314_v30 = vld [vmem:[%s9723_s17 + $0x188] ss:$16 sps:$4 sm:$0xff]  }
 0x212   : > { %v2610_v54 = vmul.f32 0.125, %v2519_v46  ;;  %v2626_v55 = vmul.f32 %v10075_v45, %v10075_v45  ;;  %6242 = vmatprep.subr.bf16.mxu0 %v8295_v36  ;;  %v2612_v61 = vmul.f32 0.125, %v2531_v50  ;;  %v2628_v62 = vmul.f32 %v10077_v48, %v10077_v48  ;;  %6570 = vmatprep.subr.bf16.mxu1 %v8298_v42  ;;  %v8319_v31 = vld [vmem:[%s9723_s17 + $0x1a4] ss:$16 sps:$4 sm:$0xff]   ;;  %v8322_v33 = vld [vmem:[%s9723_s17 + $0x1ac] ss:$16 sps:$4 sm:$0xff]  }
 0x213   : > { %v2611_v63 = vmul.f32 0.125, %v2525_v52  ;;  %v2627_v0 = vmul.f32 %v10079_v51, %v10079_v51  ;;  %v2710_v3 = vlaneseq  ;;  %v2613_v4 = vmul.f32 0.125, %v2537_v58  ;;  %v8317_v38 = vld [vmem:[%s9723_s17 + $0x1a0] ss:$16 sps:$4 sm:$0xff]   ;;  %v8320_v41 = vld [vmem:[%s9723_s17 + $0x1a8] ss:$16 sps:$4 sm:$0xff]  }
 0x214   : > { %v2642_v2 = vsub.f32 %v2610_v54, %v2626_v55  ;;  %v2629_v5 = vmul.f32 %v10084_v56, %v10084_v56  ;;  %v2644_v6 = vsub.f32 %v2612_v61, %v2628_v62  ;;  %v9356_v36 = vmov 1966171168   ;;  %v8325_v42 = vld [vmem:[%s9723_s17 + $0x1c4] ss:$16 sps:$4 sm:$0xff]   ;;  %v8328_v47 = vld [vmem:[%s9723_s17 + $0x1cc] ss:$16 sps:$4 sm:$0xff]  }
 0x215   : > { %v2643_v7 = vsub.f32 %v2611_v63, %v2627_v0  ;;  %6243 = vmatpush1.bf16.msra.mxu0 %v8293_v53  ;;  %6571 = vmatpush1.bf16.msra.mxu1 %v8296_v59  ;;  %v10099_v18 = vshrl.u32 %v2710_v3, 7  ;;  %v2845_v37 = vunpack.c.l.s4 %v9356_v36  ;;  %v8323_v55 = vld [vmem:[%s9723_s17 + $0x1c0] ss:$16 sps:$4 sm:$0xff]   ;;  %v8331_v61 = vld [vmem:[%s9723_s17 + $0x1e4] ss:$16 sps:$4 sm:$0xff]  }
 0x216   : > { %v2658_v9 = vmax.f32 %v2642_v2, 0.0  ;;  %v2645_v10 = vsub.f32 %v2613_v4, %v2629_v5  ;;  %6244 = vmatprep.subr.bf16.mxu0 %v8301_v60  ;;  %v2660_v14 = vmax.f32 %v2644_v6, 0.0  ;;  %6572 = vmatprep.subr.bf16.mxu1 %v8304_v1  ;;  %v8326_v60 = vld [vmem:[%s9723_s17 + $0x1c8] ss:$16 sps:$4 sm:$0xff]   ;;  %v8334_v1 = vld [vmem:[%s9723_s17 + $0x1ec] ss:$16 sps:$4 sm:$0xff]  }
 0x217   : > { %v2659_v15 = vmax.f32 %v2643_v7, 0.0  ;;  %v10110_v12 = vsub.s32 0, %v10099_v18  ;;  %v10113_v28 = vsub.s32 2, %v10099_v18  ;;  %v10119_v32 = vsub.s32 1, %v10099_v18 }
 0x218   : > { %v2674_v17 = vadd.f32 1e-05, %v2658_v9  ;;  %v2661_v19 = vmax.f32 %v2645_v10, 0.0  ;;  %v2676_v20 = vadd.f32 1e-05, %v2660_v14  ;;  %v10123_v34 = vsub.s32 3, %v10099_v18 }
 0x219   : > { %v2675_v21 = vadd.f32 1e-05, %v2659_v15  ;;  %6245 = vmatpush1.bf16.msra.mxu0 %v8299_v8  ;;  %6573 = vmatpush1.bf16.msra.mxu1 %v8302_v11  ;;  %v2713_v35 = vrot.slane %v10107_v27, %v10110_v12  ;;  %v2721_v40 = vrot.slane %v10107_v27, %v10113_v28  ;;  %v2717_v46 = vrot.slane %v10107_v27, %v10119_v32  ;;  %v8337_v9 = vld [vmem:[%s9723_s17 + $0x204] ss:$16 sps:$4 sm:$0xff]   ;;  %v8340_v11 = vld [vmem:[%s9723_s17 + $0x20c] ss:$16 sps:$4 sm:$0xff]  }
 0x21a   : > { %9007 = vrsqrt.f32 %v2674_v17  ;;  %v2677_v23 = vadd.f32 1e-05, %v2661_v19  ;;  %6246 = vmatprep.subr.bf16.mxu0 %v8307_v13  ;;  %6574 = vmatprep.subr.bf16.mxu1 %v8310_v16  ;;  %v2725_v50 = vrot.slane %v10107_v27, %v10123_v34  ;;  %v2846_v54 = vunpack.c.0.s8 %v2845_v37 }
 0x21b   : > { %9009 = vrsqrt.f32 %v2676_v20 }
 0x21c   : > { %9011 = vrsqrt.f32 %v2675_v21  ;;  %v10152_v5 = vsub.s32 %v2846_v54, %v10099_v18 }
 0x21d   : > { %9013 = vrsqrt.f32 %v2677_v23  ;;  %6247 = vmatpush1.bf16.msra.mxu0 %v8305_v22  ;;  %6575 = vmatpush1.bf16.msra.mxu1 %v8308_v24 }
 0x21e   : > { %6248 = vmatprep.subr.bf16.mxu0 %v8313_v25  ;;  %6576 = vmatprep.subr.bf16.mxu1 %v8316_v26 }
 0x221   : > { %6249 = vmatpush1.bf16.msra.mxu0 %v8311_v29  ;;  %6577 = vmatpush1.bf16.msra.mxu1 %v8314_v30 }
 0x222   : > { %6250 = vmatprep.subr.bf16.mxu0 %v8319_v31  ;;  %6578 = vmatprep.subr.bf16.mxu1 %v8322_v33 }
 0x224   : > { %v9008_v57 = vpop.eup %9007 }
 0x225   : > { %v9010_v52 = vpop.eup %9009  ;;  %v10137_v53 = vmul.f32 %v9008_v57, %v2713_v35  ;;  %6251 = vmatpush1.bf16.msra.mxu0 %v8317_v38  ;;  %6579 = vmatpush1.bf16.msra.mxu1 %v8320_v41 }
 0x226   : > { %v9012_v58 = vpop.eup %9011  ;;  %v2792_v59 = vmul.f32 %v9010_v52, %v2721_v40  ;;  %6252 = vmatprep.subr.bf16.mxu0 %v8325_v42  ;;  %6580 = vmatprep.subr.bf16.mxu1 %v8328_v47 }
 0x227   : > { %v9014_v62 = vpop.eup %9013  ;;  %v2808_v63 = vmul.f32 %v10137_v53, %v10075_v45  ;;  %v10144_v0 = vmul.f32 %v9012_v58, %v2717_v46  ;;  %v8329_v45 = vld [vmem:[%s9723_s17 + $0x1e0] ss:$16 sps:$4 sm:$0xff]  }
 0x228   : > { %v2810_v2 = vmul.f32 %v2792_v59, %v10077_v48  ;;  %v2953_v3 = vrot.slane %v2792_v59, %v10110_v12  ;;  %v10149_v4 = vmul.f32 %v9014_v62, %v2725_v50  ;;  %v8332_v48 = vld [vmem:[%s9723_s17 + $0x1e8] ss:$16 sps:$4 sm:$0xff]  }
 0x229   : > { %v2809_v6 = vmul.f32 %v10144_v0, %v10079_v51  ;;  %6253 = vmatpush1.bf16.msra.mxu0 %v8323_v55  ;;  %6581 = vmatpush1.bf16.msra.mxu1 %v8326_v60 }
 0x22a   : > { %v10158_v7 = vmul.f32 %v2953_v3, %v10044_v43  ;;  %v2811_v8 = vmul.f32 %v10149_v4, %v10084_v56  ;;  %6254 = vmatprep.subr.bf16.mxu0 %v8331_v61  ;;  %6582 = vmatprep.subr.bf16.mxu1 %v8334_v1 }
 0x22b   : > { %v2840_v10 = vcombine.low %v2808_v63, %v2809_v6 }
 0x22c   : > { %v2841_v13 = vcombine.low %v2810_v2, %v2811_v8 }
 0x22d   : > { %v10166_v14 = vrot.slane %v2840_v10, %v10152_v5  ;;  %6255 = vmatpush1.bf16.msra.mxu0 %v8329_v45  ;;  %6583 = vmatpush1.bf16.msra.mxu1 %v8332_v48 }
 0x22e   : > { %v10169_v51 = vrot.slane %v2841_v13, %v10152_v5  ;;  %6265 = vmatprep.subr.bf16.mxu0 %v8337_v9  ;;  %6593 = vmatprep.subr.bf16.mxu1 %v8340_v11 }
 0x230   : > { %v2872_v43 = vcombine.low %v10166_v14, %v10169_v51 }
 0x243   : > { %v10173_v56 = vpop.f32.mrb[4].mxu0  ;;  %v10178_v17 = vpop.f32.mrb[4].mxu1 }
 0x244   : > { %v2410_v15 = vrot.slane %v10173_v56, 4  ;;  %v2502_v16 = vmul.f32 %v10173_v56, %v10173_v56  ;;  %v10180_v19 = vpop.f32.mrb[5].mxu0  ;;  %v2422_v20 = vrot.slane %v10178_v17, 4  ;;  %v2504_v21 = vmul.f32 %v10178_v17, %v10178_v17  ;;  %v10188_v24 = vpop.f32.mrb[5].mxu1 }
 0x245   : > { %v2416_v22 = vrot.slane %v10180_v19, 4  ;;  %v2503_v23 = vmul.f32 %v10180_v19, %v10180_v19  ;;  %v2178_v25 = vpop.f32.mrb[6].mxu0  ;;  %v2428_v30 = vrot.slane %v10188_v24, 4  ;;  %v2505_v31 = vmul.f32 %v10188_v24, %v10188_v24  ;;  %v2219_v33 = vpop.f32.mrb[6].mxu1 }
 0x246   : > { %v2411_v26 = vadd.f32 %v2410_v15, %v10173_v56  ;;  %v2538_v29 = vrot.slane %v2502_v16, 4  ;;  %v2179_v35 = vpop.f32.mrb[7].mxu0  ;;  %v2423_v36 = vadd.f32 %v2422_v20, %v10178_v17  ;;  %v2550_v37 = vrot.slane %v2504_v21, 4  ;;  %v2220_v41 = vpop.f32.mrb[7].mxu1 }
 0x247   : > { %v2417_v38 = vadd.f32 %v2416_v22, %v10180_v19  ;;  %v2544_v40 = vrot.slane %v2503_v23, 4  ;;  %v2429_v47 = vadd.f32 %v2428_v30, %v10188_v24  ;;  %v2556_v57 = vrot.slane %v2505_v31, 4 }
 0x248   : > { %v2412_v42 = vrot.slane %v2411_v26, 2  ;;  %v2539_v46 = vadd.f32 %v2538_v29, %v2502_v16  ;;  %v2424_v50 = vrot.slane %v2423_v36, 2  ;;  %v2551_v52 = vadd.f32 %v2550_v37, %v2504_v21 }
 0x249   : > { %v2418_v54 = vrot.slane %v2417_v38, 2  ;;  %v2545_v55 = vadd.f32 %v2544_v40, %v2503_v23  ;;  %v2430_v60 = vrot.slane %v2429_v47, 2  ;;  %v2557_v61 = vadd.f32 %v2556_v57, %v2505_v31 }
 0x24a   : > { %v2413_v58 = vadd.f32 %v2412_v42, %v2411_v26  ;;  %v2540_v59 = vrot.slane %v2539_v46, 2  ;;  %v2425_v62 = vadd.f32 %v2424_v50, %v2423_v36  ;;  %v2552_v63 = vrot.slane %v2551_v52, 2 }
 0x24b   : > { %v2419_v1 = vadd.f32 %v2418_v54, %v2417_v38  ;;  %v2546_v2 = vrot.slane %v2545_v55, 2  ;;  %v2431_v45 = vadd.f32 %v2430_v60, %v2429_v47  ;;  %v2558_v8 = vrot.slane %v2557_v61, 2 }
 0x24c   : > { %v2414_v3 = vrot.slane %v2413_v58, 1  ;;  %v2541_v6 = vadd.f32 %v2540_v59, %v2539_v46  ;;  %v2426_v48 = vrot.slane %v2425_v62, 1  ;;  %v2553_v9 = vadd.f32 %v2552_v63, %v2551_v52 }
 0x24d   : > { %v2420_v10 = vrot.slane %v2419_v1, 1  ;;  %v2547_v11 = vadd.f32 %v2546_v2, %v2545_v55  ;;  %v2432_v16 = vrot.slane %v2431_v45, 1  ;;  %v2559_v20 = vadd.f32 %v2558_v8, %v2557_v61 }
 0x24e   : > { %v2415_v13 = vadd.f32 %v2414_v3, %v2413_v58  ;;  %v2542_v15 = vrot.slane %v2541_v6, 1  ;;  %v2427_v21 = vadd.f32 %v2426_v48, %v2425_v62  ;;  %v2554_v22 = vrot.slane %v2553_v9, 1 }
 0x24f   : > { %v2421_v23 = vadd.f32 %v2420_v10, %v2419_v1  ;;  %v2548_v25 = vrot.slane %v2547_v11, 1  ;;  %v2433_v30 = vadd.f32 %v2432_v16, %v2431_v45  ;;  %v2560_v31 = vrot.slane %v2559_v20, 1 }
 0x250   : > { %v2486_v26 = vmul.f32 0.125, %v2415_v13  ;;  %v2543_v29 = vadd.f32 %v2542_v15, %v2541_v6  ;;  %v2488_v33 = vmul.f32 0.125, %v2427_v21  ;;  %v2555_v35 = vadd.f32 %v2554_v22, %v2553_v9 }
 0x251   : > { %v2487_v36 = vmul.f32 0.125, %v2421_v23  ;;  %v2549_v37 = vadd.f32 %v2548_v25, %v2547_v11  ;;  %v2489_v41 = vmul.f32 0.125, %v2433_v30  ;;  %v2561_v42 = vadd.f32 %v2560_v31, %v2559_v20 }
 0x252   : > { %v2614_v38 = vmul.f32 0.125, %v2543_v29  ;;  %v2630_v40 = vmul.f32 %v2486_v26, %v2486_v26  ;;  %v2616_v46 = vmul.f32 0.125, %v2555_v35  ;;  %v2632_v47 = vmul.f32 %v2488_v33, %v2488_v33 }
 0x253   : > { %v2615_v57 = vmul.f32 0.125, %v2549_v37  ;;  %v2631_v50 = vmul.f32 %v2487_v36, %v2487_v36  ;;  %v2617_v54 = vmul.f32 0.125, %v2561_v42  ;;  %v2633_v55 = vmul.f32 %v2489_v41, %v2489_v41 }
 0x254   : > { %v2646_v52 = vsub.f32 %v2614_v38, %v2630_v40  ;;  %v2648_v58 = vsub.f32 %v2616_v46, %v2632_v47  ;;  %v10198_v8 = vsub.s32 4, %v10099_v18  ;;  %v10201_v48 = vsub.s32 6, %v10099_v18 }
 0x255   : > { %v2647_v59 = vsub.f32 %v2615_v57, %v2631_v50  ;;  %v2649_v61 = vsub.f32 %v2617_v54, %v2633_v55  ;;  %v10204_v9 = vsub.s32 5, %v10099_v18  ;;  %v10207_v10 = vsub.s32 7, %v10099_v18 }
 0x256   : > { %v2662_v60 = vmax.f32 %v2646_v52, 0.0  ;;  %v2664_v62 = vmax.f32 %v2648_v58, 0.0  ;;  %v2729_v11 = vrot.slane %v10107_v27, %v10198_v8  ;;  %v2737_v13 = vrot.slane %v10107_v27, %v10201_v48  ;;  %v2806_v58 = vld [vmem:[%s430_s3] sm:$0xff] }
 0x257   : > { %v2663_v63 = vmax.f32 %v2647_v59, 0.0  ;;  %v2665_v2 = vmax.f32 %v2649_v61, 0.0  ;;  %v2733_v15 = vrot.slane %v10107_v27, %v10204_v9  ;;  %v2741_v20 = vrot.slane %v10107_v27, %v10207_v10 }
 0x258   : > { %v2678_v1 = vadd.f32 1e-05, %v2662_v60  ;;  %v2680_v3 = vadd.f32 1e-05, %v2664_v62 }
 0x259   : > { %v2679_v6 = vadd.f32 1e-05, %v2663_v63  ;;  %v2681_v45 = vadd.f32 1e-05, %v2665_v2 }
 0x25a   : > { %9015 = vrsqrt.f32 %v2678_v1 }
 0x25b   : > { %9017 = vrsqrt.f32 %v2680_v3 }
 0x25c   : > { %9019 = vrsqrt.f32 %v2679_v6 }
 0x25d   : > { %9021 = vrsqrt.f32 %v2681_v45 }
 0x264   : > { %v9016_v16 = vpop.eup %9015 }
 0x265   : > { %v9018_v21 = vpop.eup %9017  ;;  %v2794_v22 = vmul.f32 %v9016_v16, %v2729_v11 }
 0x266   : > { %v9020_v23 = vpop.eup %9019  ;;  %v2796_v25 = vmul.f32 %v9018_v21, %v2737_v13 }
 0x267   : > { %v9022_v29 = vpop.eup %9021  ;;  %v2812_v18 = vmul.f32 %v2794_v22, %v2486_v26  ;;  %v2961_v30 = vrot.slane %v2794_v22, %v10110_v12  ;;  %v2795_v31 = vmul.f32 %v9020_v23, %v2733_v15  ;;  %v8335_v22 = vld [vmem:[%s9723_s17 + $0x200] ss:$16 sps:$4 sm:$0xff]   ;;  %v8338_v23 = vld [vmem:[%s9723_s17 + $0x208] ss:$16 sps:$4 sm:$0xff]  }
 0x268   : > { %v2814_v35 = vmul.f32 %v2796_v25, %v2488_v33  ;;  %v2969_v37 = vrot.slane %v2796_v25, %v10110_v12  ;;  %v2797_v38 = vmul.f32 %v9022_v29, %v2741_v20  ;;  %v8343_v25 = vld [vmem:[%s9723_s17 + $0x224] ss:$16 sps:$4 sm:$0xff]   ;;  %v8346_v29 = vld [vmem:[%s9723_s17 + $0x22c] ss:$16 sps:$4 sm:$0xff]  }
 0x269   : > { %v3010_v40 = vmul.f32 %v2961_v30, %v10173_v56  ;;  %v2813_v42 = vmul.f32 %v2795_v31, %v2487_v36  ;;  %v2965_v46 = vrot.slane %v2795_v31, %v10110_v12  ;;  %v2880_v36 = vrot.slane %v2872_v43, %v10152_v5  ;;  %v8341_v30 = vld [vmem:[%s9723_s17 + $0x220] ss:$16 sps:$4 sm:$0xff]   ;;  %v8344_v31 = vld [vmem:[%s9723_s17 + $0x228] ss:$16 sps:$4 sm:$0xff]  }
 0x26a   : > { %v3012_v27 = vmul.f32 %v2969_v37, %v10178_v17  ;;  %v2815_v47 = vmul.f32 %v2797_v38, %v2489_v41  ;;  %v2973_v57 = vrot.slane %v2797_v38, %v10110_v12  ;;  %v2945_v41 = vrot.slane %v10137_v53, %v10110_v12  ;;  %v8352_v37 = vld [vmem:[%s9723_s17 + $0x24c] ss:$16 sps:$4 sm:$0xff]  }
 0x26b   : > { %v2842_v50 = vcombine.low %v2812_v18, %v2813_v42  ;;  %v3011_v26 = vmul.f32 %v2965_v46, %v10180_v19  ;;  %v2949_v19 = vrot.slane %v10144_v0, %v10110_v12 }
 0x26c   : > { %v2843_v52 = vcombine.low %v2814_v35, %v2815_v47  ;;  %v3013_v33 = vmul.f32 %v2973_v57, %v10188_v24  ;;  %v2957_v24 = vrot.slane %v10149_v4, %v10110_v12  ;;  %v3006_v61 = vmul.f32 %v2945_v41, %v10038_v39  ;;  %v8349_v35 = vld [vmem:[%s9723_s17 + $0x244] ss:$16 sps:$4 sm:$0xff]   ;;  %v8350_v57 = vld [vmem:[%s9723_s17 + $0x248] ss:$16 sps:$4 sm:$0xff]  }
 0x26d   : > { %v2864_v54 = vrot.slane %v2842_v50, %v10152_v5  ;;  %v3007_v14 = vmul.f32 %v2949_v19, %v10046_v44 }
 0x26e   : > { %v2871_v55 = vrot.slane %v2843_v52, %v10152_v5  ;;  %v3009_v51 = vmul.f32 %v2957_v24, %v10055_v49 }
 0x270   : > { %v2873_v56 = vcombine.low %v2864_v54, %v2871_v55 }
 0x272   : > { %v2887_v17 = vrot.slane %v2873_v56, %v10152_v5  ;;  %v8355_v56 = vld [vmem:[%s9723_s17 + $0x264] ss:$16 sps:$4 sm:$0xff]  }
 0x274   : > { %v2888_v59 = vcombine.low %v2880_v36, %v2887_v17 }
 0x276   : > { %v2940_v60 = vsub.f32 %v2806_v58, %v2888_v59  ;;  %v8358_v59 = vld [vmem:[%s9723_s17 + $0x26c] ss:$16 sps:$4 sm:$0xff]  }
 0x278   : > { %v3031_v43 = vrot.slane %v2940_v60, %v10119_v32  ;;  %v3027_v53 = vrot.slane %v2940_v60, %v10110_v12  ;;  %v3039_v62 = vrot.slane %v2940_v60, %v10123_v34  ;;  %v3035_v0 = vrot.slane %v2940_v60, %v10113_v28 }
 0x279   : > { %v3047_v4 = vrot.slane %v2940_v60, %v10204_v9  ;;  %v3043_v63 = vrot.slane %v2940_v60, %v10198_v8  ;;  %v3055_v39 = vrot.slane %v2940_v60, %v10207_v10  ;;  %v3051_v44 = vrot.slane %v2940_v60, %v10201_v48 }
 0x27a   : > { %v3105_v1 = vadd.f32 %v3031_v43, %v3007_v14  ;;  %v3104_v49 = vadd.f32 %v3027_v53, %v3006_v61  ;;  %v3107_v2 = vadd.f32 %v3039_v62, %v3009_v51  ;;  %v10252_v3 = vadd.f32 %v3035_v0, %v10158_v7 }
 0x27b   : > { %v10254_v6 = vadd.f32 %v3047_v4, %v3011_v26  ;;  %v10256_v45 = vadd.f32 %v3043_v63, %v3010_v40  ;;  %v10258_v11 = vadd.f32 %v3055_v39, %v3013_v33  ;;  %v10260_v13 = vadd.f32 %v3051_v44, %v3012_v27  ;;  %v8347_v40 = vld [vmem:[%s9723_s17 + $0x240] ss:$16 sps:$4 sm:$0xff]  }
 0x27c   : > { %v3121_v15 = vmax.f32 %v3105_v1, 0.0  ;;  %v3120_v16 = vmax.f32 %v3104_v49, 0.0  ;;  %v3123_v20 = vmax.f32 %v3107_v2, 0.0  ;;  %v8353_v49 = vld [vmem:[%s9723_s17 + $0x260] ss:$16 sps:$4 sm:$0xff]  }
 0x27d   : > { %v8356_v2 = vld [vmem:[%s9723_s17 + $0x268] ss:$16 sps:$4 sm:$0xff]  }
 0x27e   : > { %v3137_v21 = vpack.c.bf16 %v3121_v15, %v3121_v15  ;;  %v3136_v7 = vpack.c.bf16 %v3120_v16, %v3120_v16  ;;  %v3139_v18 = vpack.c.bf16 %v3123_v20, %v3123_v20 }
 0x280   : > { %6256 = vmatprep.mubr.bf16.mxu0 %v3137_v21  ;;  %6584 = vmatprep.mubr.bf16.mxu1 %v3137_v21 }
 0x281   : > { %6257 = vmatmul.mubr.bf16.vlgmr.msra.gmra.mrb[16].mxu0 %v3136_v7  ;;  %6585 = vmatmul.mubr.bf16.vlgmr.msra.gmra.mrb[16].mxu1 %v3136_v7 }
 0x282   : > { %6266 = vmatpush1.bf16.msra.mxu0 %v8335_v22  ;;  %6594 = vmatpush1.bf16.msra.mxu1 %v8338_v23  ;;  %v8361_v22 = vld [vmem:[%s9723_s17 + $0x284] ss:$16 sps:$4 sm:$0xff]   ;;  %v8364_v23 = vld [vmem:[%s9723_s17 + $0x28c] ss:$16 sps:$4 sm:$0xff]  }
 0x283   : > { %6297 = vmatprep.mubr.bf16.mxu0 %v3139_v18  ;;  %6625 = vmatprep.mubr.bf16.mxu1 %v3139_v18  ;;  %v10270_v38 = vpop.f32.mrb[8].mxu0  ;;  %v10276_v27 = vpop.f32.mrb[8].mxu1 }
 0x284   : > { %6267 = vmatprep.subr.bf16.mxu0 %v8343_v25  ;;  %6595 = vmatprep.subr.bf16.mxu1 %v8346_v29  ;;  %v2434_v42 = vrot.slane %v10270_v38, 4  ;;  %v2506_v46 = vmul.f32 %v10270_v38, %v10270_v38  ;;  %v10278_v47 = vpop.f32.mrb[9].mxu0  ;;  %v2446_v50 = vrot.slane %v10276_v27, 4  ;;  %v2508_v26 = vmul.f32 %v10276_v27, %v10276_v27  ;;  %v10287_v54 = vpop.f32.mrb[9].mxu1 }
 0x285   : > { %v2440_v52 = vrot.slane %v10278_v47, 4  ;;  %v2507_v33 = vmul.f32 %v10278_v47, %v10278_v47  ;;  %v2260_v55 = vpop.f32.mrb[10].mxu0  ;;  %v2452_v41 = vrot.slane %v10287_v54, 4  ;;  %v2509_v19 = vmul.f32 %v10287_v54, %v10287_v54  ;;  %v2301_v24 = vpop.f32.mrb[10].mxu1 }
 0x286   : > { %6268 = vmatpush1.bf16.msra.mxu0 %v8341_v30  ;;  %6596 = vmatpush1.bf16.msra.mxu1 %v8344_v31  ;;  %v2435_v36 = vadd.f32 %v2434_v42, %v10270_v38  ;;  %v2562_v17 = vrot.slane %v2506_v46, 4  ;;  %v2261_v58 = vpop.f32.mrb[11].mxu0  ;;  %v2447_v60 = vadd.f32 %v2446_v50, %v10276_v27  ;;  %v2574_v61 = vrot.slane %v2508_v26, 4  ;;  %v2302_v43 = vpop.f32.mrb[11].mxu1  ;;  %v8359_v50 = vld [vmem:[%s9723_s17 + $0x280] ss:$16 sps:$4 sm:$0xff]  }
 0x287   : > { %6269 = vmatprep.subr.bf16.mxu0 %v8349_v35  ;;  %6597 = vmatprep.subr.bf16.mxu1 %v8352_v37  ;;  %v2441_v14 = vadd.f32 %v2440_v52, %v10278_v47  ;;  %v2568_v51 = vrot.slane %v2507_v33, 4  ;;  %v2453_v0 = vadd.f32 %v2452_v41, %v10287_v54  ;;  %v2580_v4 = vrot.slane %v2509_v19, 4 }
 0x288   : > { %v2436_v53 = vrot.slane %v2435_v36, 2  ;;  %v2563_v62 = vadd.f32 %v2562_v17, %v2506_v46  ;;  %v2448_v63 = vrot.slane %v2447_v60, 2  ;;  %v2575_v39 = vadd.f32 %v2574_v61, %v2508_v26  ;;  %v8362_v26 = vld [vmem:[%s9723_s17 + $0x288] ss:$16 sps:$4 sm:$0xff]   ;;  %v8370_v17 = vld [vmem:[%s9723_s17 + $0x2ac] ss:$16 sps:$4 sm:$0xff]  }
 0x289   : > { %v2442_v44 = vrot.slane %v2441_v14, 2  ;;  %v2569_v1 = vadd.f32 %v2568_v51, %v2507_v33  ;;  %v2454_v20 = vrot.slane %v2453_v0, 2  ;;  %v2581_v21 = vadd.f32 %v2580_v4, %v2509_v19  ;;  %v8368_v4 = vld [vmem:[%s9723_s17 + $0x2a8] ss:$16 sps:$4 sm:$0xff]  }
 0x28a   : > { %6270 = vmatpush1.bf16.msra.mxu0 %v8347_v40  ;;  %6598 = vmatpush1.bf16.msra.mxu1 %v8350_v57  ;;  %v2437_v15 = vadd.f32 %v2436_v53, %v2435_v36  ;;  %v2564_v16 = vrot.slane %v2563_v62, 2  ;;  %v2449_v7 = vadd.f32 %v2448_v63, %v2447_v60  ;;  %v2576_v25 = vrot.slane %v2575_v39, 2  ;;  %v8367_v36 = vld [vmem:[%s9723_s17 + $0x2a4] ss:$16 sps:$4 sm:$0xff]  }
 0x28b   : > { %6271 = vmatprep.subr.bf16.mxu0 %v8355_v56  ;;  %6599 = vmatprep.subr.bf16.mxu1 %v8358_v59  ;;  %v2443_v29 = vadd.f32 %v2442_v44, %v2441_v14  ;;  %v2570_v18 = vrot.slane %v2569_v1, 2  ;;  %v2455_v35 = vadd.f32 %v2454_v20, %v2453_v0  ;;  %v2582_v37 = vrot.slane %v2581_v21, 2  ;;  %v8365_v0 = vld [vmem:[%s9723_s17 + $0x2a0] ss:$16 sps:$4 sm:$0xff]  }
 0x28c   : > { %v2438_v30 = vrot.slane %v2437_v15, 1  ;;  %v2565_v31 = vadd.f32 %v2564_v16, %v2563_v62  ;;  %v2450_v40 = vrot.slane %v2449_v7, 1  ;;  %v2577_v42 = vadd.f32 %v2576_v25, %v2575_v39 }
 0x28d   : > { %v2444_v46 = vrot.slane %v2443_v29, 1  ;;  %v2571_v57 = vadd.f32 %v2570_v18, %v2569_v1  ;;  %v2456_v55 = vrot.slane %v2455_v35, 1  ;;  %v2583_v56 = vadd.f32 %v2582_v37, %v2581_v21  ;;  %v8371_v18 = vld [vmem:[%s9723_s17 + $0x2c0] ss:$16 sps:$4 sm:$0xff]   ;;  %v8379_v37 = vld [vmem:[%s9723_s17 + $0x2e4] ss:$16 sps:$4 sm:$0xff]  }
 0x28e   : > { %6272 = vmatpush1.bf16.msra.mxu0 %v8353_v49  ;;  %6600 = vmatpush1.bf16.msra.mxu1 %v8356_v2  ;;  %v2439_v52 = vadd.f32 %v2438_v30, %v2437_v15  ;;  %v2566_v33 = vrot.slane %v2565_v31, 1  ;;  %v2451_v41 = vadd.f32 %v2450_v40, %v2449_v7  ;;  %v2578_v19 = vrot.slane %v2577_v42, 1  ;;  %v8373_v49 = vld [vmem:[%s9723_s17 + $0x2c4] ss:$16 sps:$4 sm:$0xff]   ;;  %v8376_v2 = vld [vmem:[%s9723_s17 + $0x2cc] ss:$16 sps:$4 sm:$0xff]  }
 0x28f   : > { %6273 = vmatprep.subr.bf16.mxu0 %v8361_v22  ;;  %6601 = vmatprep.subr.bf16.mxu1 %v8364_v23  ;;  %v2445_v24 = vadd.f32 %v2444_v46, %v2443_v29  ;;  %v2572_v58 = vrot.slane %v2571_v57, 1  ;;  %v2457_v61 = vadd.f32 %v2456_v55, %v2455_v35  ;;  %v2584_v14 = vrot.slane %v2583_v56, 1  ;;  %v8374_v30 = vld [vmem:[%s9723_s17 + $0x2c8] ss:$16 sps:$4 sm:$0xff]   ;;  %v8382_v40 = vld [vmem:[%s9723_s17 + $0x2ec] ss:$16 sps:$4 sm:$0xff]  }
 0x290   : > { %v10306_v59 = vmul.f32 0.125, %v2439_v52  ;;  %v2567_v60 = vadd.f32 %v2566_v33, %v2565_v31  ;;  %v10308_v51 = vmul.f32 0.125, %v2451_v41  ;;  %v2579_v43 = vadd.f32 %v2578_v19, %v2577_v42  ;;  %v8377_v33 = vld [vmem:[%s9723_s17 + $0x2e0] ss:$16 sps:$4 sm:$0xff]   ;;  %v8380_v55 = vld [vmem:[%s9723_s17 + $0x2e8] ss:$16 sps:$4 sm:$0xff]  }
 0x291   : > { %v10310_v53 = vmul.f32 0.125, %v2445_v24  ;;  %v2573_v62 = vadd.f32 %v2572_v58, %v2571_v57  ;;  %v10316_v44 = vmul.f32 0.125, %v2457_v61  ;;  %v2585_v1 = vadd.f32 %v2584_v14, %v2583_v56  ;;  %v8383_v41 = vld [vmem:[%s9723_s17 + $0x300] ss:$16 sps:$4 sm:$0xff]   ;;  %v8386_v19 = vld [vmem:[%s9723_s17 + $0x308] ss:$16 sps:$4 sm:$0xff]  }
 0x292   : > { %6274 = vmatpush1.bf16.msra.mxu0 %v8359_v50  ;;  %6602 = vmatpush1.bf16.msra.mxu1 %v8362_v26  ;;  %v2618_v63 = vmul.f32 0.125, %v2567_v60  ;;  %v2634_v39 = vmul.f32 %v10306_v59, %v10306_v59  ;;  %v2620_v15 = vmul.f32 0.125, %v2579_v43  ;;  %v2636_v16 = vmul.f32 %v10308_v51, %v10308_v51  ;;  %v10338_v24 = vld [vmem:[%s421_s23 + $0x8] sm:$0xff]  ;;  %v8391_v58 = vld [vmem:[%s9723_s17 + $0x324] ss:$16 sps:$4 sm:$0xff]  }
 0x293   : > { %6275 = vmatprep.subr.bf16.mxu0 %v8367_v36  ;;  %6603 = vmatprep.subr.bf16.mxu1 %v8370_v17  ;;  %v2619_v20 = vmul.f32 0.125, %v2573_v62  ;;  %v2635_v21 = vmul.f32 %v10310_v53, %v10310_v53  ;;  %v2621_v23 = vmul.f32 0.125, %v2585_v1  ;;  %v2637_v7 = vmul.f32 %v10316_v44, %v10316_v44  ;;  %v8385_v36 = vld [vmem:[%s9723_s17 + $0x304] ss:$16 sps:$4 sm:$0xff]   ;;  %v8388_v17 = vld [vmem:[%s9723_s17 + $0x30c] ss:$16 sps:$4 sm:$0xff]  }
 0x294   : > { %v2650_v22 = vsub.f32 %v2618_v63, %v2634_v39  ;;  %v2652_v25 = vsub.f32 %v2620_v15, %v2636_v16  ;;  %v8394_v60 = vld [vmem:[%s9723_s17 + $0x32c] ss:$16 sps:$4 sm:$0xff]   ;;  %v2745_v61 = vrot.slane %v10338_v24, %v10110_v12  ;;  %v8389_v14 = vld [vmem:[%s9723_s17 + $0x320] ss:$16 sps:$4 sm:$0xff]   ;;  %v8392_v43 = vld [vmem:[%s9723_s17 + $0x328] ss:$16 sps:$4 sm:$0xff]   ;;  %v2753_v62 = vrot.slane %v10338_v24, %v10113_v28 }
 0x295   : > { %v2651_v29 = vsub.f32 %v2619_v20, %v2635_v21  ;;  %v2653_v35 = vsub.f32 %v2621_v23, %v2637_v7  ;;  %v2749_v63 = vrot.slane %v10338_v24, %v10119_v32  ;;  %v2757_v1 = vrot.slane %v10338_v24, %v10123_v34  ;;  %v8395_v16 = vld [vmem:[%s9723_s17 + $0x340] ss:$16 sps:$4 sm:$0xff]   ;;  %v8398_v20 = vld [vmem:[%s9723_s17 + $0x348] ss:$16 sps:$4 sm:$0xff]   ;;  %v8403_v23 = vld [vmem:[%s9723_s17 + $0x364] ss:$16 sps:$4 sm:$0xff]  }
 0x296   : > { %6276 = vmatpush1.bf16.msra.mxu0 %v8365_v0  ;;  %6604 = vmatpush1.bf16.msra.mxu1 %v8368_v4  ;;  %v2666_v31 = vmax.f32 %v2650_v22, 0.0  ;;  %v2668_v42 = vmax.f32 %v2652_v25, 0.0  ;;  %v8397_v0 = vld [vmem:[%s9723_s17 + $0x344] ss:$16 sps:$4 sm:$0xff]   ;;  %v8400_v4 = vld [vmem:[%s9723_s17 + $0x34c] ss:$16 sps:$4 sm:$0xff]  }
 0x297   : > { %6277 = vmatprep.subr.bf16.mxu0 %v8373_v49  ;;  %6605 = vmatprep.subr.bf16.mxu1 %v8376_v2  ;;  %v2667_v46 = vmax.f32 %v2651_v29, 0.0  ;;  %v2669_v50 = vmax.f32 %v2653_v35, 0.0  ;;  %v8406_v7 = vld [vmem:[%s9723_s17 + $0x36c] ss:$16 sps:$4 sm:$0xff]  }
 0x298   : > { %v2682_v57 = vadd.f32 1e-05, %v2666_v31  ;;  %v2684_v26 = vadd.f32 1e-05, %v2668_v42  ;;  %v8404_v42 = vld [vmem:[%s9723_s17 + $0x368] ss:$16 sps:$4 sm:$0xff]  }
 0x299   : > { %v2683_v52 = vadd.f32 1e-05, %v2667_v46  ;;  %v2685_v56 = vadd.f32 1e-05, %v2669_v50  ;;  %v8409_v50 = vld [vmem:[%s9723_s17 + $0x384] ss:$16 sps:$4 sm:$0xff]  }
 0x29a   : > { %6278 = vmatpush1.bf16.msra.mxu0 %v8371_v18  ;;  %6606 = vmatpush1.bf16.msra.mxu1 %v8374_v30  ;;  %9023 = vrsqrt.f32 %v2682_v57 }
 0x29b   : > { %6279 = vmatprep.subr.bf16.mxu0 %v8379_v37  ;;  %6607 = vmatprep.subr.bf16.mxu1 %v8382_v40  ;;  %9025 = vrsqrt.f32 %v2684_v26 }
 0x29c   : > { %9027 = vrsqrt.f32 %v2683_v52 }
 0x29d   : > { %9029 = vrsqrt.f32 %v2685_v56  ;;  %v8415_v56 = vld [vmem:[%s9723_s17 + $0x3a4] ss:$16 sps:$4 sm:$0xff]  }
 0x29e   : > { %6280 = vmatpush1.bf16.msra.mxu0 %v8377_v33  ;;  %6608 = vmatpush1.bf16.msra.mxu1 %v8380_v55  ;;  %v8407_v33 = vld [vmem:[%s9723_s17 + $0x380] ss:$16 sps:$4 sm:$0xff]   ;;  %v8410_v55 = vld [vmem:[%s9723_s17 + $0x388] ss:$16 sps:$4 sm:$0xff]  }
 0x29f   : > { %6281 = vmatprep.subr.bf16.mxu0 %v8385_v36  ;;  %6609 = vmatprep.subr.bf16.mxu1 %v8388_v17  ;;  %v8418_v36 = vld [vmem:[%s9723_s17 + $0x3ac] ss:$16 sps:$4 sm:$0xff]   ;;  %v8413_v17 = vld [vmem:[%s9723_s17 + $0x3a0] ss:$16 sps:$4 sm:$0xff]  }
 0x2a2   : > { %6282 = vmatpush1.bf16.msra.mxu0 %v8383_v41  ;;  %6610 = vmatpush1.bf16.msra.mxu1 %v8386_v19  ;;  %v8416_v41 = vld [vmem:[%s9723_s17 + $0x3a8] ss:$16 sps:$4 sm:$0xff]   ;;  %v8421_v19 = vld [vmem:[%s9723_s17 + $0x3c4] ss:$16 sps:$4 sm:$0xff]  }
 0x2a3   : > { %6283 = vmatprep.subr.bf16.mxu0 %v8391_v58  ;;  %6611 = vmatprep.subr.bf16.mxu1 %v8394_v60  ;;  %v8424_v58 = vld [vmem:[%s9723_s17 + $0x3cc] ss:$16 sps:$4 sm:$0xff]   ;;  %v8419_v60 = vld [vmem:[%s9723_s17 + $0x3c0] ss:$16 sps:$4 sm:$0xff]  }
 0x2a4   : > { %v9024_v39 = vpop.eup %9023 }
 0x2a5   : > { %v9026_v49 = vpop.eup %9025  ;;  %v2798_v2 = vmul.f32 %v9024_v39, %v2745_v61  ;;  %v8422_v61 = vld [vmem:[%s9723_s17 + $0x3c8] ss:$16 sps:$4 sm:$0xff]   ;;  %v8436_v39 = vld [vmem:[%s9723_s17 + $0x40c] ss:$16 sps:$4 sm:$0xff]  }
 0x2a6   : > { %v9028_v15 = vpop.eup %9027  ;;  %6284 = vmatpush1.bf16.msra.mxu0 %v8389_v14  ;;  %6612 = vmatpush1.bf16.msra.mxu1 %v8392_v43  ;;  %v2800_v21 = vmul.f32 %v9026_v49, %v2753_v62  ;;  %v8427_v14 = vld [vmem:[%s9723_s17 + $0x3e4] ss:$16 sps:$4 sm:$0xff]   ;;  %v8430_v43 = vld [vmem:[%s9723_s17 + $0x3ec] ss:$16 sps:$4 sm:$0xff]   ;;  %v8425_v62 = vld [vmem:[%s9723_s17 + $0x3e0] ss:$16 sps:$4 sm:$0xff]  }
 0x2a7   : > { %v9030_v22 = vpop.eup %9029  ;;  %6285 = vmatprep.subr.bf16.mxu0 %v8397_v0  ;;  %6613 = vmatprep.subr.bf16.mxu1 %v8400_v4  ;;  %v2816_v25 = vmul.f32 %v2798_v2, %v10306_v59  ;;  %v2977_v29 = vrot.slane %v2798_v2, %v10110_v12  ;;  %v10360_v18 = vmul.f32 %v9028_v15, %v2749_v63  ;;  %v8401_v59 = vld [vmem:[%s9723_s17 + $0x360] ss:$16 sps:$4 sm:$0xff]   ;;  %v8428_v0 = vld [vmem:[%s9723_s17 + $0x3e8] ss:$16 sps:$4 sm:$0xff]   ;;  %v3122_v4 = vmax.f32 %v10252_v3, 0.0 }
 0x2a8   : > { %v2818_v30 = vmul.f32 %v2800_v21, %v10308_v51  ;;  %v2985_v31 = vrot.slane %v2800_v21, %v10110_v12  ;;  %v2801_v35 = vmul.f32 %v9030_v22, %v2757_v1  ;;  %v8433_v63 = vld [vmem:[%s9723_s17 + $0x404] ss:$16 sps:$4 sm:$0xff]   ;;  %v3125_v1 = vmax.f32 %v10254_v6, 0.0  ;;  %v8431_v49 = vld [vmem:[%s9723_s17 + $0x400] ss:$16 sps:$4 sm:$0xff]  }
 0x2a9   : > { %v10365_v37 = vmul.f32 %v2977_v29, %v10270_v38  ;;  %v2817_v40 = vmul.f32 %v10360_v18, %v10310_v53  ;;  %v8412_v53 = vld [vmem:[%s9723_s17 + $0x38c] ss:$16 sps:$4 sm:$0xff]   ;;  %v3138_v2 = vpack.c.bf16 %v3122_v4, %v3122_v4  ;;  %v8434_v15 = vld [vmem:[%s9723_s17 + $0x408] ss:$16 sps:$4 sm:$0xff]   ;;  %v8437_v3 = vld [vmem:[%s9723_s17 + $0x420] ss:$16 sps:$4 sm:$0xff]  }
 0x2aa   : > { %6286 = vmatpush1.bf16.msra.mxu0 %v8395_v16  ;;  %6614 = vmatpush1.bf16.msra.mxu1 %v8398_v20  ;;  %v10372_v46 = vmul.f32 %v2985_v31, %v10276_v27  ;;  %v2819_v51 = vmul.f32 %v2801_v35, %v10316_v44  ;;  %v2989_v57 = vrot.slane %v2801_v35, %v10110_v12  ;;  %v8439_v20 = vld [vmem:[%s9723_s17 + $0x424] ss:$16 sps:$4 sm:$0xff]   ;;  %v8442_v21 = vld [vmem:[%s9723_s17 + $0x42c] ss:$16 sps:$4 sm:$0xff]   ;;  %v8440_v6 = vld [vmem:[%s9723_s17 + $0x428] ss:$16 sps:$4 sm:$0xff]  }
 0x2ab   : > { %6287 = vmatprep.subr.bf16.mxu0 %v8403_v23  ;;  %6615 = vmatprep.subr.bf16.mxu1 %v8406_v7  ;;  %v2889_v38 = vcombine.low %v2816_v25, %v2817_v40  ;;  %v3141_v16 = vpack.c.bf16 %v3125_v1, %v3125_v1  ;;  %v8445_v23 = vld [vmem:[%s9723_s17 + $0x444] ss:$16 sps:$4 sm:$0xff]   ;;  %v8448_v31 = vld [vmem:[%s9723_s17 + $0x44c] ss:$16 sps:$4 sm:$0xff]  }
 0x2ac   : > { %v2890_v26 = vcombine.low %v2818_v30, %v2819_v51  ;;  %v10379_v52 = vmul.f32 %v2989_v57, %v10287_v54  ;;  %v8443_v57 = vld [vmem:[%s9723_s17 + $0x440] ss:$16 sps:$4 sm:$0xff]   ;;  %v8454_v4 = vld [vmem:[%s9723_s17 + $0x46c] ss:$16 sps:$4 sm:$0xff]  }
 0x2ad   : > { %v10382_v27 = vrot.slane %v2889_v38, %v10152_v5 }
 0x2ae   : > { %6288 = vmatpush1.bf16.msra.mxu0 %v8401_v59  ;;  %6616 = vmatpush1.bf16.msra.mxu1 %v8404_v42  ;;  %v10385_v44 = vrot.slane %v2890_v26, %v10152_v5 }
 0x2af   : > { %6289 = vmatprep.subr.bf16.mxu0 %v8409_v50  ;;  %6617 = vmatprep.subr.bf16.mxu1 %v8412_v53 }
 0x2b0   : > { %v2921_v54 = vcombine.low %v10382_v27, %v10385_v44  ;;  %v8520_v27 = vld [vmem:[%s9723_s17 + $0x5cc] ss:$16 sps:$4 sm:$0xff]  }
 0x2b2   : > { %6290 = vmatpush1.bf16.msra.mxu0 %v8407_v33  ;;  %6618 = vmatpush1.bf16.msra.mxu1 %v8410_v55  ;;  %v8446_v55 = vld [vmem:[%s9723_s17 + $0x448] ss:$16 sps:$4 sm:$0xff]  }
 0x2b3   : > { %6291 = vmatprep.subr.bf16.mxu0 %v8415_v56  ;;  %6619 = vmatprep.subr.bf16.mxu1 %v8418_v36 }
 0x2b6   : > { %6292 = vmatpush1.bf16.msra.mxu0 %v8413_v17  ;;  %6620 = vmatpush1.bf16.msra.mxu1 %v8416_v41 }
 0x2b7   : > { %6293 = vmatprep.subr.bf16.mxu0 %v8421_v19  ;;  %6621 = vmatprep.subr.bf16.mxu1 %v8424_v58 }
 0x2ba   : > { %6294 = vmatpush1.bf16.msra.mxu0 %v8419_v60  ;;  %6622 = vmatpush1.bf16.msra.mxu1 %v8422_v61  ;;  %v8451_v60 = vld [vmem:[%s9723_s17 + $0x464] ss:$16 sps:$4 sm:$0xff]  }
 0x2bb   : > { %6295 = vmatprep.subr.bf16.mxu0 %v8427_v14  ;;  %6623 = vmatprep.subr.bf16.mxu1 %v8430_v43 }
 0x2be   : > { %6296 = vmatpush1.bf16.msra.mxu0 %v8425_v62  ;;  %6624 = vmatpush1.bf16.msra.mxu1 %v8428_v0 }
 0x2bf   : > { %6306 = vmatprep.subr.bf16.mxu0 %v8433_v63  ;;  %6634 = vmatprep.subr.bf16.mxu1 %v8436_v39 }
 0x2c1   : > { %6298 = vmatmul.mubr.bf16.vlgmr.msra.gmra.mrb[16].mxu0 %v3138_v2  ;;  %6626 = vmatmul.mubr.bf16.vlgmr.msra.gmra.mrb[16].mxu1 %v3138_v2 }
 0x2c2   : > { %6307 = vmatpush1.bf16.msra.mxu0 %v8431_v49  ;;  %6338 = vmatprep.mubr.bf16.mxu0 %v3141_v16 }
 0x2c3   : > { %6635 = vmatpush1.bf16.msra.mxu1 %v8434_v15  ;;  %6666 = vmatprep.mubr.bf16.mxu1 %v3141_v16  ;;  %v10413_v22 = vpop.f32.mrb[12].mxu0  ;;  %v10419_v29 = vpop.f32.mrb[12].mxu1 }
 0x2c4   : > { %6308 = vmatprep.subr.bf16.mxu0 %v8439_v20  ;;  %6636 = vmatprep.subr.bf16.mxu1 %v8442_v21  ;;  %v2458_v7 = vrot.slane %v10413_v22, 4  ;;  %v2510_v25 = vmul.f32 %v10413_v22, %v10413_v22  ;;  %v10421_v30 = vpop.f32.mrb[13].mxu0  ;;  %v2470_v35 = vrot.slane %v10419_v29, 4  ;;  %v2512_v40 = vmul.f32 %v10419_v29, %v10419_v29  ;;  %v10430_v51 = vpop.f32.mrb[13].mxu1  ;;  %v8449_v21 = vld [vmem:[%s9723_s17 + $0x460] ss:$16 sps:$4 sm:$0xff]  }
 0x2c5   : > { %v2464_v59 = vrot.slane %v10421_v30, 4  ;;  %v2511_v42 = vmul.f32 %v10421_v30, %v10421_v30  ;;  %v2342_v38 = vpop.f32.mrb[14].mxu0  ;;  %v2476_v26 = vrot.slane %v10430_v51, 4  ;;  %v2513_v33 = vmul.f32 %v10430_v51, %v10430_v51  ;;  %v2383_v56 = vpop.f32.mrb[14].mxu1 }
 0x2c6   : > { %v2459_v50 = vadd.f32 %v2458_v7, %v10413_v22  ;;  %v2586_v53 = vrot.slane %v2510_v25, 4  ;;  %6309 = vmatpush1.bf16.msra.mxu0 %v8437_v3  ;;  %v2343_v36 = vpop.f32.mrb[15].mxu0  ;;  %v2471_v17 = vadd.f32 %v2470_v35, %v10419_v29  ;;  %v2598_v41 = vrot.slane %v2512_v40, 4  ;;  %v2384_v61 = vpop.f32.mrb[15].mxu1  ;;  %v8460_v38 = vld [vmem:[%s9723_s17 + $0x48c] ss:$16 sps:$4 sm:$0xff]  }
 0x2c7   : > { %6637 = vmatpush1.bf16.msra.mxu1 %v8440_v6  ;;  %v2465_v19 = vadd.f32 %v2464_v59, %v10421_v30  ;;  %v2592_v58 = vrot.slane %v2511_v42, 4  ;;  %6310 = vmatprep.subr.bf16.mxu0 %v8445_v23  ;;  %v2477_v62 = vadd.f32 %v2476_v26, %v10430_v51  ;;  %v2604_v0 = vrot.slane %v2513_v33, 4  ;;  %v8458_v61 = vld [vmem:[%s9723_s17 + $0x488] ss:$16 sps:$4 sm:$0xff]  }
 0x2c8   : > { %v2460_v14 = vrot.slane %v2459_v50, 2  ;;  %v2587_v43 = vadd.f32 %v2586_v53, %v2510_v25  ;;  %6638 = vmatprep.subr.bf16.mxu1 %v8448_v31  ;;  %v2472_v63 = vrot.slane %v2471_v17, 2  ;;  %v2599_v39 = vadd.f32 %v2598_v41, %v2512_v40  ;;  %v8452_v25 = vld [vmem:[%s9723_s17 + $0x468] ss:$16 sps:$4 sm:$0xff]   ;;  %v8457_v31 = vld [vmem:[%s9723_s17 + $0x484] ss:$16 sps:$4 sm:$0xff]  }
 0x2c9   : > { %v2466_v1 = vrot.slane %v2465_v19, 2  ;;  %v2593_v49 = vadd.f32 %v2592_v58, %v2511_v42  ;;  %v2478_v16 = vrot.slane %v2477_v62, 2  ;;  %v2605_v20 = vadd.f32 %v2604_v0, %v2513_v33 }
 0x2ca   : > { %v2461_v2 = vadd.f32 %v2460_v14, %v2459_v50  ;;  %v2588_v15 = vrot.slane %v2587_v43, 2  ;;  %6311 = vmatpush1.bf16.msra.mxu0 %v8443_v57  ;;  %v2473_v3 = vadd.f32 %v2472_v63, %v2471_v17  ;;  %v2600_v6 = vrot.slane %v2599_v39, 2  ;;  %v8455_v17 = vld [vmem:[%s9723_s17 + $0x480] ss:$16 sps:$4 sm:$0xff]   ;;  %v8463_v14 = vld [vmem:[%s9723_s17 + $0x4a4] ss:$16 sps:$4 sm:$0xff]  }
 0x2cb   : > { %v2467_v23 = vadd.f32 %v2466_v1, %v2465_v19  ;;  %v2594_v7 = vrot.slane %v2593_v49, 2  ;;  %6639 = vmatpush1.bf16.msra.mxu1 %v8446_v55  ;;  %6312 = vmatprep.subr.bf16.mxu0 %v8451_v60  ;;  %v2479_v59 = vadd.f32 %v2478_v16, %v2477_v62  ;;  %v2606_v42 = vrot.slane %v2605_v20, 2  ;;  %v8466_v63 = vld [vmem:[%s9723_s17 + $0x4ac] ss:$16 sps:$4 sm:$0xff]  }
 0x2cc   : > { %v2462_v35 = vrot.slane %v2461_v2, 1  ;;  %v2589_v40 = vadd.f32 %v2588_v15, %v2587_v43  ;;  %6640 = vmatprep.subr.bf16.mxu1 %v8454_v4  ;;  %v2474_v50 = vrot.slane %v2473_v3, 1  ;;  %v2601_v53 = vadd.f32 %v2600_v6, %v2599_v39 }
 0x2cd   : > { %v2468_v57 = vrot.slane %v2467_v23, 1  ;;  %v2595_v26 = vadd.f32 %v2594_v7, %v2593_v49  ;;  %v2480_v36 = vrot.slane %v2479_v59, 1  ;;  %v2607_v55 = vadd.f32 %v2606_v42, %v2605_v20 }
 0x2ce   : > { %v2463_v33 = vadd.f32 %v2462_v35, %v2461_v2  ;;  %v2590_v56 = vrot.slane %v2589_v40, 1  ;;  %6313 = vmatpush1.bf16.msra.mxu0 %v8449_v21  ;;  %v2475_v41 = vadd.f32 %v2474_v50, %v2473_v3  ;;  %v2602_v19 = vrot.slane %v2601_v53, 1  ;;  %v8461_v3 = vld [vmem:[%s9723_s17 + $0x4a0] ss:$16 sps:$4 sm:$0xff]   ;;  %v8469_v35 = vld [vmem:[%s9723_s17 + $0x4c4] ss:$16 sps:$4 sm:$0xff]  }
 0x2cf   : > { %v2469_v58 = vadd.f32 %v2468_v57, %v2467_v23  ;;  %v2596_v60 = vrot.slane %v2595_v26, 1  ;;  %6641 = vmatpush1.bf16.msra.mxu1 %v8452_v25  ;;  %6314 = vmatprep.subr.bf16.mxu0 %v8457_v31  ;;  %v2481_v0 = vadd.f32 %v2480_v36, %v2479_v59  ;;  %v2608_v4 = vrot.slane %v2607_v55, 1  ;;  %v8464_v31 = vld [vmem:[%s9723_s17 + $0x4a8] ss:$16 sps:$4 sm:$0xff]  }
 0x2d0   : > { %v10450_v43 = vmul.f32 0.125, %v2463_v33  ;;  %v2591_v62 = vadd.f32 %v2590_v56, %v2589_v40  ;;  %6642 = vmatprep.subr.bf16.mxu1 %v8460_v38  ;;  %v10453_v39 = vmul.f32 0.125, %v2475_v41  ;;  %v2603_v1 = vadd.f32 %v2602_v19, %v2601_v53  ;;  %v8472_v38 = vld [vmem:[%s9723_s17 + $0x4cc] ss:$16 sps:$4 sm:$0xff]   ;;  %v8467_v33 = vld [vmem:[%s9723_s17 + $0x4c0] ss:$16 sps:$4 sm:$0xff]  }
 0x2d1   : > { %v10455_v49 = vmul.f32 0.125, %v2469_v58  ;;  %v2597_v2 = vadd.f32 %v2596_v60, %v2595_v26  ;;  %v10459_v20 = vmul.f32 0.125, %v2481_v0  ;;  %v2609_v21 = vadd.f32 %v2608_v4, %v2607_v55  ;;  %v8470_v55 = vld [vmem:[%s9723_s17 + $0x4c8] ss:$16 sps:$4 sm:$0xff]   ;;  %v8478_v58 = vld [vmem:[%s9723_s17 + $0x4ec] ss:$16 sps:$4 sm:$0xff]  }
 0x2d2   : > { %v2622_v15 = vmul.f32 0.125, %v2591_v62  ;;  %v2638_v16 = vmul.f32 %v10450_v43, %v10450_v43  ;;  %6315 = vmatpush1.bf16.msra.mxu0 %v8455_v17  ;;  %v2624_v6 = vmul.f32 0.125, %v2603_v1  ;;  %v2640_v23 = vmul.f32 %v10453_v39, %v10453_v39  ;;  %v8475_v17 = vld [vmem:[%s9723_s17 + $0x4e4] ss:$16 sps:$4 sm:$0xff]   ;;  %v8473_v62 = vld [vmem:[%s9723_s17 + $0x4e0] ss:$16 sps:$4 sm:$0xff]  }
 0x2d3   : > { %v2623_v7 = vmul.f32 0.125, %v2597_v2  ;;  %v2639_v25 = vmul.f32 %v10455_v49, %v10455_v49  ;;  %6643 = vmatpush1.bf16.msra.mxu1 %v8458_v61  ;;  %6316 = vmatprep.subr.bf16.mxu0 %v8463_v14  ;;  %v2625_v59 = vmul.f32 0.125, %v2609_v21  ;;  %v2641_v42 = vmul.f32 %v10459_v20, %v10459_v20  ;;  %v8476_v0 = vld [vmem:[%s9723_s17 + $0x4e8] ss:$16 sps:$4 sm:$0xff]   ;;  %v8481_v4 = vld [vmem:[%s9723_s17 + $0x504] ss:$16 sps:$4 sm:$0xff]  }
 0x2d4   : > { %v2654_v40 = vsub.f32 %v2622_v15, %v2638_v16  ;;  %6644 = vmatprep.subr.bf16.mxu1 %v8466_v63  ;;  %v2656_v50 = vsub.f32 %v2624_v6, %v2640_v23  ;;  %v8484_v63 = vld [vmem:[%s9723_s17 + $0x50c] ss:$16 sps:$4 sm:$0xff]   ;;  %v8479_v1 = vld [vmem:[%s9723_s17 + $0x500] ss:$16 sps:$4 sm:$0xff]   ;;  %v8482_v2 = vld [vmem:[%s9723_s17 + $0x508] ss:$16 sps:$4 sm:$0xff]   ;;  %v2761_v21 = vrot.slane %v10338_v24, %v10198_v8  ;;  %v2765_v23 = vrot.slane %v10338_v24, %v10204_v9 }
 0x2d5   : > { %v2655_v53 = vsub.f32 %v2623_v7, %v2639_v25  ;;  %v2657_v26 = vsub.f32 %v2625_v59, %v2641_v42  ;;  %v8487_v15 = vld [vmem:[%s9723_s17 + $0x524] ss:$16 sps:$4 sm:$0xff]   ;;  %v8490_v16 = vld [vmem:[%s9723_s17 + $0x52c] ss:$16 sps:$4 sm:$0xff]   ;;  %v8485_v6 = vld [vmem:[%s9723_s17 + $0x520] ss:$16 sps:$4 sm:$0xff]  }
 0x2d6   : > { %v2670_v57 = vmax.f32 %v2654_v40, 0.0  ;;  %6317 = vmatpush1.bf16.msra.mxu0 %v8461_v3  ;;  %v2672_v56 = vmax.f32 %v2656_v50, 0.0  ;;  %v2769_v3 = vrot.slane %v10338_v24, %v10201_v48  ;;  %v8488_v7 = vld [vmem:[%s9723_s17 + $0x528] ss:$16 sps:$4 sm:$0xff]   ;;  %v8493_v25 = vld [vmem:[%s9723_s17 + $0x544] ss:$16 sps:$4 sm:$0xff]  }
 0x2d7   : > { %v2671_v36 = vmax.f32 %v2655_v53, 0.0  ;;  %6645 = vmatpush1.bf16.msra.mxu1 %v8464_v31  ;;  %6318 = vmatprep.subr.bf16.mxu0 %v8469_v35  ;;  %v2673_v19 = vmax.f32 %v2657_v26, 0.0  ;;  %v2773_v35 = vrot.slane %v10338_v24, %v10207_v10  ;;  %v8496_v40 = vld [vmem:[%s9723_s17 + $0x54c] ss:$16 sps:$4 sm:$0xff]   ;;  %v8491_v53 = vld [vmem:[%s9723_s17 + $0x540] ss:$16 sps:$4 sm:$0xff]  }
 0x2d8   : > { %v2686_v41 = vadd.f32 1e-05, %v2670_v57  ;;  %6646 = vmatprep.subr.bf16.mxu1 %v8472_v38  ;;  %v2688_v60 = vadd.f32 1e-05, %v2672_v56  ;;  %v8494_v24 = vld [vmem:[%s9723_s17 + $0x548] ss:$16 sps:$4 sm:$0xff]  }
 0x2d9   : > { %v2687_v61 = vadd.f32 1e-05, %v2671_v36  ;;  %v2689_v14 = vadd.f32 1e-05, %v2673_v19  ;;  %v8499_v36 = vld [vmem:[%s9723_s17 + $0x564] ss:$16 sps:$4 sm:$0xff]  }
 0x2da   : > { %9031 = vrsqrt.f32 %v2686_v41  ;;  %6319 = vmatpush1.bf16.msra.mxu0 %v8467_v33  ;;  %v8502_v19 = vld [vmem:[%s9723_s17 + $0x56c] ss:$16 sps:$4 sm:$0xff]  }
 0x2db   : > { %9033 = vrsqrt.f32 %v2688_v60  ;;  %6647 = vmatpush1.bf16.msra.mxu1 %v8470_v55  ;;  %6320 = vmatprep.subr.bf16.mxu0 %v8475_v17 }
 0x2dc   : > { %9035 = vrsqrt.f32 %v2687_v61  ;;  %6648 = vmatprep.subr.bf16.mxu1 %v8478_v58 }
 0x2dd   : > { %9037 = vrsqrt.f32 %v2689_v14 }
 0x2de   : > { %6321 = vmatpush1.bf16.msra.mxu0 %v8473_v62  ;;  %v8497_v62 = vld [vmem:[%s9723_s17 + $0x560] ss:$16 sps:$4 sm:$0xff]  }
 0x2df   : > { %6649 = vmatpush1.bf16.msra.mxu1 %v8476_v0  ;;  %6322 = vmatprep.subr.bf16.mxu0 %v8481_v4  ;;  %v8505_v4 = vld [vmem:[%s9723_s17 + $0x584] ss:$16 sps:$4 sm:$0xff]  }
 0x2e0   : > { %6650 = vmatprep.subr.bf16.mxu1 %v8484_v63 }
 0x2e2   : > { %6323 = vmatpush1.bf16.msra.mxu0 %v8479_v1 }
 0x2e3   : > { %6651 = vmatpush1.bf16.msra.mxu1 %v8482_v2  ;;  %6324 = vmatprep.subr.bf16.mxu0 %v8487_v15  ;;  %v8503_v15 = vld [vmem:[%s9723_s17 + $0x580] ss:$16 sps:$4 sm:$0xff]  }
 0x2e4   : > { %v9032_v31 = vpop.eup %9031  ;;  %6652 = vmatprep.subr.bf16.mxu1 %v8490_v16  ;;  %v8511_v16 = vld [vmem:[%s9723_s17 + $0x5a4] ss:$16 sps:$4 sm:$0xff]  }
 0x2e5   : > { %v9034_v59 = vpop.eup %9033  ;;  %v2802_v42 = vmul.f32 %v9032_v31, %v2761_v21  ;;  %v8512_v31 = vld [vmem:[%s9723_s17 + $0x5a8] ss:$16 sps:$4 sm:$0xff]  }
 0x2e6   : > { %v9036_v38 = vpop.eup %9035  ;;  %v2804_v50 = vmul.f32 %v9034_v59, %v2769_v3  ;;  %6325 = vmatpush1.bf16.msra.mxu0 %v8485_v6  ;;  %v2929_v3 = vrot.slane %v2921_v54, %v10152_v5  ;;  %v8515_v54 = vld [vmem:[%s9723_s17 + $0x5c0] ss:$16 sps:$4 sm:$0xff]  }
 0x2e7   : > { %v9038_v57 = vpop.eup %9037  ;;  %v2820_v26 = vmul.f32 %v2802_v42, %v10450_v43  ;;  %v2993_v33 = vrot.slane %v2802_v42, %v10110_v12  ;;  %v2803_v56 = vmul.f32 %v9036_v38, %v2765_v23  ;;  %6653 = vmatpush1.bf16.msra.mxu1 %v8488_v7  ;;  %6326 = vmatprep.subr.bf16.mxu0 %v8493_v25  ;;  %v8509_v23 = vld [vmem:[%s9723_s17 + $0x5a0] ss:$16 sps:$4 sm:$0xff]   ;;  %v2807_v25 = vld [vmem:[%s430_s3 + $0x8] sm:$0xff]  ;;  %v8523_v42 = vld [vmem:[%s9723_s17 + $0x5e4] ss:$16 sps:$4 sm:$0xff]  }
 0x2e8   : > { %v2822_v55 = vmul.f32 %v2804_v50, %v10453_v39  ;;  %v3001_v17 = vrot.slane %v2804_v50, %v10110_v12  ;;  %v2805_v41 = vmul.f32 %v9038_v57, %v2773_v35  ;;  %6654 = vmatprep.subr.bf16.mxu1 %v8496_v40  ;;  %v2981_v7 = vrot.slane %v10360_v18, %v10110_v12  ;;  %v8517_v35 = vld [vmem:[%s9723_s17 + $0x5c4] ss:$16 sps:$4 sm:$0xff]   ;;  %v8518_v18 = vld [vmem:[%s9723_s17 + $0x5c8] ss:$16 sps:$4 sm:$0xff]   ;;  %v8526_v38 = vld [vmem:[%s9723_s17 + $0x5ec] ss:$16 sps:$4 sm:$0xff]  }
 0x2e9   : > { %v10504_v58 = vmul.f32 %v2993_v33, %v10413_v22  ;;  %v2821_v43 = vmul.f32 %v2803_v56, %v10455_v49  ;;  %v2997_v60 = vrot.slane %v2803_v56, %v10110_v12  ;;  %v8500_v49 = vld [vmem:[%s9723_s17 + $0x568] ss:$16 sps:$4 sm:$0xff]  }
 0x2ea   : > { %v10509_v61 = vmul.f32 %v3001_v17, %v10419_v29  ;;  %v2823_v39 = vmul.f32 %v2805_v41, %v10459_v20  ;;  %v3005_v14 = vrot.slane %v2805_v41, %v10110_v12  ;;  %6327 = vmatpush1.bf16.msra.mxu0 %v8491_v53  ;;  %v8508_v20 = vld [vmem:[%s9723_s17 + $0x58c] ss:$16 sps:$4 sm:$0xff]   ;;  %v3015_v59 = vmul.f32 %v2981_v7, %v10278_v47  ;;  %v8565_v7 = vld [vmem:[%s9723_s17 + $0x6c4] ss:$16 sps:$4 sm:$0xff]  }
 0x2eb   : > { %v2891_v0 = vcombine.low %v2820_v26, %v2821_v43  ;;  %v3019_v22 = vmul.f32 %v2997_v60, %v10421_v30  ;;  %6655 = vmatpush1.bf16.msra.mxu1 %v8494_v24  ;;  %6328 = vmatprep.subr.bf16.mxu0 %v8499_v36  ;;  %v8506_v30 = vld [vmem:[%s9723_s17 + $0x588] ss:$16 sps:$4 sm:$0xff]   ;;  %v8521_v36 = vld [vmem:[%s9723_s17 + $0x5e0] ss:$16 sps:$4 sm:$0xff]  }
 0x2ec   : > { %v2892_v63 = vcombine.low %v2822_v55, %v2823_v39  ;;  %v3021_v29 = vmul.f32 %v3005_v14, %v10430_v51  ;;  %6656 = vmatprep.subr.bf16.mxu1 %v8502_v19  ;;  %v8514_v51 = vld [vmem:[%s9723_s17 + $0x5ac] ss:$16 sps:$4 sm:$0xff]   ;;  %v8535_v14 = vld [vmem:[%s9723_s17 + $0x624] ss:$16 sps:$4 sm:$0xff]  }
 0x2ed   : > { %v2913_v1 = vrot.slane %v2891_v0, %v10152_v5  ;;  %v8538_v0 = vld [vmem:[%s9723_s17 + $0x62c] ss:$16 sps:$4 sm:$0xff]  }
 0x2ee   : > { %v2920_v2 = vrot.slane %v2892_v63, %v10152_v5  ;;  %6329 = vmatpush1.bf16.msra.mxu0 %v8497_v62  ;;  %v8542_v63 = vld [vmem:[%s9723_s17 + $0x648] ss:$16 sps:$4 sm:$0xff]  }
 0x2ef   : > { %6657 = vmatpush1.bf16.msra.mxu1 %v8500_v49  ;;  %6330 = vmatprep.subr.bf16.mxu0 %v8505_v4  ;;  %v8544_v49 = vld [vmem:[%s9723_s17 + $0x64c] ss:$16 sps:$4 sm:$0xff]   ;;  %v8539_v4 = vld [vmem:[%s9723_s17 + $0x640] ss:$16 sps:$4 sm:$0xff]  }
 0x2f0   : > { %v2922_v21 = vcombine.low %v2913_v1, %v2920_v2  ;;  %6658 = vmatprep.subr.bf16.mxu1 %v8508_v20  ;;  %v8550_v20 = vld [vmem:[%s9723_s17 + $0x66c] ss:$16 sps:$4 sm:$0xff]   ;;  %v8545_v1 = vld [vmem:[%s9723_s17 + $0x660] ss:$16 sps:$4 sm:$0xff]   ;;  %v8548_v2 = vld [vmem:[%s9723_s17 + $0x668] ss:$16 sps:$4 sm:$0xff]  }
 0x2f2   : > { %v2936_v6 = vrot.slane %v2922_v21, %v10152_v5  ;;  %6331 = vmatpush1.bf16.msra.mxu0 %v8503_v15  ;;  %v8553_v15 = vld [vmem:[%s9723_s17 + $0x684] ss:$16 sps:$4 sm:$0xff]   ;;  %v8554_v21 = vld [vmem:[%s9723_s17 + $0x688] ss:$16 sps:$4 sm:$0xff]  }
 0x2f3   : > { %6659 = vmatpush1.bf16.msra.mxu1 %v8506_v30  ;;  %6332 = vmatprep.subr.bf16.mxu0 %v8511_v16  ;;  %v8556_v30 = vld [vmem:[%s9723_s17 + $0x68c] ss:$16 sps:$4 sm:$0xff]   ;;  %v8551_v16 = vld [vmem:[%s9723_s17 + $0x680] ss:$16 sps:$4 sm:$0xff]  }
 0x2f4   : > { %v2937_v40 = vcombine.low %v2929_v3, %v2936_v6  ;;  %6660 = vmatprep.subr.bf16.mxu1 %v8514_v51  ;;  %v8559_v51 = vld [vmem:[%s9723_s17 + $0x6a4] ss:$16 sps:$4 sm:$0xff]   ;;  %v8562_v3 = vld [vmem:[%s9723_s17 + $0x6ac] ss:$16 sps:$4 sm:$0xff]   ;;  %v8557_v6 = vld [vmem:[%s9723_s17 + $0x6a0] ss:$16 sps:$4 sm:$0xff]  }
 0x2f6   : > { %v2941_v44 = vsub.f32 %v2807_v25, %v2937_v40  ;;  %6333 = vmatpush1.bf16.msra.mxu0 %v8509_v23  ;;  %v8560_v23 = vld [vmem:[%s9723_s17 + $0x6a8] ss:$16 sps:$4 sm:$0xff]   ;;  %v8568_v25 = vld [vmem:[%s9723_s17 + $0x6cc] ss:$16 sps:$4 sm:$0xff]   ;;  %v8571_v40 = vld [vmem:[%s9723_s17 + $0x6e4] ss:$16 sps:$4 sm:$0xff]  }
 0x2f7   : > { %6661 = vmatpush1.bf16.msra.mxu1 %v8512_v31  ;;  %6334 = vmatprep.subr.bf16.mxu0 %v8517_v35  ;;  %v8563_v31 = vld [vmem:[%s9723_s17 + $0x6c0] ss:$16 sps:$4 sm:$0xff]   ;;  %v8566_v35 = vld [vmem:[%s9723_s17 + $0x6c8] ss:$16 sps:$4 sm:$0xff]  }
 0x2f8   : > { %6662 = vmatprep.subr.bf16.mxu1 %v8520_v27  ;;  %v3063_v50 = vrot.slane %v2941_v44, %v10119_v32  ;;  %v3059_v53 = vrot.slane %v2941_v44, %v10110_v12  ;;  %v3071_v57 = vrot.slane %v2941_v44, %v10123_v34  ;;  %v3067_v26 = vrot.slane %v2941_v44, %v10113_v28  ;;  %v8574_v27 = vld [vmem:[%s9723_s17 + $0x6ec] ss:$16 sps:$4 sm:$0xff]  }
 0x2f9   : > { %v3079_v33 = vrot.slane %v2941_v44, %v10204_v9  ;;  %v3075_v47 = vrot.slane %v2941_v44, %v10198_v8  ;;  %v3087_v56 = vrot.slane %v2941_v44, %v10207_v10  ;;  %v3083_v24 = vrot.slane %v2941_v44, %v10201_v48  ;;  %v8524_v8 = vld [vmem:[%s9723_s17 + $0x5e8] ss:$16 sps:$4 sm:$0xff]   ;;  %v8529_v10 = vld [vmem:[%s9723_s17 + $0x604] ss:$16 sps:$4 sm:$0xff]   ;;  %v8569_v44 = vld [vmem:[%s9723_s17 + $0x6e0] ss:$16 sps:$4 sm:$0xff]  }
 0x2fa   : > { %6335 = vmatpush1.bf16.msra.mxu0 %v8515_v54  ;;  %v10552_v55 = vadd.f32 %v3063_v50, %v3015_v59  ;;  %v10555_v17 = vadd.f32 %v3059_v53, %v10365_v37  ;;  %v10558_v41 = vadd.f32 %v3071_v57, %v10379_v52  ;;  %v10561_v9 = vadd.f32 %v3067_v26, %v10372_v46  ;;  %v8532_v52 = vld [vmem:[%s9723_s17 + $0x60c] ss:$16 sps:$4 sm:$0xff]   ;;  %v8572_v54 = vld [vmem:[%s9723_s17 + $0x6e8] ss:$16 sps:$4 sm:$0xff]   ;;  %v8577_v59 = vld [vmem:[%s9723_s17 + $0x704] ss:$16 sps:$4 sm:$0xff]  }
 0x2fb   : > { %6663 = vmatpush1.bf16.msra.mxu1 %v8518_v18  ;;  %6336 = vmatprep.subr.bf16.mxu0 %v8523_v42  ;;  %v3124_v48 = vmax.f32 %v10256_v45, 0.0  ;;  %v10566_v19 = vadd.f32 %v3079_v33, %v3019_v22  ;;  %v10569_v37 = vadd.f32 %v3075_v47, %v10504_v58  ;;  %v10571_v43 = vadd.f32 %v3087_v56, %v3021_v29  ;;  %v8527_v45 = vld [vmem:[%s9723_s17 + $0x600] ss:$16 sps:$4 sm:$0xff]   ;;  %v8530_v58 = vld [vmem:[%s9723_s17 + $0x608] ss:$16 sps:$4 sm:$0xff]  }
 0x2fc   : > { %6664 = vmatprep.subr.bf16.mxu1 %v8526_v38  ;;  %v3127_v46 = vmax.f32 %v10258_v11, 0.0  ;;  %v10576_v60 = vadd.f32 %v3083_v24, %v10509_v61  ;;  %v8533_v11 = vld [vmem:[%s9723_s17 + $0x620] ss:$16 sps:$4 sm:$0xff]   ;;  %v8536_v61 = vld [vmem:[%s9723_s17 + $0x628] ss:$16 sps:$4 sm:$0xff]  }
 0x2fd   : > { %v3140_v39 = vpack.c.bf16 %v3124_v48, %v3124_v48  ;;  %v8541_v22 = vld [vmem:[%s9723_s17 + $0x644] ss:$16 sps:$4 sm:$0xff]   ;;  %v8580_v18 = vld [vmem:[%s9723_s17 + $0x70c] ss:$16 sps:$4 sm:$0xff]   ;;  %v8575_v42 = vld [vmem:[%s9723_s17 + $0x700] ss:$16 sps:$4 sm:$0xff]  }
 0x2fe   : > { %6337 = vmatpush1.bf16.msra.mxu0 %v8521_v36  ;;  %v3143_v62 = vpack.c.bf16 %v3127_v46, %v3127_v46  ;;  %v8547_v29 = vld [vmem:[%s9723_s17 + $0x664] ss:$16 sps:$4 sm:$0xff]   ;;  %v8578_v38 = vld [vmem:[%s9723_s17 + $0x708] ss:$16 sps:$4 sm:$0xff]   ;;  %v8586_v53 = vld [vmem:[%s9723_s17 + $0x72c] ss:$16 sps:$4 sm:$0xff]  }
 0x2ff   : > { %6665 = vmatpush1.bf16.msra.mxu1 %v8524_v8  ;;  %6347 = vmatprep.subr.bf16.mxu0 %v8529_v10  ;;  %v8583_v50 = vld [vmem:[%s9723_s17 + $0x724] ss:$16 sps:$4 sm:$0xff]   ;;  %v8581_v57 = vld [vmem:[%s9723_s17 + $0x720] ss:$16 sps:$4 sm:$0xff]   ;;  %v8584_v26 = vld [vmem:[%s9723_s17 + $0x728] ss:$16 sps:$4 sm:$0xff]  }
 0x300   : > { %6675 = vmatprep.subr.bf16.mxu1 %v8532_v52  ;;  %v8589_v33 = vld [vmem:[%s9723_s17 + $0x744] ss:$16 sps:$4 sm:$0xff]   ;;  %v8592_v47 = vld [vmem:[%s9723_s17 + $0x74c] ss:$16 sps:$4 sm:$0xff]   ;;  %v8587_v56 = vld [vmem:[%s9723_s17 + $0x740] ss:$16 sps:$4 sm:$0xff]  }
 0x301   : > { %6339 = vmatmul.mubr.bf16.vlgmr.msra.gmra.mrb[16].mxu0 %v3140_v39  ;;  %v8590_v24 = vld [vmem:[%s9723_s17 + $0x748] ss:$16 sps:$4 sm:$0xff]   ;;  %v8595_v36 = vld [vmem:[%s9723_s17 + $0x764] ss:$16 sps:$4 sm:$0xff]   ;;  %v8598_v8 = vld [vmem:[%s9723_s17 + $0x76c] ss:$16 sps:$4 sm:$0xff]  }
 0x302   : > { %6667 = vmatmul.mubr.bf16.vlgmr.msra.gmra.mrb[16].mxu1 %v3140_v39  ;;  %6348 = vmatpush1.bf16.msra.mxu0 %v8527_v45  ;;  %v8593_v48 = vld [vmem:[%s9723_s17 + $0x760] ss:$16 sps:$4 sm:$0xff]   ;;  %v8596_v10 = vld [vmem:[%s9723_s17 + $0x768] ss:$16 sps:$4 sm:$0xff]   ;;  %v8601_v52 = vld [vmem:[%s9723_s17 + $0x784] ss:$16 sps:$4 sm:$0xff]  }
 0x303   : > { %6379 = vmatprep.mubr.bf16.mxu0 %v3143_v62  ;;  %6676 = vmatpush1.bf16.msra.mxu1 %v8530_v58  ;;  %v8604_v46 = vld [vmem:[%s9723_s17 + $0x78c] ss:$16 sps:$4 sm:$0xff]   ;;  %v8599_v45 = vld [vmem:[%s9723_s17 + $0x780] ss:$16 sps:$4 sm:$0xff]   ;;  %v8602_v39 = vld [vmem:[%s9723_s17 + $0x788] ss:$16 sps:$4 sm:$0xff]  }
 0x304   : > { %6707 = vmatprep.mubr.bf16.mxu1 %v3143_v62  ;;  %6349 = vmatprep.subr.bf16.mxu0 %v8535_v14  ;;  %v8607_v58 = vld [vmem:[%s9723_s17 + $0x7a4] ss:$16 sps:$4 sm:$0xff]   ;;  %v8610_v14 = vld [vmem:[%s9723_s17 + $0x7ac] ss:$16 sps:$4 sm:$0xff]   ;;  %v8605_v62 = vld [vmem:[%s9723_s17 + $0x7a0] ss:$16 sps:$4 sm:$0xff]  }
 0x305   : > { %6677 = vmatprep.subr.bf16.mxu1 %v8538_v0  ;;  %v8608_v0 = vld [vmem:[%s9723_s17 + $0x7a8] ss:$16 sps:$4 sm:$0xff]  }
 0x306   : > { %6350 = vmatpush1.bf16.msra.mxu0 %v8533_v11  ;;  %v8613_v11 = vld [vmem:[%s9723_s17 + $0x7c4] ss:$16 sps:$4 sm:$0xff]  }
 0x307   : > { %6678 = vmatpush1.bf16.msra.mxu1 %v8536_v61  ;;  %6351 = vmatprep.subr.bf16.mxu0 %v8541_v22  ;;  %v8616_v61 = vld [vmem:[%s9723_s17 + $0x7cc] ss:$16 sps:$4 sm:$0xff]   ;;  %v8611_v22 = vld [vmem:[%s9723_s17 + $0x7c0] ss:$16 sps:$4 sm:$0xff]  }
 0x308   : > { %6679 = vmatprep.subr.bf16.mxu1 %v8544_v49  ;;  %v8614_v49 = vld [vmem:[%s9723_s17 + $0x7c8] ss:$16 sps:$4 sm:$0xff]  }
 0x30a   : > { %6352 = vmatpush1.bf16.msra.mxu0 %v8539_v4  ;;  %v8619_v4 = vld [vmem:[%s9723_s17 + $0x7e4] ss:$16 sps:$4 sm:$0xff]  }
 0x30b   : > { %6680 = vmatpush1.bf16.msra.mxu1 %v8542_v63  ;;  %6353 = vmatprep.subr.bf16.mxu0 %v8547_v29  ;;  %v8622_v63 = vld [vmem:[%s9723_s17 + $0x7ec] ss:$16 sps:$4 sm:$0xff]   ;;  %v8617_v29 = vld [vmem:[%s9723_s17 + $0x7e0] ss:$16 sps:$4 sm:$0xff]  }
 0x30c   : > { %6681 = vmatprep.subr.bf16.mxu1 %v8550_v20  ;;  %v8620_v20 = vld [vmem:[%s9723_s17 + $0x7e8] ss:$16 sps:$4 sm:$0xff]  }
 0x30e   : > { %6354 = vmatpush1.bf16.msra.mxu0 %v8545_v1  ;;  %v3126_v1 = vmax.f32 %v10260_v13, 0.0 }
 0x30f   : > { %6682 = vmatpush1.bf16.msra.mxu1 %v8548_v2  ;;  %6355 = vmatprep.subr.bf16.mxu0 %v8553_v15  ;;  %v8625_v2 = vld [vmem:[%s9723_s17 + $0x804] ss:$16 sps:$4 sm:$0xff]   ;;  %v8628_v15 = vld [vmem:[%s9723_s17 + $0x80c] ss:$16 sps:$4 sm:$0xff]  }
 0x310   : > { %6683 = vmatprep.subr.bf16.mxu1 %v8556_v30  ;;  %v3129_v30 = vmax.f32 %v10552_v55, 0.0  ;;  %v8629_v55 = vld [vmem:[%s9723_s17 + $0x820] ss:$16 sps:$4 sm:$0xff]  }
 0x312   : > { %6356 = vmatpush1.bf16.msra.mxu0 %v8551_v16  ;;  %v8623_v16 = vld [vmem:[%s9723_s17 + $0x800] ss:$16 sps:$4 sm:$0xff]   ;;  %v3145_v13 = vpack.c.bf16 %v3129_v30, %v3129_v30  ;;  %v8698_v30 = vld [vmem:[%s9723_s17 + $0x988] ss:$16 sps:$4 sm:$0xff]  }
 0x313   : > { %6684 = vmatpush1.bf16.msra.mxu1 %v8554_v21  ;;  %6357 = vmatprep.subr.bf16.mxu0 %v8559_v51  ;;  %v3142_v21 = vpack.c.bf16 %v3126_v1, %v3126_v1  ;;  %v8626_v51 = vld [vmem:[%s9723_s17 + $0x808] ss:$16 sps:$4 sm:$0xff]   ;;  %v8697_v1 = vld [vmem:[%s9723_s17 + $0x984] ss:$16 sps:$4 sm:$0xff]  }
 0x314   : > { %6685 = vmatprep.subr.bf16.mxu1 %v8562_v3  ;;  %v8631_v3 = vld [vmem:[%s9723_s17 + $0x824] ss:$16 sps:$4 sm:$0xff]  }
 0x316   : > { %6358 = vmatpush1.bf16.msra.mxu0 %v8557_v6  ;;  %v8634_v6 = vld [vmem:[%s9723_s17 + $0x82c] ss:$16 sps:$4 sm:$0xff]  }
 0x317   : > { %6686 = vmatpush1.bf16.msra.mxu1 %v8560_v23  ;;  %6359 = vmatprep.subr.bf16.mxu0 %v8565_v7  ;;  %v8632_v23 = vld [vmem:[%s9723_s17 + $0x828] ss:$16 sps:$4 sm:$0xff]   ;;  %v8637_v7 = vld [vmem:[%s9723_s17 + $0x844] ss:$16 sps:$4 sm:$0xff]  }
 0x318   : > { %6687 = vmatprep.subr.bf16.mxu1 %v8568_v25  ;;  %v8640_v25 = vld [vmem:[%s9723_s17 + $0x84c] ss:$16 sps:$4 sm:$0xff]  }
 0x31a   : > { %6360 = vmatpush1.bf16.msra.mxu0 %v8563_v31  ;;  %v8635_v31 = vld [vmem:[%s9723_s17 + $0x840] ss:$16 sps:$4 sm:$0xff]  }
 0x31b   : > { %6688 = vmatpush1.bf16.msra.mxu1 %v8566_v35  ;;  %6361 = vmatprep.subr.bf16.mxu0 %v8571_v40  ;;  %v8638_v35 = vld [vmem:[%s9723_s17 + $0x848] ss:$16 sps:$4 sm:$0xff]   ;;  %v8643_v40 = vld [vmem:[%s9723_s17 + $0x864] ss:$16 sps:$4 sm:$0xff]  }
 0x31c   : > { %6689 = vmatprep.subr.bf16.mxu1 %v8574_v27  ;;  %v8646_v27 = vld [vmem:[%s9723_s17 + $0x86c] ss:$16 sps:$4 sm:$0xff]  }
 0x31e   : > { %6362 = vmatpush1.bf16.msra.mxu0 %v8569_v44  ;;  %v8641_v44 = vld [vmem:[%s9723_s17 + $0x860] ss:$16 sps:$4 sm:$0xff]  }
 0x31f   : > { %6690 = vmatpush1.bf16.msra.mxu1 %v8572_v54  ;;  %6363 = vmatprep.subr.bf16.mxu0 %v8577_v59  ;;  %v8644_v54 = vld [vmem:[%s9723_s17 + $0x868] ss:$16 sps:$4 sm:$0xff]   ;;  %v8649_v59 = vld [vmem:[%s9723_s17 + $0x884] ss:$16 sps:$4 sm:$0xff]  }
 0x320   : > { %6691 = vmatprep.subr.bf16.mxu1 %v8580_v18  ;;  %v8652_v18 = vld [vmem:[%s9723_s17 + $0x88c] ss:$16 sps:$4 sm:$0xff]  }
 0x322   : > { %6364 = vmatpush1.bf16.msra.mxu0 %v8575_v42  ;;  %v8647_v42 = vld [vmem:[%s9723_s17 + $0x880] ss:$16 sps:$4 sm:$0xff]  }
 0x323   : > { %6692 = vmatpush1.bf16.msra.mxu1 %v8578_v38  ;;  %6365 = vmatprep.subr.bf16.mxu0 %v8583_v50  ;;  %v8650_v38 = vld [vmem:[%s9723_s17 + $0x888] ss:$16 sps:$4 sm:$0xff]   ;;  %v8655_v50 = vld [vmem:[%s9723_s17 + $0x8a4] ss:$16 sps:$4 sm:$0xff]  }
 0x324   : > { %6693 = vmatprep.subr.bf16.mxu1 %v8586_v53  ;;  %v8658_v53 = vld [vmem:[%s9723_s17 + $0x8ac] ss:$16 sps:$4 sm:$0xff]  }
 0x326   : > { %6366 = vmatpush1.bf16.msra.mxu0 %v8581_v57  ;;  %v8653_v57 = vld [vmem:[%s9723_s17 + $0x8a0] ss:$16 sps:$4 sm:$0xff]  }
 0x327   : > { %6694 = vmatpush1.bf16.msra.mxu1 %v8584_v26  ;;  %6367 = vmatprep.subr.bf16.mxu0 %v8589_v33  ;;  %v8656_v26 = vld [vmem:[%s9723_s17 + $0x8a8] ss:$16 sps:$4 sm:$0xff]   ;;  %v8661_v33 = vld [vmem:[%s9723_s17 + $0x8c4] ss:$16 sps:$4 sm:$0xff]  }
 0x328   : > { %6695 = vmatprep.subr.bf16.mxu1 %v8592_v47  ;;  %v8664_v47 = vld [vmem:[%s9723_s17 + $0x8cc] ss:$16 sps:$4 sm:$0xff]  }
 0x32a   : > { %6368 = vmatpush1.bf16.msra.mxu0 %v8587_v56  ;;  %v8659_v56 = vld [vmem:[%s9723_s17 + $0x8c0] ss:$16 sps:$4 sm:$0xff]  }
 0x32b   : > { %6696 = vmatpush1.bf16.msra.mxu1 %v8590_v24  ;;  %6369 = vmatprep.subr.bf16.mxu0 %v8595_v36  ;;  %v8662_v24 = vld [vmem:[%s9723_s17 + $0x8c8] ss:$16 sps:$4 sm:$0xff]   ;;  %v8667_v36 = vld [vmem:[%s9723_s17 + $0x8e4] ss:$16 sps:$4 sm:$0xff]  }
 0x32c   : > { %6697 = vmatprep.subr.bf16.mxu1 %v8598_v8  ;;  %v8670_v8 = vld [vmem:[%s9723_s17 + $0x8ec] ss:$16 sps:$4 sm:$0xff]  }
 0x32e   : > { %6370 = vmatpush1.bf16.msra.mxu0 %v8593_v48  ;;  %v8665_v48 = vld [vmem:[%s9723_s17 + $0x8e0] ss:$16 sps:$4 sm:$0xff]  }
 0x32f   : > { %6698 = vmatpush1.bf16.msra.mxu1 %v8596_v10  ;;  %6371 = vmatprep.subr.bf16.mxu0 %v8601_v52  ;;  %v8668_v10 = vld [vmem:[%s9723_s17 + $0x8e8] ss:$16 sps:$4 sm:$0xff]   ;;  %v8673_v52 = vld [vmem:[%s9723_s17 + $0x904] ss:$16 sps:$4 sm:$0xff]  }
 0x330   : > { %6699 = vmatprep.subr.bf16.mxu1 %v8604_v46  ;;  %v8676_v46 = vld [vmem:[%s9723_s17 + $0x90c] ss:$16 sps:$4 sm:$0xff]  }
 0x332   : > { %6372 = vmatpush1.bf16.msra.mxu0 %v8599_v45  ;;  %v8671_v45 = vld [vmem:[%s9723_s17 + $0x900] ss:$16 sps:$4 sm:$0xff]  }
 0x333   : > { %6700 = vmatpush1.bf16.msra.mxu1 %v8602_v39  ;;  %6373 = vmatprep.subr.bf16.mxu0 %v8607_v58  ;;  %v8674_v39 = vld [vmem:[%s9723_s17 + $0x908] ss:$16 sps:$4 sm:$0xff]   ;;  %v8679_v58 = vld [vmem:[%s9723_s17 + $0x924] ss:$16 sps:$4 sm:$0xff]  }
 0x334   : > { %6701 = vmatprep.subr.bf16.mxu1 %v8610_v14  ;;  %v8682_v14 = vld [vmem:[%s9723_s17 + $0x92c] ss:$16 sps:$4 sm:$0xff]  }
 0x336   : > { %6374 = vmatpush1.bf16.msra.mxu0 %v8605_v62  ;;  %v8677_v62 = vld [vmem:[%s9723_s17 + $0x920] ss:$16 sps:$4 sm:$0xff]  }
 0x337   : > { %6702 = vmatpush1.bf16.msra.mxu1 %v8608_v0  ;;  %6375 = vmatprep.subr.bf16.mxu0 %v8613_v11  ;;  %v8680_v0 = vld [vmem:[%s9723_s17 + $0x928] ss:$16 sps:$4 sm:$0xff]   ;;  %v8685_v11 = vld [vmem:[%s9723_s17 + $0x944] ss:$16 sps:$4 sm:$0xff]  }
 0x338   : > { %6703 = vmatprep.subr.bf16.mxu1 %v8616_v61  ;;  %v8688_v61 = vld [vmem:[%s9723_s17 + $0x94c] ss:$16 sps:$4 sm:$0xff]  }
 0x33a   : > { %6376 = vmatpush1.bf16.msra.mxu0 %v8611_v22  ;;  %v8683_v22 = vld [vmem:[%s9723_s17 + $0x940] ss:$16 sps:$4 sm:$0xff]  }
 0x33b   : > { %6704 = vmatpush1.bf16.msra.mxu1 %v8614_v49  ;;  %6377 = vmatprep.subr.bf16.mxu0 %v8619_v4  ;;  %v8686_v49 = vld [vmem:[%s9723_s17 + $0x948] ss:$16 sps:$4 sm:$0xff]   ;;  %v8691_v4 = vld [vmem:[%s9723_s17 + $0x964] ss:$16 sps:$4 sm:$0xff]  }
 0x33c   : > { %6705 = vmatprep.subr.bf16.mxu1 %v8622_v63  ;;  %v8694_v63 = vld [vmem:[%s9723_s17 + $0x96c] ss:$16 sps:$4 sm:$0xff]  }
 0x33e   : > { %6378 = vmatpush1.bf16.msra.mxu0 %v8617_v29  ;;  %v8689_v29 = vld [vmem:[%s9723_s17 + $0x960] ss:$16 sps:$4 sm:$0xff]  }
 0x33f   : > { %6706 = vmatpush1.bf16.msra.mxu1 %v8620_v20  ;;  %6388 = vmatprep.subr.bf16.mxu0 %v8625_v2  ;;  %v8692_v20 = vld [vmem:[%s9723_s17 + $0x968] ss:$16 sps:$4 sm:$0xff]   ;;  %v8700_v2 = vld [vmem:[%s9723_s17 + $0x98c] ss:$16 sps:$4 sm:$0xff]  }
 0x340   : > { %6716 = vmatprep.subr.bf16.mxu1 %v8628_v15  ;;  %v8695_v15 = vld [vmem:[%s9723_s17 + $0x980] ss:$16 sps:$4 sm:$0xff]  }
 0x341   : > { %6380 = vmatmul.mubr.bf16.vlgmr.msra.gmra.mrb[16].mxu0 %v3142_v21 }
 0x342   : > { %6708 = vmatmul.mubr.bf16.vlgmr.msra.gmra.mrb[16].mxu1 %v3142_v21  ;;  %6389 = vmatpush1.bf16.msra.mxu0 %v8623_v16  ;;  %v8703_v16 = vld [vmem:[%s9723_s17 + $0x9a4] ss:$16 sps:$4 sm:$0xff]   ;;  %v8706_v21 = vld [vmem:[%s9723_s17 + $0x9ac] ss:$16 sps:$4 sm:$0xff]  }
 0x343   : > { %6420 = vmatprep.mubr.bf16.mxu0 %v3145_v13  ;;  %6717 = vmatpush1.bf16.msra.mxu1 %v8626_v51  ;;  %v8701_v51 = vld [vmem:[%s9723_s17 + $0x9a0] ss:$16 sps:$4 sm:$0xff]  }
 0x344   : > { %6748 = vmatprep.mubr.bf16.mxu1 %v3145_v13  ;;  %6390 = vmatprep.subr.bf16.mxu0 %v8631_v3  ;;  %v8704_v3 = vld [vmem:[%s9723_s17 + $0x9a8] ss:$16 sps:$4 sm:$0xff]   ;;  %v8709_v13 = vld [vmem:[%s9723_s17 + $0x9c4] ss:$16 sps:$4 sm:$0xff]  }
 0x345   : > { %6718 = vmatprep.subr.bf16.mxu1 %v8634_v6  ;;  %v8712_v6 = vld [vmem:[%s9723_s17 + $0x9cc] ss:$16 sps:$4 sm:$0xff]  }
 0x346   : > { %6391 = vmatpush1.bf16.msra.mxu0 %v8629_v55  ;;  %v8707_v55 = vld [vmem:[%s9723_s17 + $0x9c0] ss:$16 sps:$4 sm:$0xff]  }
 0x347   : > { %6719 = vmatpush1.bf16.msra.mxu1 %v8632_v23  ;;  %6392 = vmatprep.subr.bf16.mxu0 %v8637_v7  ;;  %v8710_v23 = vld [vmem:[%s9723_s17 + $0x9c8] ss:$16 sps:$4 sm:$0xff]   ;;  %v8715_v7 = vld [vmem:[%s9723_s17 + $0x9e4] ss:$16 sps:$4 sm:$0xff]  }
 0x348   : > { %6720 = vmatprep.subr.bf16.mxu1 %v8640_v25  ;;  %v8718_v25 = vld [vmem:[%s9723_s17 + $0x9ec] ss:$16 sps:$4 sm:$0xff]  }
 0x34a   : > { %6393 = vmatpush1.bf16.msra.mxu0 %v8635_v31  ;;  %v8713_v31 = vld [vmem:[%s9723_s17 + $0x9e0] ss:$16 sps:$4 sm:$0xff]  }
 0x34b   : > { %6721 = vmatpush1.bf16.msra.mxu1 %v8638_v35  ;;  %6394 = vmatprep.subr.bf16.mxu0 %v8643_v40  ;;  %v8716_v35 = vld [vmem:[%s9723_s17 + $0x9e8] ss:$16 sps:$4 sm:$0xff]   ;;  %v3128_v40 = vmax.f32 %v10555_v17, 0.0 }
 0x34c   : > { %6722 = vmatprep.subr.bf16.mxu1 %v8646_v27  ;;  %v8721_v27 = vld [vmem:[%s9723_s17 + $0xa04] ss:$16 sps:$4 sm:$0xff]  }
 0x34e   : > { %6395 = vmatpush1.bf16.msra.mxu0 %v8641_v44  ;;  %v8724_v44 = vld [vmem:[%s9723_s17 + $0xa0c] ss:$16 sps:$4 sm:$0xff]  }
 0x34f   : > { %6723 = vmatpush1.bf16.msra.mxu1 %v8644_v54  ;;  %6396 = vmatprep.subr.bf16.mxu0 %v8649_v59  ;;  %v3131_v54 = vmax.f32 %v10558_v41, 0.0  ;;  %v8719_v59 = vld [vmem:[%s9723_s17 + $0xa00] ss:$16 sps:$4 sm:$0xff]  }
 0x350   : > { %6724 = vmatprep.subr.bf16.mxu1 %v8652_v18  ;;  %v3144_v18 = vpack.c.bf16 %v3128_v40, %v3128_v40  ;;  %v8725_v41 = vld [vmem:[%s9723_s17 + $0xa20] ss:$16 sps:$4 sm:$0xff]  }
 0x351   : > { %v3147_v17 = vpack.c.bf16 %v3131_v54, %v3131_v54  ;;  %v8791_v40 = vld [vmem:[%s9723_s17 + $0xb80] ss:$16 sps:$4 sm:$0xff]   ;;  %v8802_v54 = vld [vmem:[%s9723_s17 + $0xbac] ss:$16 sps:$4 sm:$0xff]  }
 0x352   : > { %6397 = vmatpush1.bf16.msra.mxu0 %v8647_v42  ;;  %v8722_v42 = vld [vmem:[%s9723_s17 + $0xa08] ss:$16 sps:$4 sm:$0xff]  }
 0x353   : > { %6725 = vmatpush1.bf16.msra.mxu1 %v8650_v38  ;;  %6398 = vmatprep.subr.bf16.mxu0 %v8655_v50  ;;  %v8727_v38 = vld [vmem:[%s9723_s17 + $0xa24] ss:$16 sps:$4 sm:$0xff]   ;;  %v8730_v50 = vld [vmem:[%s9723_s17 + $0xa2c] ss:$16 sps:$4 sm:$0xff]  }
 0x354   : > { %6726 = vmatprep.subr.bf16.mxu1 %v8658_v53  ;;  %v8728_v53 = vld [vmem:[%s9723_s17 + $0xa28] ss:$16 sps:$4 sm:$0xff]  }
 0x356   : > { %6399 = vmatpush1.bf16.msra.mxu0 %v8653_v57  ;;  %v8733_v57 = vld [vmem:[%s9723_s17 + $0xa44] ss:$16 sps:$4 sm:$0xff]  }
 0x357   : > { %6727 = vmatpush1.bf16.msra.mxu1 %v8656_v26  ;;  %6400 = vmatprep.subr.bf16.mxu0 %v8661_v33  ;;  %v8736_v26 = vld [vmem:[%s9723_s17 + $0xa4c] ss:$16 sps:$4 sm:$0xff]   ;;  %v8731_v33 = vld [vmem:[%s9723_s17 + $0xa40] ss:$16 sps:$4 sm:$0xff]  }
 0x358   : > { %6728 = vmatprep.subr.bf16.mxu1 %v8664_v47  ;;  %v8734_v47 = vld [vmem:[%s9723_s17 + $0xa48] ss:$16 sps:$4 sm:$0xff]  }
 0x35a   : > { %6401 = vmatpush1.bf16.msra.mxu0 %v8659_v56  ;;  %v8739_v56 = vld [vmem:[%s9723_s17 + $0xa64] ss:$16 sps:$4 sm:$0xff]  }
 0x35b   : > { %6729 = vmatpush1.bf16.msra.mxu1 %v8662_v24  ;;  %6402 = vmatprep.subr.bf16.mxu0 %v8667_v36  ;;  %v8742_v24 = vld [vmem:[%s9723_s17 + $0xa6c] ss:$16 sps:$4 sm:$0xff]   ;;  %v8737_v36 = vld [vmem:[%s9723_s17 + $0xa60] ss:$16 sps:$4 sm:$0xff]  }
 0x35c   : > { %6730 = vmatprep.subr.bf16.mxu1 %v8670_v8  ;;  %v8740_v8 = vld [vmem:[%s9723_s17 + $0xa68] ss:$16 sps:$4 sm:$0xff]  }
 0x35e   : > { %6403 = vmatpush1.bf16.msra.mxu0 %v8665_v48  ;;  %v8745_v48 = vld [vmem:[%s9723_s17 + $0xa84] ss:$16 sps:$4 sm:$0xff]  }
 0x35f   : > { %6731 = vmatpush1.bf16.msra.mxu1 %v8668_v10  ;;  %6404 = vmatprep.subr.bf16.mxu0 %v8673_v52  ;;  %v8748_v10 = vld [vmem:[%s9723_s17 + $0xa8c] ss:$16 sps:$4 sm:$0xff]   ;;  %v8743_v52 = vld [vmem:[%s9723_s17 + $0xa80] ss:$16 sps:$4 sm:$0xff]  }
 0x360   : > { %6732 = vmatprep.subr.bf16.mxu1 %v8676_v46  ;;  %v8746_v46 = vld [vmem:[%s9723_s17 + $0xa88] ss:$16 sps:$4 sm:$0xff]  }
 0x362   : > { %6405 = vmatpush1.bf16.msra.mxu0 %v8671_v45  ;;  %v8751_v45 = vld [vmem:[%s9723_s17 + $0xaa4] ss:$16 sps:$4 sm:$0xff]  }
 0x363   : > { %6733 = vmatpush1.bf16.msra.mxu1 %v8674_v39  ;;  %6406 = vmatprep.subr.bf16.mxu0 %v8679_v58  ;;  %v8754_v39 = vld [vmem:[%s9723_s17 + $0xaac] ss:$16 sps:$4 sm:$0xff]   ;;  %v8749_v58 = vld [vmem:[%s9723_s17 + $0xaa0] ss:$16 sps:$4 sm:$0xff]  }
 0x364   : > { %6734 = vmatprep.subr.bf16.mxu1 %v8682_v14  ;;  %v8752_v14 = vld [vmem:[%s9723_s17 + $0xaa8] ss:$16 sps:$4 sm:$0xff]  }
 0x366   : > { %6407 = vmatpush1.bf16.msra.mxu0 %v8677_v62  ;;  %v8757_v62 = vld [vmem:[%s9723_s17 + $0xac4] ss:$16 sps:$4 sm:$0xff]  }
 0x367   : > { %6735 = vmatpush1.bf16.msra.mxu1 %v8680_v0  ;;  %6408 = vmatprep.subr.bf16.mxu0 %v8685_v11  ;;  %v8760_v0 = vld [vmem:[%s9723_s17 + $0xacc] ss:$16 sps:$4 sm:$0xff]   ;;  %v8755_v11 = vld [vmem:[%s9723_s17 + $0xac0] ss:$16 sps:$4 sm:$0xff]  }
 0x368   : > { %6736 = vmatprep.subr.bf16.mxu1 %v8688_v61  ;;  %v8758_v61 = vld [vmem:[%s9723_s17 + $0xac8] ss:$16 sps:$4 sm:$0xff]  }
 0x36a   : > { %6409 = vmatpush1.bf16.msra.mxu0 %v8683_v22  ;;  %v8763_v22 = vld [vmem:[%s9723_s17 + $0xae4] ss:$16 sps:$4 sm:$0xff]  }
 0x36b   : > { %6737 = vmatpush1.bf16.msra.mxu1 %v8686_v49  ;;  %6410 = vmatprep.subr.bf16.mxu0 %v8691_v4  ;;  %v8766_v49 = vld [vmem:[%s9723_s17 + $0xaec] ss:$16 sps:$4 sm:$0xff]   ;;  %v8761_v4 = vld [vmem:[%s9723_s17 + $0xae0] ss:$16 sps:$4 sm:$0xff]  }
 0x36c   : > { %6738 = vmatprep.subr.bf16.mxu1 %v8694_v63  ;;  %v8764_v63 = vld [vmem:[%s9723_s17 + $0xae8] ss:$16 sps:$4 sm:$0xff]  }
 0x36e   : > { %6411 = vmatpush1.bf16.msra.mxu0 %v8689_v29  ;;  %v8769_v29 = vld [vmem:[%s9723_s17 + $0xb04] ss:$16 sps:$4 sm:$0xff]  }
 0x36f   : > { %6739 = vmatpush1.bf16.msra.mxu1 %v8692_v20  ;;  %6412 = vmatprep.subr.bf16.mxu0 %v8697_v1  ;;  %v8772_v20 = vld [vmem:[%s9723_s17 + $0xb0c] ss:$16 sps:$4 sm:$0xff]   ;;  %v8767_v1 = vld [vmem:[%s9723_s17 + $0xb00] ss:$16 sps:$4 sm:$0xff]  }
 0x370   : > { %6740 = vmatprep.subr.bf16.mxu1 %v8700_v2  ;;  %v8770_v2 = vld [vmem:[%s9723_s17 + $0xb08] ss:$16 sps:$4 sm:$0xff]  }
 0x372   : > { %6413 = vmatpush1.bf16.msra.mxu0 %v8695_v15  ;;  %v8775_v15 = vld [vmem:[%s9723_s17 + $0xb24] ss:$16 sps:$4 sm:$0xff]  }
 0x373   : > { %6741 = vmatpush1.bf16.msra.mxu1 %v8698_v30  ;;  %6414 = vmatprep.subr.bf16.mxu0 %v8703_v16  ;;  %v8778_v30 = vld [vmem:[%s9723_s17 + $0xb2c] ss:$16 sps:$4 sm:$0xff]   ;;  %v8773_v16 = vld [vmem:[%s9723_s17 + $0xb20] ss:$16 sps:$4 sm:$0xff]  }
 0x374   : > { %6742 = vmatprep.subr.bf16.mxu1 %v8706_v21  ;;  %v8776_v21 = vld [vmem:[%s9723_s17 + $0xb28] ss:$16 sps:$4 sm:$0xff]  }
 0x376   : > { %6415 = vmatpush1.bf16.msra.mxu0 %v8701_v51  ;;  %v8781_v51 = vld [vmem:[%s9723_s17 + $0xb44] ss:$16 sps:$4 sm:$0xff]  }
 0x377   : > { %6743 = vmatpush1.bf16.msra.mxu1 %v8704_v3  ;;  %6416 = vmatprep.subr.bf16.mxu0 %v8709_v13  ;;  %v8784_v3 = vld [vmem:[%s9723_s17 + $0xb4c] ss:$16 sps:$4 sm:$0xff]   ;;  %v8779_v13 = vld [vmem:[%s9723_s17 + $0xb40] ss:$16 sps:$4 sm:$0xff]  }
 0x378   : > { %6744 = vmatprep.subr.bf16.mxu1 %v8712_v6  ;;  %v8782_v6 = vld [vmem:[%s9723_s17 + $0xb48] ss:$16 sps:$4 sm:$0xff]  }
 0x37a   : > { %6417 = vmatpush1.bf16.msra.mxu0 %v8707_v55  ;;  %v8787_v55 = vld [vmem:[%s9723_s17 + $0xb64] ss:$16 sps:$4 sm:$0xff]  }
 0x37b   : > { %6745 = vmatpush1.bf16.msra.mxu1 %v8710_v23  ;;  %6418 = vmatprep.subr.bf16.mxu0 %v8715_v7  ;;  %v8790_v23 = vld [vmem:[%s9723_s17 + $0xb6c] ss:$16 sps:$4 sm:$0xff]   ;;  %v8785_v7 = vld [vmem:[%s9723_s17 + $0xb60] ss:$16 sps:$4 sm:$0xff]  }
 0x37c   : > { %6746 = vmatprep.subr.bf16.mxu1 %v8718_v25  ;;  %v8788_v25 = vld [vmem:[%s9723_s17 + $0xb68] ss:$16 sps:$4 sm:$0xff]  }
 0x37e   : > { %6419 = vmatpush1.bf16.msra.mxu0 %v8713_v31  ;;  %v8793_v31 = vld [vmem:[%s9723_s17 + $0xb84] ss:$16 sps:$4 sm:$0xff]  }
 0x37f   : > { %6747 = vmatpush1.bf16.msra.mxu1 %v8716_v35  ;;  %6429 = vmatprep.subr.bf16.mxu0 %v8721_v27  ;;  %v8796_v35 = vld [vmem:[%s9723_s17 + $0xb8c] ss:$16 sps:$4 sm:$0xff]   ;;  %v8794_v27 = vld [vmem:[%s9723_s17 + $0xb88] ss:$16 sps:$4 sm:$0xff]  }
 0x380   : > { %6757 = vmatprep.subr.bf16.mxu1 %v8724_v44  ;;  %v8799_v44 = vld [vmem:[%s9723_s17 + $0xba4] ss:$16 sps:$4 sm:$0xff]  }
 0x381   : > { %6421 = vmatmul.mubr.bf16.vlgmr.msra.gmra.mrb[16].mxu0 %v3144_v18 }
 0x382   : > { %6749 = vmatmul.mubr.bf16.vlgmr.msra.gmra.mrb[16].mxu1 %v3144_v18  ;;  %6430 = vmatpush1.bf16.msra.mxu0 %v8719_v59  ;;  %v8797_v59 = vld [vmem:[%s9723_s17 + $0xba0] ss:$16 sps:$4 sm:$0xff]   ;;  %v8800_v18 = vld [vmem:[%s9723_s17 + $0xba8] ss:$16 sps:$4 sm:$0xff]  }
 0x383   : > { %6461 = vmatprep.mubr.bf16.mxu0 %v3147_v17  ;;  %6758 = vmatpush1.bf16.msra.mxu1 %v8722_v42  ;;  %v8805_v42 = vld [vmem:[%s9723_s17 + $0xbc4] ss:$16 sps:$4 sm:$0xff]  }
 0x384   : > { %6789 = vmatprep.mubr.bf16.mxu1 %v3147_v17  ;;  %6431 = vmatprep.subr.bf16.mxu0 %v8727_v38  ;;  %v8808_v38 = vld [vmem:[%s9723_s17 + $0xbcc] ss:$16 sps:$4 sm:$0xff]   ;;  %v8803_v17 = vld [vmem:[%s9723_s17 + $0xbc0] ss:$16 sps:$4 sm:$0xff]  }
 0x385   : > { %6759 = vmatprep.subr.bf16.mxu1 %v8730_v50  ;;  %v8806_v50 = vld [vmem:[%s9723_s17 + $0xbc8] ss:$16 sps:$4 sm:$0xff]  }
 0x386   : > { %6432 = vmatpush1.bf16.msra.mxu0 %v8725_v41  ;;  %v8811_v41 = vld [vmem:[%s9723_s17 + $0xbe4] ss:$16 sps:$4 sm:$0xff]  }
 0x387   : > { %6760 = vmatpush1.bf16.msra.mxu1 %v8728_v53  ;;  %6433 = vmatprep.subr.bf16.mxu0 %v8733_v57  ;;  %v8814_v53 = vld [vmem:[%s9723_s17 + $0xbec] ss:$16 sps:$4 sm:$0xff]   ;;  %v8809_v57 = vld [vmem:[%s9723_s17 + $0xbe0] ss:$16 sps:$4 sm:$0xff]  }
 0x388   : > { %6761 = vmatprep.subr.bf16.mxu1 %v8736_v26  ;;  %v8812_v26 = vld [vmem:[%s9723_s17 + $0xbe8] ss:$16 sps:$4 sm:$0xff]  }
 0x38a   : > { %6434 = vmatpush1.bf16.msra.mxu0 %v8731_v33  ;;  %v3130_v33 = vmax.f32 %v10561_v9, 0.0 }
 0x38b   : > { %6762 = vmatpush1.bf16.msra.mxu1 %v8734_v47  ;;  %6435 = vmatprep.subr.bf16.mxu0 %v8739_v56  ;;  %v8817_v47 = vld [vmem:[%s9723_s17 + $0xc04] ss:$16 sps:$4 sm:$0xff]   ;;  %v8820_v56 = vld [vmem:[%s9723_s17 + $0xc0c] ss:$16 sps:$4 sm:$0xff]  }
 0x38c   : > { %6763 = vmatprep.subr.bf16.mxu1 %v8742_v24  ;;  %v3133_v24 = vmax.f32 %v10566_v19, 0.0  ;;  %v8821_v19 = vld [vmem:[%s9723_s17 + $0xc20] ss:$16 sps:$4 sm:$0xff]  }
 0x38e   : > { %6436 = vmatpush1.bf16.msra.mxu0 %v8737_v36  ;;  %v8815_v36 = vld [vmem:[%s9723_s17 + $0xc00] ss:$16 sps:$4 sm:$0xff]   ;;  %v3149_v9 = vpack.c.bf16 %v3133_v24, %v3133_v24  ;;  %v8896_v24 = vld [vmem:[%s9723_s17 + $0xda8] ss:$16 sps:$4 sm:$0xff]  }
 0x38f   : > { %6764 = vmatpush1.bf16.msra.mxu1 %v8740_v8  ;;  %6437 = vmatprep.subr.bf16.mxu0 %v8745_v48  ;;  %v3146_v8 = vpack.c.bf16 %v3130_v33, %v3130_v33  ;;  %v8818_v48 = vld [vmem:[%s9723_s17 + $0xc08] ss:$16 sps:$4 sm:$0xff]   ;;  %v8895_v33 = vld [vmem:[%s9723_s17 + $0xda4] ss:$16 sps:$4 sm:$0xff]  }
 0x390   : > { %6765 = vmatprep.subr.bf16.mxu1 %v8748_v10  ;;  %v8823_v10 = vld [vmem:[%s9723_s17 + $0xc24] ss:$16 sps:$4 sm:$0xff]  }
 0x392   : > { %6438 = vmatpush1.bf16.msra.mxu0 %v8743_v52  ;;  %v8826_v52 = vld [vmem:[%s9723_s17 + $0xc2c] ss:$16 sps:$4 sm:$0xff]  }
 0x393   : > { %6766 = vmatpush1.bf16.msra.mxu1 %v8746_v46  ;;  %6439 = vmatprep.subr.bf16.mxu0 %v8751_v45  ;;  %v8824_v46 = vld [vmem:[%s9723_s17 + $0xc28] ss:$16 sps:$4 sm:$0xff]   ;;  %v8829_v45 = vld [vmem:[%s9723_s17 + $0xc44] ss:$16 sps:$4 sm:$0xff]  }
 0x394   : > { %6767 = vmatprep.subr.bf16.mxu1 %v8754_v39  ;;  %v8832_v39 = vld [vmem:[%s9723_s17 + $0xc4c] ss:$16 sps:$4 sm:$0xff]  }
 0x396   : > { %6440 = vmatpush1.bf16.msra.mxu0 %v8749_v58  ;;  %v8827_v58 = vld [vmem:[%s9723_s17 + $0xc40] ss:$16 sps:$4 sm:$0xff]  }
 0x397   : > { %6768 = vmatpush1.bf16.msra.mxu1 %v8752_v14  ;;  %6441 = vmatprep.subr.bf16.mxu0 %v8757_v62  ;;  %v8830_v14 = vld [vmem:[%s9723_s17 + $0xc48] ss:$16 sps:$4 sm:$0xff]   ;;  %v8835_v62 = vld [vmem:[%s9723_s17 + $0xc64] ss:$16 sps:$4 sm:$0xff]  }
 0x398   : > { %6769 = vmatprep.subr.bf16.mxu1 %v8760_v0  ;;  %v8838_v0 = vld [vmem:[%s9723_s17 + $0xc6c] ss:$16 sps:$4 sm:$0xff]  }
 0x39a   : > { %6442 = vmatpush1.bf16.msra.mxu0 %v8755_v11  ;;  %v8833_v11 = vld [vmem:[%s9723_s17 + $0xc60] ss:$16 sps:$4 sm:$0xff]  }
 0x39b   : > { %6770 = vmatpush1.bf16.msra.mxu1 %v8758_v61  ;;  %6443 = vmatprep.subr.bf16.mxu0 %v8763_v22  ;;  %v8836_v61 = vld [vmem:[%s9723_s17 + $0xc68] ss:$16 sps:$4 sm:$0xff]   ;;  %v8841_v22 = vld [vmem:[%s9723_s17 + $0xc84] ss:$16 sps:$4 sm:$0xff]  }
 0x39c   : > { %6771 = vmatprep.subr.bf16.mxu1 %v8766_v49  ;;  %v8844_v49 = vld [vmem:[%s9723_s17 + $0xc8c] ss:$16 sps:$4 sm:$0xff]  }
 0x39e   : > { %6444 = vmatpush1.bf16.msra.mxu0 %v8761_v4  ;;  %v8839_v4 = vld [vmem:[%s9723_s17 + $0xc80] ss:$16 sps:$4 sm:$0xff]  }
 0x39f   : > { %6772 = vmatpush1.bf16.msra.mxu1 %v8764_v63  ;;  %6445 = vmatprep.subr.bf16.mxu0 %v8769_v29  ;;  %v8842_v63 = vld [vmem:[%s9723_s17 + $0xc88] ss:$16 sps:$4 sm:$0xff]   ;;  %v8847_v29 = vld [vmem:[%s9723_s17 + $0xca4] ss:$16 sps:$4 sm:$0xff]  }
 0x3a0   : > { %6773 = vmatprep.subr.bf16.mxu1 %v8772_v20  ;;  %v8850_v20 = vld [vmem:[%s9723_s17 + $0xcac] ss:$16 sps:$4 sm:$0xff]  }
 0x3a2   : > { %6446 = vmatpush1.bf16.msra.mxu0 %v8767_v1  ;;  %v8845_v1 = vld [vmem:[%s9723_s17 + $0xca0] ss:$16 sps:$4 sm:$0xff]  }
 0x3a3   : > { %6774 = vmatpush1.bf16.msra.mxu1 %v8770_v2  ;;  %6447 = vmatprep.subr.bf16.mxu0 %v8775_v15  ;;  %v8848_v2 = vld [vmem:[%s9723_s17 + $0xca8] ss:$16 sps:$4 sm:$0xff]   ;;  %v8853_v15 = vld [vmem:[%s9723_s17 + $0xcc4] ss:$16 sps:$4 sm:$0xff]  }
 0x3a4   : > { %6775 = vmatprep.subr.bf16.mxu1 %v8778_v30  ;;  %v8856_v30 = vld [vmem:[%s9723_s17 + $0xccc] ss:$16 sps:$4 sm:$0xff]  }
 0x3a6   : > { %6448 = vmatpush1.bf16.msra.mxu0 %v8773_v16  ;;  %v8851_v16 = vld [vmem:[%s9723_s17 + $0xcc0] ss:$16 sps:$4 sm:$0xff]  }
 0x3a7   : > { %6776 = vmatpush1.bf16.msra.mxu1 %v8776_v21  ;;  %6449 = vmatprep.subr.bf16.mxu0 %v8781_v51  ;;  %v8854_v21 = vld [vmem:[%s9723_s17 + $0xcc8] ss:$16 sps:$4 sm:$0xff]   ;;  %v8859_v51 = vld [vmem:[%s9723_s17 + $0xce4] ss:$16 sps:$4 sm:$0xff]  }
 0x3a8   : > { %6777 = vmatprep.subr.bf16.mxu1 %v8784_v3  ;;  %v8862_v3 = vld [vmem:[%s9723_s17 + $0xcec] ss:$16 sps:$4 sm:$0xff]  }
 0x3aa   : > { %6450 = vmatpush1.bf16.msra.mxu0 %v8779_v13  ;;  %v8857_v13 = vld [vmem:[%s9723_s17 + $0xce0] ss:$16 sps:$4 sm:$0xff]  }
 0x3ab   : > { %6778 = vmatpush1.bf16.msra.mxu1 %v8782_v6  ;;  %6451 = vmatprep.subr.bf16.mxu0 %v8787_v55  ;;  %v8860_v6 = vld [vmem:[%s9723_s17 + $0xce8] ss:$16 sps:$4 sm:$0xff]   ;;  %v8865_v55 = vld [vmem:[%s9723_s17 + $0xd04] ss:$16 sps:$4 sm:$0xff]  }
 0x3ac   : > { %6779 = vmatprep.subr.bf16.mxu1 %v8790_v23  ;;  %v8868_v23 = vld [vmem:[%s9723_s17 + $0xd0c] ss:$16 sps:$4 sm:$0xff]  }
 0x3ae   : > { %6452 = vmatpush1.bf16.msra.mxu0 %v8785_v7  ;;  %v8863_v7 = vld [vmem:[%s9723_s17 + $0xd00] ss:$16 sps:$4 sm:$0xff]  }
 0x3af   : > { %6780 = vmatpush1.bf16.msra.mxu1 %v8788_v25  ;;  %6453 = vmatprep.subr.bf16.mxu0 %v8793_v31  ;;  %v8866_v25 = vld [vmem:[%s9723_s17 + $0xd08] ss:$16 sps:$4 sm:$0xff]   ;;  %v8871_v31 = vld [vmem:[%s9723_s17 + $0xd24] ss:$16 sps:$4 sm:$0xff]  }
 0x3b0   : > { %6781 = vmatprep.subr.bf16.mxu1 %v8796_v35  ;;  %v8874_v35 = vld [vmem:[%s9723_s17 + $0xd2c] ss:$16 sps:$4 sm:$0xff]  }
 0x3b2   : > { %6454 = vmatpush1.bf16.msra.mxu0 %v8791_v40  ;;  %v8869_v40 = vld [vmem:[%s9723_s17 + $0xd20] ss:$16 sps:$4 sm:$0xff]  }
 0x3b3   : > { %6782 = vmatpush1.bf16.msra.mxu1 %v8794_v27  ;;  %6455 = vmatprep.subr.bf16.mxu0 %v8799_v44  ;;  %v8872_v27 = vld [vmem:[%s9723_s17 + $0xd28] ss:$16 sps:$4 sm:$0xff]   ;;  %v8877_v44 = vld [vmem:[%s9723_s17 + $0xd44] ss:$16 sps:$4 sm:$0xff]  }
 0x3b4   : > { %6783 = vmatprep.subr.bf16.mxu1 %v8802_v54  ;;  %v8880_v54 = vld [vmem:[%s9723_s17 + $0xd4c] ss:$16 sps:$4 sm:$0xff]  }
 0x3b6   : > { %6456 = vmatpush1.bf16.msra.mxu0 %v8797_v59  ;;  %v8875_v59 = vld [vmem:[%s9723_s17 + $0xd40] ss:$16 sps:$4 sm:$0xff]  }
 0x3b7   : > { %6784 = vmatpush1.bf16.msra.mxu1 %v8800_v18  ;;  %6457 = vmatprep.subr.bf16.mxu0 %v8805_v42  ;;  %v8878_v18 = vld [vmem:[%s9723_s17 + $0xd48] ss:$16 sps:$4 sm:$0xff]   ;;  %v8883_v42 = vld [vmem:[%s9723_s17 + $0xd64] ss:$16 sps:$4 sm:$0xff]  }
 0x3b8   : > { %6785 = vmatprep.subr.bf16.mxu1 %v8808_v38  ;;  %v8886_v38 = vld [vmem:[%s9723_s17 + $0xd6c] ss:$16 sps:$4 sm:$0xff]  }
 0x3ba   : > { %6458 = vmatpush1.bf16.msra.mxu0 %v8803_v17  ;;  %v8881_v17 = vld [vmem:[%s9723_s17 + $0xd60] ss:$16 sps:$4 sm:$0xff]  }
 0x3bb   : > { %6786 = vmatpush1.bf16.msra.mxu1 %v8806_v50  ;;  %6459 = vmatprep.subr.bf16.mxu0 %v8811_v41  ;;  %v8884_v50 = vld [vmem:[%s9723_s17 + $0xd68] ss:$16 sps:$4 sm:$0xff]   ;;  %v8889_v41 = vld [vmem:[%s9723_s17 + $0xd84] ss:$16 sps:$4 sm:$0xff]  }
 0x3bc   : > { %6787 = vmatprep.subr.bf16.mxu1 %v8814_v53  ;;  %v8892_v53 = vld [vmem:[%s9723_s17 + $0xd8c] ss:$16 sps:$4 sm:$0xff]  }
 0x3be   : > { %6460 = vmatpush1.bf16.msra.mxu0 %v8809_v57  ;;  %v8887_v57 = vld [vmem:[%s9723_s17 + $0xd80] ss:$16 sps:$4 sm:$0xff]  }
 0x3bf   : > { %6788 = vmatpush1.bf16.msra.mxu1 %v8812_v26  ;;  %6470 = vmatprep.subr.bf16.mxu0 %v8817_v47  ;;  %v8890_v26 = vld [vmem:[%s9723_s17 + $0xd88] ss:$16 sps:$4 sm:$0xff]   ;;  %v8898_v47 = vld [vmem:[%s9723_s17 + $0xdac] ss:$16 sps:$4 sm:$0xff]  }
 0x3c0   : > { %6798 = vmatprep.subr.bf16.mxu1 %v8820_v56  ;;  %v8893_v56 = vld [vmem:[%s9723_s17 + $0xda0] ss:$16 sps:$4 sm:$0xff]  }
 0x3c1   : > { %6462 = vmatmul.mubr.bf16.vlgmr.msra.gmra.mrb[16].mxu0 %v3146_v8 }
 0x3c2   : > { %6790 = vmatmul.mubr.bf16.vlgmr.msra.gmra.mrb[16].mxu1 %v3146_v8  ;;  %6471 = vmatpush1.bf16.msra.mxu0 %v8815_v36  ;;  %v8901_v36 = vld [vmem:[%s9723_s17 + $0xdc4] ss:$16 sps:$4 sm:$0xff]   ;;  %v8904_v8 = vld [vmem:[%s9723_s17 + $0xdcc] ss:$16 sps:$4 sm:$0xff]  }
 0x3c3   : > { %6502 = vmatprep.mubr.bf16.mxu0 %v3149_v9  ;;  %6799 = vmatpush1.bf16.msra.mxu1 %v8818_v48  ;;  %v8899_v48 = vld [vmem:[%s9723_s17 + $0xdc0] ss:$16 sps:$4 sm:$0xff]  }
 0x3c4   : > { %6830 = vmatprep.mubr.bf16.mxu1 %v3149_v9  ;;  %6472 = vmatprep.subr.bf16.mxu0 %v8823_v10  ;;  %v8902_v10 = vld [vmem:[%s9723_s17 + $0xdc8] ss:$16 sps:$4 sm:$0xff]   ;;  %v8907_v9 = vld [vmem:[%s9723_s17 + $0xde4] ss:$16 sps:$4 sm:$0xff]  }
 0x3c5   : > { %6800 = vmatprep.subr.bf16.mxu1 %v8826_v52  ;;  %v8910_v52 = vld [vmem:[%s9723_s17 + $0xdec] ss:$16 sps:$4 sm:$0xff]  }
 0x3c6   : > { %6473 = vmatpush1.bf16.msra.mxu0 %v8821_v19  ;;  %v8905_v19 = vld [vmem:[%s9723_s17 + $0xde0] ss:$16 sps:$4 sm:$0xff]  }
 0x3c7   : > { %6801 = vmatpush1.bf16.msra.mxu1 %v8824_v46  ;;  %6474 = vmatprep.subr.bf16.mxu0 %v8829_v45  ;;  %v8908_v46 = vld [vmem:[%s9723_s17 + $0xde8] ss:$16 sps:$4 sm:$0xff]   ;;  %v3132_v45 = vmax.f32 %v10569_v37, 0.0 }
 0x3c8   : > { %6802 = vmatprep.subr.bf16.mxu1 %v8832_v39  ;;  %v8913_v39 = vld [vmem:[%s9723_s17 + $0xe04] ss:$16 sps:$4 sm:$0xff]  }
 0x3ca   : > { %6475 = vmatpush1.bf16.msra.mxu0 %v8827_v58  ;;  %v8916_v58 = vld [vmem:[%s9723_s17 + $0xe0c] ss:$16 sps:$4 sm:$0xff]  }
 0x3cb   : > { %6803 = vmatpush1.bf16.msra.mxu1 %v8830_v14  ;;  %6476 = vmatprep.subr.bf16.mxu0 %v8835_v62  ;;  %v3135_v14 = vmax.f32 %v10571_v43, 0.0  ;;  %v8911_v62 = vld [vmem:[%s9723_s17 + $0xe00] ss:$16 sps:$4 sm:$0xff]  }
 0x3cc   : > { %6804 = vmatprep.subr.bf16.mxu1 %v8838_v0  ;;  %v3148_v0 = vpack.c.bf16 %v3132_v45, %v3132_v45  ;;  %v8917_v43 = vld [vmem:[%s9723_s17 + $0xe20] ss:$16 sps:$4 sm:$0xff]  }
 0x3cd   : > { %v3151_v37 = vpack.c.bf16 %v3135_v14, %v3135_v14  ;;  %v8989_v45 = vld [vmem:[%s9723_s17 + $0xfa0] ss:$16 sps:$4 sm:$0xff]   ;;  %v9000_v14 = vld [vmem:[%s9723_s17 + $0xfcc] ss:$16 sps:$4 sm:$0xff]  }
 0x3ce   : > { %6477 = vmatpush1.bf16.msra.mxu0 %v8833_v11  ;;  %v8914_v11 = vld [vmem:[%s9723_s17 + $0xe08] ss:$16 sps:$4 sm:$0xff]  }
 0x3cf   : > { %6805 = vmatpush1.bf16.msra.mxu1 %v8836_v61  ;;  %6478 = vmatprep.subr.bf16.mxu0 %v8841_v22  ;;  %v8919_v61 = vld [vmem:[%s9723_s17 + $0xe24] ss:$16 sps:$4 sm:$0xff]   ;;  %v8922_v22 = vld [vmem:[%s9723_s17 + $0xe2c] ss:$16 sps:$4 sm:$0xff]  }
 0x3d0   : > { %6806 = vmatprep.subr.bf16.mxu1 %v8844_v49  ;;  %v8920_v49 = vld [vmem:[%s9723_s17 + $0xe28] ss:$16 sps:$4 sm:$0xff]  }
 0x3d2   : > { %6479 = vmatpush1.bf16.msra.mxu0 %v8839_v4  ;;  %v8925_v4 = vld [vmem:[%s9723_s17 + $0xe44] ss:$16 sps:$4 sm:$0xff]  }
 0x3d3   : > { %6807 = vmatpush1.bf16.msra.mxu1 %v8842_v63  ;;  %6480 = vmatprep.subr.bf16.mxu0 %v8847_v29  ;;  %v8928_v63 = vld [vmem:[%s9723_s17 + $0xe4c] ss:$16 sps:$4 sm:$0xff]   ;;  %v8923_v29 = vld [vmem:[%s9723_s17 + $0xe40] ss:$16 sps:$4 sm:$0xff]  }
 0x3d4   : > { %6808 = vmatprep.subr.bf16.mxu1 %v8850_v20  ;;  %v8926_v20 = vld [vmem:[%s9723_s17 + $0xe48] ss:$16 sps:$4 sm:$0xff]  }
 0x3d6   : > { %6481 = vmatpush1.bf16.msra.mxu0 %v8845_v1  ;;  %v8931_v1 = vld [vmem:[%s9723_s17 + $0xe64] ss:$16 sps:$4 sm:$0xff]  }
 0x3d7   : > { %6809 = vmatpush1.bf16.msra.mxu1 %v8848_v2  ;;  %6482 = vmatprep.subr.bf16.mxu0 %v8853_v15  ;;  %v8934_v2 = vld [vmem:[%s9723_s17 + $0xe6c] ss:$16 sps:$4 sm:$0xff]   ;;  %v8929_v15 = vld [vmem:[%s9723_s17 + $0xe60] ss:$16 sps:$4 sm:$0xff]  }
 0x3d8   : > { %6810 = vmatprep.subr.bf16.mxu1 %v8856_v30  ;;  %v8932_v30 = vld [vmem:[%s9723_s17 + $0xe68] ss:$16 sps:$4 sm:$0xff]  }
 0x3da   : > { %6483 = vmatpush1.bf16.msra.mxu0 %v8851_v16  ;;  %v8937_v16 = vld [vmem:[%s9723_s17 + $0xe84] ss:$16 sps:$4 sm:$0xff]  }
 0x3db   : > { %6811 = vmatpush1.bf16.msra.mxu1 %v8854_v21  ;;  %6484 = vmatprep.subr.bf16.mxu0 %v8859_v51  ;;  %v8940_v21 = vld [vmem:[%s9723_s17 + $0xe8c] ss:$16 sps:$4 sm:$0xff]   ;;  %v8935_v51 = vld [vmem:[%s9723_s17 + $0xe80] ss:$16 sps:$4 sm:$0xff]  }
 0x3dc   : > { %6812 = vmatprep.subr.bf16.mxu1 %v8862_v3  ;;  %v8938_v3 = vld [vmem:[%s9723_s17 + $0xe88] ss:$16 sps:$4 sm:$0xff]  }
 0x3de   : > { %6485 = vmatpush1.bf16.msra.mxu0 %v8857_v13  ;;  %v8943_v13 = vld [vmem:[%s9723_s17 + $0xea4] ss:$16 sps:$4 sm:$0xff]  }
 0x3df   : > { %6813 = vmatpush1.bf16.msra.mxu1 %v8860_v6  ;;  %6486 = vmatprep.subr.bf16.mxu0 %v8865_v55  ;;  %v8946_v6 = vld [vmem:[%s9723_s17 + $0xeac] ss:$16 sps:$4 sm:$0xff]   ;;  %v8941_v55 = vld [vmem:[%s9723_s17 + $0xea0] ss:$16 sps:$4 sm:$0xff]  }
 0x3e0   : > { %6814 = vmatprep.subr.bf16.mxu1 %v8868_v23  ;;  %v8944_v23 = vld [vmem:[%s9723_s17 + $0xea8] ss:$16 sps:$4 sm:$0xff]  }
 0x3e2   : > { %6487 = vmatpush1.bf16.msra.mxu0 %v8863_v7  ;;  %v8949_v7 = vld [vmem:[%s9723_s17 + $0xec4] ss:$16 sps:$4 sm:$0xff]  }
 0x3e3   : > { %6815 = vmatpush1.bf16.msra.mxu1 %v8866_v25  ;;  %6488 = vmatprep.subr.bf16.mxu0 %v8871_v31  ;;  %v8952_v25 = vld [vmem:[%s9723_s17 + $0xecc] ss:$16 sps:$4 sm:$0xff]   ;;  %v8947_v31 = vld [vmem:[%s9723_s17 + $0xec0] ss:$16 sps:$4 sm:$0xff]  }
 0x3e4   : > { %6816 = vmatprep.subr.bf16.mxu1 %v8874_v35  ;;  %v8950_v35 = vld [vmem:[%s9723_s17 + $0xec8] ss:$16 sps:$4 sm:$0xff]  }
 0x3e6   : > { %6489 = vmatpush1.bf16.msra.mxu0 %v8869_v40  ;;  %v8955_v40 = vld [vmem:[%s9723_s17 + $0xee4] ss:$16 sps:$4 sm:$0xff]  }
 0x3e7   : > { %6817 = vmatpush1.bf16.msra.mxu1 %v8872_v27  ;;  %6490 = vmatprep.subr.bf16.mxu0 %v8877_v44  ;;  %v8958_v27 = vld [vmem:[%s9723_s17 + $0xeec] ss:$16 sps:$4 sm:$0xff]   ;;  %v8953_v44 = vld [vmem:[%s9723_s17 + $0xee0] ss:$16 sps:$4 sm:$0xff]  }
 0x3e8   : > { %6818 = vmatprep.subr.bf16.mxu1 %v8880_v54  ;;  %v8956_v54 = vld [vmem:[%s9723_s17 + $0xee8] ss:$16 sps:$4 sm:$0xff]  }
 0x3ea   : > { %6491 = vmatpush1.bf16.msra.mxu0 %v8875_v59  ;;  %v8961_v59 = vld [vmem:[%s9723_s17 + $0xf04] ss:$16 sps:$4 sm:$0xff]  }
 0x3eb   : > { %6819 = vmatpush1.bf16.msra.mxu1 %v8878_v18  ;;  %6492 = vmatprep.subr.bf16.mxu0 %v8883_v42  ;;  %v8964_v18 = vld [vmem:[%s9723_s17 + $0xf0c] ss:$16 sps:$4 sm:$0xff]   ;;  %v8959_v42 = vld [vmem:[%s9723_s17 + $0xf00] ss:$16 sps:$4 sm:$0xff]  }
 0x3ec   : > { %6820 = vmatprep.subr.bf16.mxu1 %v8886_v38  ;;  %v8962_v38 = vld [vmem:[%s9723_s17 + $0xf08] ss:$16 sps:$4 sm:$0xff]  }
 0x3ee   : > { %6493 = vmatpush1.bf16.msra.mxu0 %v8881_v17  ;;  %v8967_v17 = vld [vmem:[%s9723_s17 + $0xf24] ss:$16 sps:$4 sm:$0xff]  }
 0x3ef   : > { %6821 = vmatpush1.bf16.msra.mxu1 %v8884_v50  ;;  %6494 = vmatprep.subr.bf16.mxu0 %v8889_v41  ;;  %v8970_v50 = vld [vmem:[%s9723_s17 + $0xf2c] ss:$16 sps:$4 sm:$0xff]   ;;  %v8965_v41 = vld [vmem:[%s9723_s17 + $0xf20] ss:$16 sps:$4 sm:$0xff]  }
 0x3f0   : > { %6822 = vmatprep.subr.bf16.mxu1 %v8892_v53  ;;  %v8968_v53 = vld [vmem:[%s9723_s17 + $0xf28] ss:$16 sps:$4 sm:$0xff]  }
 0x3f2   : > { %6495 = vmatpush1.bf16.msra.mxu0 %v8887_v57  ;;  %v8973_v57 = vld [vmem:[%s9723_s17 + $0xf44] ss:$16 sps:$4 sm:$0xff]  }
 0x3f3   : > { %6823 = vmatpush1.bf16.msra.mxu1 %v8890_v26  ;;  %6496 = vmatprep.subr.bf16.mxu0 %v8895_v33  ;;  %v8976_v26 = vld [vmem:[%s9723_s17 + $0xf4c] ss:$16 sps:$4 sm:$0xff]   ;;  %v8971_v33 = vld [vmem:[%s9723_s17 + $0xf40] ss:$16 sps:$4 sm:$0xff]  }
 0x3f4   : > { %6824 = vmatprep.subr.bf16.mxu1 %v8898_v47  ;;  %v8974_v47 = vld [vmem:[%s9723_s17 + $0xf48] ss:$16 sps:$4 sm:$0xff]  }
 0x3f6   : > { %6497 = vmatpush1.bf16.msra.mxu0 %v8893_v56  ;;  %v8979_v56 = vld [vmem:[%s9723_s17 + $0xf64] ss:$16 sps:$4 sm:$0xff]  }
 0x3f7   : > { %6825 = vmatpush1.bf16.msra.mxu1 %v8896_v24  ;;  %6498 = vmatprep.subr.bf16.mxu0 %v8901_v36  ;;  %v8982_v24 = vld [vmem:[%s9723_s17 + $0xf6c] ss:$16 sps:$4 sm:$0xff]   ;;  %v8977_v36 = vld [vmem:[%s9723_s17 + $0xf60] ss:$16 sps:$4 sm:$0xff]  }
 0x3f8   : > { %6826 = vmatprep.subr.bf16.mxu1 %v8904_v8  ;;  %v8980_v8 = vld [vmem:[%s9723_s17 + $0xf68] ss:$16 sps:$4 sm:$0xff]  }
 0x3fa   : > { %6499 = vmatpush1.bf16.msra.mxu0 %v8899_v48  ;;  %v8985_v48 = vld [vmem:[%s9723_s17 + $0xf84] ss:$16 sps:$4 sm:$0xff]  }
 0x3fb   : > { %6827 = vmatpush1.bf16.msra.mxu1 %v8902_v10  ;;  %6500 = vmatprep.subr.bf16.mxu0 %v8907_v9  ;;  %v8988_v10 = vld [vmem:[%s9723_s17 + $0xf8c] ss:$16 sps:$4 sm:$0xff]   ;;  %v8983_v9 = vld [vmem:[%s9723_s17 + $0xf80] ss:$16 sps:$4 sm:$0xff]  }
 0x3fc   : > { %6828 = vmatprep.subr.bf16.mxu1 %v8910_v52  ;;  %v8986_v52 = vld [vmem:[%s9723_s17 + $0xf88] ss:$16 sps:$4 sm:$0xff]  }
 0x3fe   : > { %6501 = vmatpush1.bf16.msra.mxu0 %v8905_v19  ;;  %v8991_v19 = vld [vmem:[%s9723_s17 + $0xfa4] ss:$16 sps:$4 sm:$0xff]  }
 0x3ff   : > { %6829 = vmatpush1.bf16.msra.mxu1 %v8908_v46  ;;  %6511 = vmatprep.subr.bf16.mxu0 %v8913_v39  ;;  %v8994_v46 = vld [vmem:[%s9723_s17 + $0xfac] ss:$16 sps:$4 sm:$0xff]   ;;  %v8992_v39 = vld [vmem:[%s9723_s17 + $0xfa8] ss:$16 sps:$4 sm:$0xff]  }
 0x400   : > { %6839 = vmatprep.subr.bf16.mxu1 %v8916_v58  ;;  %v8997_v58 = vld [vmem:[%s9723_s17 + $0xfc4] ss:$16 sps:$4 sm:$0xff]  }
 0x401   : > { %6503 = vmatmul.mubr.bf16.vlgmr.msra.gmra.mrb[16].mxu0 %v3148_v0 }
 0x402   : > { %6831 = vmatmul.mubr.bf16.vlgmr.msra.gmra.mrb[16].mxu1 %v3148_v0  ;;  %6512 = vmatpush1.bf16.msra.mxu0 %v8911_v62  ;;  %v8995_v62 = vld [vmem:[%s9723_s17 + $0xfc0] ss:$16 sps:$4 sm:$0xff]   ;;  %v8998_v0 = vld [vmem:[%s9723_s17 + $0xfc8] ss:$16 sps:$4 sm:$0xff]  }
 0x403   : > { %6543 = vmatprep.mubr.bf16.mxu0 %v3151_v37  ;;  %6840 = vmatpush1.bf16.msra.mxu1 %v8914_v11  ;;  %v9003_v11 = vld [vmem:[%s9723_s17 + $0xfe4] ss:$16 sps:$4 sm:$0xff]  }
 0x404   : > { %6871 = vmatprep.mubr.bf16.mxu1 %v3151_v37  ;;  %6513 = vmatprep.subr.bf16.mxu0 %v8919_v61  ;;  %v9006_v61 = vld [vmem:[%s9723_s17 + $0xfec] ss:$16 sps:$4 sm:$0xff]   ;;  %v9001_v37 = vld [vmem:[%s9723_s17 + $0xfe0] ss:$16 sps:$4 sm:$0xff]  }
 0x405   : > { %6841 = vmatprep.subr.bf16.mxu1 %v8922_v22  ;;  %v9004_v22 = vld [vmem:[%s9723_s17 + $0xfe8] ss:$16 sps:$4 sm:$0xff]  }
 0x406   : > { %6514 = vmatpush1.bf16.msra.mxu0 %v8917_v43  ;;  %v3134_v43 = vmax.f32 %v10576_v60, 0.0 }
 0x407   : > { %6842 = vmatpush1.bf16.msra.mxu1 %v8920_v49  ;;  %6515 = vmatprep.subr.bf16.mxu0 %v8925_v4 }
 0x408   : > { %6843 = vmatprep.subr.bf16.mxu1 %v8928_v63  ;;  %v3150_v49 = vpack.c.bf16 %v3134_v43, %v3134_v43 }
 0x40a   : > { %6516 = vmatpush1.bf16.msra.mxu0 %v8923_v29 }
 0x40b   : > { %6844 = vmatpush1.bf16.msra.mxu1 %v8926_v20  ;;  %6517 = vmatprep.subr.bf16.mxu0 %v8931_v1 }
 0x40c   : > { %6845 = vmatprep.subr.bf16.mxu1 %v8934_v2 }
 0x40e   : > { %6518 = vmatpush1.bf16.msra.mxu0 %v8929_v15 }
 0x40f   : > { %6846 = vmatpush1.bf16.msra.mxu1 %v8932_v30  ;;  %6519 = vmatprep.subr.bf16.mxu0 %v8937_v16 }
 0x410   : > { %6847 = vmatprep.subr.bf16.mxu1 %v8940_v21 }
 0x412   : > { %6520 = vmatpush1.bf16.msra.mxu0 %v8935_v51 }
 0x413   : > { %6848 = vmatpush1.bf16.msra.mxu1 %v8938_v3  ;;  %6521 = vmatprep.subr.bf16.mxu0 %v8943_v13 }
 0x414   : > { %6849 = vmatprep.subr.bf16.mxu1 %v8946_v6 }
 0x416   : > { %6522 = vmatpush1.bf16.msra.mxu0 %v8941_v55 }
 0x417   : > { %6850 = vmatpush1.bf16.msra.mxu1 %v8944_v23  ;;  %6523 = vmatprep.subr.bf16.mxu0 %v8949_v7 }
 0x418   : > { %6851 = vmatprep.subr.bf16.mxu1 %v8952_v25 }
 0x41a   : > { %6524 = vmatpush1.bf16.msra.mxu0 %v8947_v31 }
 0x41b   : > { %6852 = vmatpush1.bf16.msra.mxu1 %v8950_v35  ;;  %6525 = vmatprep.subr.bf16.mxu0 %v8955_v40 }
 0x41c   : > { %6853 = vmatprep.subr.bf16.mxu1 %v8958_v27 }
 0x41e   : > { %6526 = vmatpush1.bf16.msra.mxu0 %v8953_v44 }
 0x41f   : > { %6854 = vmatpush1.bf16.msra.mxu1 %v8956_v54  ;;  %6527 = vmatprep.subr.bf16.mxu0 %v8961_v59 }
 0x420   : > { %6855 = vmatprep.subr.bf16.mxu1 %v8964_v18 }
 0x422   : > { %6528 = vmatpush1.bf16.msra.mxu0 %v8959_v42 }
 0x423   : > { %6856 = vmatpush1.bf16.msra.mxu1 %v8962_v38  ;;  %6529 = vmatprep.subr.bf16.mxu0 %v8967_v17 }
 0x424   : > { %6857 = vmatprep.subr.bf16.mxu1 %v8970_v50 }
 0x426   : > { %6530 = vmatpush1.bf16.msra.mxu0 %v8965_v41 }
 0x427   : > { %6858 = vmatpush1.bf16.msra.mxu1 %v8968_v53  ;;  %6531 = vmatprep.subr.bf16.mxu0 %v8973_v57 }
 0x428   : > { %6859 = vmatprep.subr.bf16.mxu1 %v8976_v26 }
 0x42a   : > { %6532 = vmatpush1.bf16.msra.mxu0 %v8971_v33 }
 0x42b   : > { %6860 = vmatpush1.bf16.msra.mxu1 %v8974_v47  ;;  %6533 = vmatprep.subr.bf16.mxu0 %v8979_v56 }
 0x42c   : > { %6861 = vmatprep.subr.bf16.mxu1 %v8982_v24 }
 0x42e   : > { %6534 = vmatpush1.bf16.msra.mxu0 %v8977_v36 }
 0x42f   : > { %6862 = vmatpush1.bf16.msra.mxu1 %v8980_v8  ;;  %6535 = vmatprep.subr.bf16.mxu0 %v8985_v48 }
 0x430   : > { %6863 = vmatprep.subr.bf16.mxu1 %v8988_v10 }
 0x432   : > { %6536 = vmatpush1.bf16.msra.mxu0 %v8983_v9 }
 0x433   : > { %6864 = vmatpush1.bf16.msra.mxu1 %v8986_v52  ;;  %6537 = vmatprep.subr.bf16.mxu0 %v8991_v19 }
 0x434   : > { %6865 = vmatprep.subr.bf16.mxu1 %v8994_v46 }
 0x436   : > { %6538 = vmatpush1.bf16.msra.mxu0 %v8989_v45 }
 0x437   : > { %6866 = vmatpush1.bf16.msra.mxu1 %v8992_v39  ;;  %6539 = vmatprep.subr.bf16.mxu0 %v8997_v58 }
 0x438   : > { %6867 = vmatprep.subr.bf16.mxu1 %v9000_v14 }
 0x43a   : > { %6540 = vmatpush1.bf16.msra.mxu0 %v8995_v62 }
 0x43b   : > { %6868 = vmatpush1.bf16.msra.mxu1 %v8998_v0  ;;  %6541 = vmatprep.subr.bf16.mxu0 %v9003_v11 }
 0x43c   : > { %6869 = vmatprep.subr.bf16.mxu1 %v9006_v61 }
 0x43e   : > { %6542 = vmatpush1.bf16.msra.mxu0 %v9001_v37 }
 0x43f   : > { %6870 = vmatpush1.bf16.msra.mxu1 %v9004_v22 }
 0x441   : > { %6544 = vmatmul.mubr.bf16.vlgmr.msra.gmra.mrb[16].mxu0 %v3150_v49 }
 0x442   : > { %6872 = vmatmul.mubr.bf16.vlgmr.msra.gmra.mrb[16].mxu1 %v3150_v49 }
 0x514   : > { %v10905_v4 = vpop.f32.mrb[16].mxu0 }
 0x515   : > { %v6880_v63 = vrot.slane %v10905_v4, 4  ;;  %v6908_v29 = vmul.f32 %v10905_v4, %v10905_v4  ;;  %v10910_v20 = vpop.f32.mrb[16].mxu1  ;;  %v10912_v1 = vpop.f32.mrb[17].mxu0 }
 0x516   : > { %v6892_v2 = vrot.slane %v10910_v20, 4  ;;  %v6910_v60 = vmul.f32 %v10910_v20, %v10910_v20  ;;  %v6886_v15 = vrot.slane %v10912_v1, 4  ;;  %v6909_v30 = vmul.f32 %v10912_v1, %v10912_v1  ;;  %v10920_v16 = vpop.f32.mrb[17].mxu1  ;;  %v6549_v21 = vpop.f32.mrb[18].mxu0 }
 0x517   : > { %v6881_v51 = vadd.f32 %v6880_v63, %v10905_v4  ;;  %v6912_v3 = vrot.slane %v6908_v29, 4  ;;  %v6898_v13 = vrot.slane %v10920_v16, 4  ;;  %v6911_v6 = vmul.f32 %v10920_v16, %v10920_v16  ;;  %v6877_v55 = vpop.f32.mrb[18].mxu1  ;;  %v6550_v23 = vpop.f32.mrb[19].mxu0 }
 0x518   : > { %v6893_v7 = vadd.f32 %v6892_v2, %v10910_v20  ;;  %v6924_v25 = vrot.slane %v6910_v60, 4  ;;  %v6887_v31 = vadd.f32 %v6886_v15, %v10912_v1  ;;  %v6918_v35 = vrot.slane %v6909_v30, 4  ;;  %v6878_v40 = vpop.f32.mrb[19].mxu1 }
 0x519   : > { %v6882_v27 = vrot.slane %v6881_v51, 2  ;;  %v6913_v44 = vadd.f32 %v6912_v3, %v6908_v29  ;;  %v6899_v54 = vadd.f32 %v6898_v13, %v10920_v16  ;;  %v6930_v59 = vrot.slane %v6911_v6, 4 }
 0x51a   : > { %v6894_v18 = vrot.slane %v6893_v7, 2  ;;  %v6925_v42 = vadd.f32 %v6924_v25, %v6910_v60  ;;  %v6888_v38 = vrot.slane %v6887_v31, 2  ;;  %v6919_v17 = vadd.f32 %v6918_v35, %v6909_v30 }
 0x51b   : > { %v6883_v50 = vadd.f32 %v6882_v27, %v6881_v51  ;;  %v6914_v41 = vrot.slane %v6913_v44, 2  ;;  %v6900_v53 = vrot.slane %v6899_v54, 2  ;;  %v6931_v57 = vadd.f32 %v6930_v59, %v6911_v6 }
 0x51c   : > { %v6895_v26 = vadd.f32 %v6894_v18, %v6893_v7  ;;  %v6926_v33 = vrot.slane %v6925_v42, 2  ;;  %v6889_v47 = vadd.f32 %v6888_v38, %v6887_v31  ;;  %v6920_v56 = vrot.slane %v6919_v17, 2 }
 0x51d   : > { %v6884_v24 = vrot.slane %v6883_v50, 1  ;;  %v6915_v36 = vadd.f32 %v6914_v41, %v6913_v44  ;;  %v6901_v8 = vadd.f32 %v6900_v53, %v6899_v54  ;;  %v6932_v48 = vrot.slane %v6931_v57, 2 }
 0x51e   : > { %v6896_v10 = vrot.slane %v6895_v26, 1  ;;  %v6927_v9 = vadd.f32 %v6926_v33, %v6925_v42  ;;  %v6890_v52 = vrot.slane %v6889_v47, 1  ;;  %v6921_v19 = vadd.f32 %v6920_v56, %v6919_v17  ;;  %v6960_v17 = vld [vmem:[%s9727_s14] sm:$0xf] }
 0x51f   : > { %v6885_v46 = vadd.f32 %v6884_v24, %v6883_v50  ;;  %v6916_v45 = vrot.slane %v6915_v36, 1  ;;  %v6902_v39 = vrot.slane %v6901_v8, 1  ;;  %v6933_v58 = vadd.f32 %v6932_v48, %v6931_v57 }
 0x520   : > { %v6897_v14 = vadd.f32 %v6896_v10, %v6895_v26  ;;  %v6928_v62 = vrot.slane %v6927_v9, 1  ;;  %v6891_v0 = vadd.f32 %v6890_v52, %v6889_v47  ;;  %v6922_v11 = vrot.slane %v6921_v19, 1 }
 0x521   : > { %v6904_v61 = vmul.f32 0.125, %v6885_v46  ;;  %v6917_v37 = vadd.f32 %v6916_v45, %v6915_v36  ;;  %v6903_v22 = vadd.f32 %v6902_v39, %v6901_v8  ;;  %v6934_v43 = vrot.slane %v6933_v58, 1 }
 0x522   : > { %v6906_v49 = vmul.f32 0.125, %v6897_v14  ;;  %v6929_v63 = vadd.f32 %v6928_v62, %v6927_v9  ;;  %v6905_v29 = vmul.f32 0.125, %v6891_v0  ;;  %v6923_v2 = vadd.f32 %v6922_v11, %v6921_v19 }
 0x523   : > { %v6936_v60 = vmul.f32 0.125, %v6917_v37  ;;  %v6940_v15 = vmul.f32 %v6904_v61, %v6904_v61  ;;  %v6907_v30 = vmul.f32 0.125, %v6903_v22  ;;  %v6935_v21 = vadd.f32 %v6934_v43, %v6933_v58 }
 0x524   : > { %v6938_v51 = vmul.f32 0.125, %v6929_v63  ;;  %v6942_v3 = vmul.f32 %v6906_v49, %v6906_v49  ;;  %v6937_v13 = vmul.f32 0.125, %v6923_v2  ;;  %v6941_v6 = vmul.f32 %v6905_v29, %v6905_v29 }
 0x525   : > { %v6944_v55 = vsub.f32 %v6936_v60, %v6940_v15  ;;  %v6939_v23 = vmul.f32 0.125, %v6935_v21  ;;  %v6943_v7 = vmul.f32 %v6907_v30, %v6907_v30  ;;  %v6965_v50 = vrot.slane %v6960_v17, %v10110_v12 }
 0x526   : > { %v6946_v25 = vsub.f32 %v6938_v51, %v6942_v3  ;;  %v6945_v31 = vsub.f32 %v6937_v13, %v6941_v6  ;;  %v6973_v41 = vrot.slane %v6960_v17, %v10113_v28  ;;  %v6969_v53 = vrot.slane %v6960_v17, %v10119_v32 }
 0x527   : > { %v6948_v35 = vmax.f32 %v6944_v55, 0.0  ;;  %v6947_v40 = vsub.f32 %v6939_v23, %v6943_v7  ;;  %v6977_v26 = vrot.slane %v6960_v17, %v10123_v34 }
 0x528   : > { %v6950_v27 = vmax.f32 %v6946_v25, 0.0  ;;  %v6949_v44 = vmax.f32 %v6945_v31, 0.0 }
 0x529   : > { %v6952_v54 = vadd.f32 1e-05, %v6948_v35  ;;  %v6951_v59 = vmax.f32 %v6947_v40, 0.0 }
 0x52a   : > { %v6954_v18 = vadd.f32 1e-05, %v6950_v27  ;;  %v6953_v42 = vadd.f32 1e-05, %v6949_v44 }
 0x52b   : > { %9039 = vrsqrt.f32 %v6952_v54  ;;  %v6955_v38 = vadd.f32 1e-05, %v6951_v59 }
 0x52c   : > { %9041 = vrsqrt.f32 %v6954_v18 }
 0x52d   : > { %9043 = vrsqrt.f32 %v6953_v42 }
 0x52e   : > { %9045 = vrsqrt.f32 %v6955_v38 }
 0x535   : > { %v9040_v57 = vpop.eup %9039 }
 0x536   : > { %v9042_v33 = vpop.eup %9041  ;;  %v6982_v47 = vmul.f32 %v9040_v57, %v6965_v50 }
 0x537   : > { %v9044_v56 = vpop.eup %9043  ;;  %v6984_v24 = vmul.f32 %v9042_v33, %v6973_v41 }
 0x538   : > { %v9046_v36 = vpop.eup %9045  ;;  %v6987_v8 = vmul.f32 %v6982_v47, %v6904_v61  ;;  %v6983_v48 = vmul.f32 %v9044_v56, %v6969_v53  ;;  %v7024_v62 = vrot.slane %v6982_v47, %v10110_v12  ;;  %v6986_v61 = vld [vmem:[%s457_s11] sm:$0xf] }
 0x539   : > { %v6989_v10 = vmul.f32 %v6984_v24, %v6906_v49  ;;  %v6985_v9 = vmul.f32 %v9046_v36, %v6977_v26  ;;  %v7032_v0 = vrot.slane %v6984_v24, %v10110_v12 }
 0x53a   : > { %v6988_v52 = vmul.f32 %v6983_v48, %v6905_v29  ;;  %v7028_v11 = vrot.slane %v6983_v48, %v10110_v12  ;;  %v7037_v49 = vmul.f32 %v7024_v62, %v10905_v4 }
 0x53b   : > { %v6990_v19 = vmul.f32 %v6985_v9, %v6907_v30  ;;  %v7036_v37 = vrot.slane %v6985_v9, %v10110_v12  ;;  %v7039_v63 = vmul.f32 %v7032_v0, %v10910_v20 }
 0x53c   : > { %v6995_v46 = vcombine.low %v6987_v8, %v6988_v52  ;;  %v7038_v29 = vmul.f32 %v7028_v11, %v10912_v1 }
 0x53d   : > { %v6996_v45 = vcombine.low %v6989_v10, %v6990_v19  ;;  %v7040_v2 = vmul.f32 %v7036_v37, %v10920_v16 }
 0x53e   : > { %v7003_v39 = vrot.slane %v6995_v46, %v10152_v5 }
 0x53f   : > { %v7010_v58 = vrot.slane %v6996_v45, %v10152_v5 }
 0x541   : > { %v7011_v14 = vcombine.low %v7003_v39, %v7010_v58 }
 0x543   : > { %v7018_v22 = vrot.slane %v7011_v14, %v10152_v5 }
 0x545   : > { %v7020_v43 = vsub.f32 %v6986_v61, %v7018_v22 }
 0x547   : > { %v7045_v60 = vrot.slane %v7020_v43, %v10110_v12  ;;  %v7049_v15 = vrot.slane %v7020_v43, %v10119_v32  ;;  %v7053_v30 = vrot.slane %v7020_v43, %v10113_v28  ;;  %v7057_v21 = vrot.slane %v7020_v43, %v10123_v34 }
 0x549   : > { %v7062_v5 = vadd.f32 %v7045_v60, %v7037_v49  ;;  %v7063_v51 = vadd.f32 %v7049_v15, %v7038_v29  ;;  %v7064_v3 = vadd.f32 %v7053_v30, %v7039_v63  ;;  %v7065_v4 = vadd.f32 %v7057_v21, %v7040_v2 }
 0x54b   : > { %9047 = vtanh.f32 %v7062_v5 }
 0x54c   : > { %9049 = vtanh.f32 %v7063_v51 }
 0x54d   : > { %9051 = vtanh.f32 %v7064_v3 }
 0x54e   : > { %9053 = vtanh.f32 %v7065_v4 }
 0x555   : > { %v9048_v12 = vpop.eup %9047 }
 0x556   : > { %v9050_v32 = vpop.eup %9049  ;;  %7070 = vst [vmem:[%s517_s18] sm:$0xff] %v9048_v12 }
 0x557   : > { %v9052_v28 = vpop.eup %9051  ;;  %7071 = vst [vmem:[%s517_s18 + $0x8] sm:$0xff] %v9050_v32 }
 0x558   : > { %v9054_v34 = vpop.eup %9053  ;;  %7072 = vst [vmem:[%s517_s18 + $0x10] sm:$0xff] %v9052_v28 }
 0x559   : > { %7073 = vst [vmem:[%s517_s18 + $0x18] sm:$0xff] %v9054_v34 }
 0x55a   : > { %9278 = shalt.err (!%p9275_p1)
}
 0x55b   : > { %s9279_s9 = scalar_lea.hbm %s10956_s7, 512  ;;  %s9283_s3 = scalar_lea.hbm %s11049_s29, 1024 }
 0x55c   : > { %p9280_p13 = scmp.ne.s32.totalorder %s10956_s7, %s9279_s9  ;;  %p9284_p6 = scmp.lt.u32.totalorder %s10956_s7, %s11049_s29 }
 0x55d   : > { %p9285_p4 = scmp.lt.u32.totalorder %s9283_s3, %s9279_s9  ;;  %p9287_p8 = scmp.lt.u32.totalorder %s9279_s9, %s10956_s7 }
 0x55e   : > { %p9281_p3 = pnand %p9280_p13, %p11050_p10 }
 0x55f   : > { %p9286_p2 = por %p9285_p4, %p9284_p6 }
 0x560   : > { %p9282_p5 = pneg %p9281_p3 }
 0x561   : > { %p9288_p7 = por %p9287_p8, %p9286_p2 }
 0x563   : > { %p9289_p0 = pnand %p9288_p7, %p9282_p5 }
 0x565   : > { %9292 = shalt.err (!%p9289_p0)
}
 0x566   : > { %8172 = dma.vmem_to_hbm [thread:$0]  (%p11050_p10), %s10958_s8, 512, %s10956_s7, %s7075_s28  }
 0x567 PF: > { %s11051_s17 = sld [smem:[#allocation20_spill]]  ;;  %s11052_s30 = sld [smem:[#allocation24_spill]] }
 0x568   : > { %p11054_p12 = scmp.ge.s32.totalorder %s9343_s27, 2 }
 0x56d   : > { %s7101_s14 = sand.u32 1, %s11051_s17   ;;  %p11053_p9 = scmp.ne.s32.totalorder %s11052_s30, 0 }
 0x56e   : > { %s7102_s11 = scalar_lea.sflag [#allocation4], %s7101_s14 }
 0x56f   : > { %p8197_p11 = pnand %p11054_p12, %p11053_p9 }
 0x571   : > { %9326 = dma.done.wait (!%p8197_p11), %s7102_s11, 512  }
 0x572   : > { %9328 = vsyncadd (!%p8197_p11), %s7102_s11, 4294966784  ;;  %s11055_s27 = sld [smem:[#allocation22_spill]]  ;;  %s11056_s22 = sld [smem:[#allocation21_spill]] }
 0x573   : > { %s11057_s26 = sld [smem:[#allocation23_spill]]  ;;  %s11058_s24 = smov %s9335_s25 }
 0x578   : > { %p29_p1 = scmp.ge.s32.totalorder %s11055_s27, 4   ;;  %s11059_s25 = smov %s11056_s22 }
 0x57a   :  { %31 = sbr.rel (!%p29_p1) target bundleno = 15 (0xf), region = 165 }
 0x581   :  { %7107 = vsyncpa [#allocation3], 1 }
 0x582   :  { %7109 = vsyncpa [#allocation3 + $0x1], 1 }
 0x583   :  { %7110 = vsyncpa [#allocation6], 1 }
 0x584   :  { %7112 = vsyncpa [#allocation6 + $0x1], 1 }
 0x585   :  { %7113 = vsyncpa [#allocation9], 1 }
 0x586   :  { %7115 = vsyncpa [#allocation9 + $0x1], 1 }
 0x587   :  { %7116 = vsyncpa [#allocation12], 1 }
 0x588   :  { %7118 = vsyncpa [#allocation12 + $0x1], 1 }
 0x589   :  { %7119 = vsyncpa [#allocation4], 1 }
 0x58a   :  { %7121 = vsyncpa [#allocation4 + $0x1], 1 }

</bundles_post_ra>
